<compile_context>
chip_gen: v7x
topology: tpu7x:2x2x1
jax: 0.10.0
libtpu: 0.0.40
codegen_flags: <defaults>
</compile_context>

<pallas_src>
import functools

import jax
import jax.numpy as jnp
from jax import lax
from jax.experimental import pallas as pl
from jax.experimental.pallas import tpu as pltpu

_NEG = -1.0e30  # pad-lane logit value; exp(_NEG - max) underflows to 0


def _round_up(x, m):
    return pl.cdiv(x, m) * m


def _head_kernel(x_ref, wa_ref, ba_ref, wb_ref, bias_ref, *out_refs,
                 tap_offsets, rows_out, emit_logits):
    """One grid step = one image.

    x_ref:    (1, rows_in_p, Cinp) zero-padded image, (h_pad, w_pad) flattened
              so conv tap (kh, kw) is the contiguous row-window at kh*(W+2)+kw.
    wa_ref:   (9, Cinp, 256) convPa taps (bf16).   ba_ref: (1, 256) bias (f32).
    wb_ref:   (256, C2p) convPb with inference BN folded (bf16).
    bias_ref: (1, C2p) folded bias (f32, padded lanes = -1e30).
    out_refs: [logits (1, rows_out, C2p) f32,] prob (1, rows_out, C2p).
    """
    # convPa: in-kernel im2col — 9 shifted tap matmuls, f32 accumulation.
    acc = jnp.dot(x_ref[0, pl.ds(tap_offsets[0], rows_out), :], wa_ref[0],
                  preferred_element_type=jnp.float32)
    for t in range(1, 9):
        acc = acc + jnp.dot(x_ref[0, pl.ds(tap_offsets[t], rows_out), :],
                            wa_ref[t], preferred_element_type=jnp.float32)
    h = jnp.maximum(acc + ba_ref[...], 0.0)                  # conv bias + ReLU

    # convPb (1x1) with BN folded into weights/bias: (rows, 256) @ (256, C2p).
    logits = jnp.dot(h.astype(jnp.bfloat16), wb_ref[...],
                     preferred_element_type=jnp.float32) + bias_ref[...]
    if emit_logits:
        out_refs[0][0] = logits

    # softmax over the channel axis (lane dim); pad lanes contribute 0.
    m = jnp.max(logits, axis=-1, keepdims=True)
    e = jnp.exp(logits - m)
    p = e * pl.reciprocal(jnp.sum(e, axis=-1, keepdims=True), approx=False)
    out_refs[-1][0] = p.astype(out_refs[-1].dtype)


def detector_head_pallas(x_nchw, packed, grid_size, *, emit_logits=True,
                         prob_dtype=jnp.bfloat16, vmem_limit_bytes=None):
    """Forward pass of DetectorHead.  x_nchw: (N, Cin, H, W) float32."""
    wa, ba, wb, bias = packed     # (9,Cinp,256) bf16, (1,256) f32, (256,C2p) bf16, (1,C2p) f32
    N, Cin, H, W = x_nchw.shape
    C2 = grid_size * grid_size + 1
    Cinp = wa.shape[1]
    C2p = wb.shape[1]
    Wp = W + 2                                   # padded width (SAME, pad=1)
    rows_out = H * Wp                            # includes 2 junk cols per row
    rows_in = (H + 2) * Wp
    rows_in_p = _round_up(rows_in + 2, 8)        # room for the (kh=2,kw=2) tap

    # --- glue: bf16 first, NCHW -> NHWC, pad H/W by 1 and channels to Cinp,
    #     flatten (h, w) so every conv tap is one contiguous row-window. ---
    x = jnp.transpose(x_nchw.astype(jnp.bfloat16), (0, 2, 3, 1))  # (N,H,W,Cin)
    x = jnp.pad(x, ((0, 0), (1, 1), (1, 1), (0, Cinp - Cin)))
    x = x.reshape(N, rows_in, Cinp)
    x = jnp.pad(x, ((0, 0), (0, rows_in_p - rows_in), (0, 0)))

    tap_offsets = tuple(kh * Wp + kw for kh in range(3) for kw in range(3))
    kernel = functools.partial(_head_kernel, tap_offsets=tap_offsets,
                               rows_out=rows_out, emit_logits=emit_logits)

    def img_spec(shape):      # one block per image
        return pl.BlockSpec(shape, lambda n: (n,) + (0,) * (len(shape) - 1))

    def const_spec(shape):    # grid-invariant (weights/bias): fetched once
        return pl.BlockSpec(shape, lambda n: (0,) * len(shape))

    out_shapes, out_specs = [], []
    if emit_logits:
        out_shapes.append(jax.ShapeDtypeStruct((N, rows_out, C2p), jnp.float32))
        out_specs.append(img_spec((1, rows_out, C2p)))
    out_shapes.append(jax.ShapeDtypeStruct((N, rows_out, C2p), prob_dtype))
    out_specs.append(img_spec((1, rows_out, C2p)))

    prob_bytes = jnp.dtype(prob_dtype).itemsize
    cost = pl.CostEstimate(
        flops=int(2 * N * rows_out * (9 * Cinp * 256 + 256 * C2p)),
        transcendentals=int(N * rows_out * C2p),
        bytes_accessed=int(x.size * 2 + wa.size * 2 + wb.size * 2
                           + ba.size * 4 + bias.size * 4
                           + N * rows_out * C2p * (4 * int(emit_logits) + prob_bytes)))

    outs = pl.pallas_call(
        kernel,
        out_shape=tuple(out_shapes),
        grid=(N,),
        in_specs=[
            img_spec((1, rows_in_p, Cinp)),   # activations, streamed once (bf16)
            const_spec((9, Cinp, 256)),       # convPa taps (bf16)
            const_spec((1, 256)),             # convPa bias (f32)
            const_spec((256, C2p)),           # convPb with BN folded (bf16)
            const_spec((1, C2p)),             # folded bias (f32, pads = -1e30)
        ],
        out_specs=tuple(out_specs),
        compiler_params=pltpu.CompilerParams(
            dimension_semantics=("parallel",),
            vmem_limit_bytes=vmem_limit_bytes),
        cost_estimate=cost,
    )(x, wa, ba, wb, bias)

    # --- glue: drop junk columns / pad lanes, NCHW logits, pixel shuffle. ---
    r = grid_size
    prob_nhwc = outs[-1].reshape(N, H, Wp, C2p)[:, :, :W, :C2 - 1]  # bf16, no dustbin
    prob = prob_nhwc.reshape(N, H, W, r, r)
    prob = jnp.transpose(prob, (0, 1, 3, 2, 4)).reshape(N, 1, H * r, W * r)
    result = {"prob": prob}
    if emit_logits:
        logits_nhwc = outs[0].reshape(N, H, Wp, C2p)[:, :, :W, :C2]
        result["logits"] = jnp.transpose(logits_nhwc, (0, 3, 1, 2))   # (N,C2,H,W)
    return result


def init_raw_params(key, in_channels, grid_size):
    """Deterministic synthetic module parameters (conv + BN running stats)."""
    C2 = grid_size * grid_size + 1
    ks = jax.random.split(key, 10)
    p = {}
    p["wa"] = jax.random.normal(ks[0], (3, 3, in_channels, 256), jnp.float32) * 0.1  # HWIO
    p["ba"] = 0.05 * jax.random.normal(ks[1], (256,), jnp.float32)
    p["gamma_a"] = 1.0 + 0.1 * jax.random.normal(ks[2], (256,), jnp.float32)
    p["beta_a"] = 0.05 * jax.random.normal(ks[3], (256,), jnp.float32)
    p["mean_a"] = 0.05 * jax.random.normal(ks[4], (256,), jnp.float32)
    p["var_a"] = 0.5 + jax.random.uniform(ks[5], (256,), jnp.float32)
    p["wb"] = jax.random.normal(ks[6], (256, C2), jnp.float32) * 0.1
    p["bb"] = 0.05 * jax.random.normal(ks[7], (C2,), jnp.float32)
    p["gamma_b"] = 1.0 + 0.1 * jax.random.normal(ks[8], (C2,), jnp.float32)
    p["beta_b"] = 0.05 * jax.random.normal(ks[9], (C2,), jnp.float32)
    p["mean_b"] = jnp.zeros((C2,), jnp.float32)
    p["var_b"] = jnp.ones((C2,), jnp.float32)
    return p


def pack_params(raw, in_channels, grid_size, eps=1e-5):
    """Fold inference-mode BN into the matmul weights; pad to MXU-friendly shapes."""
    C2 = grid_size * grid_size + 1
    Cinp = _round_up(in_channels, 128)   # contraction lanes (SuperPoint Cin=128)
    C2p = _round_up(C2, 128)             # exactly 128 lanes: lane-dense stores

    sa = raw["gamma_a"] / jnp.sqrt(raw["var_a"] + eps)
    ta = raw["beta_a"] - raw["mean_a"] * sa
    sb = raw["gamma_b"] / jnp.sqrt(raw["var_b"] + eps)
    tb = raw["beta_b"] - raw["mean_b"] * sb

    # convPa: HWIO (3,3,Cin,256) -> (9, Cin, 256) taps, zero-pad channels.
    wa = raw["wa"].reshape(9, in_channels, 256)
    wa = jnp.pad(wa, ((0, 0), (0, Cinp - in_channels), (0, 0))).astype(jnp.bfloat16)
    ba = raw["ba"].reshape(1, 256)                                # f32

    # logits = relu(conv(x) + ba) @ Wb' + bias'
    #   Wb'[c,d] = sa[c]*Wb[c,d]*sb[d];  bias'[d] = (ta@Wb)[d]*sb[d] + bb[d]*sb[d] + tb[d]
    wbf = sa[:, None] * raw["wb"] * sb[None, :]
    bias = (ta @ raw["wb"]) * sb + raw["bb"] * sb + tb
    wbf = jnp.pad(wbf, ((0, 0), (0, C2p - C2))).astype(jnp.bfloat16)
    bias = jnp.pad(bias.reshape(1, C2), ((0, 0), (0, C2p - C2)),
                   constant_values=_NEG)                          # f32
    return (wa, ba, wbf, bias)


def _reference(x_nchw, raw, grid_size, eps=1e-5):
    """Pure-JAX f32 reference mirroring the PyTorch module."""
    N, Cin, H, W = x_nchw.shape
    x = jnp.transpose(x_nchw, (0, 2, 3, 1))
    h = lax.conv_general_dilated(
        x, raw["wa"], window_strides=(1, 1), padding="SAME",
        dimension_numbers=("NHWC", "HWIO", "NHWC"))
    h = jnp.maximum(h + raw["ba"], 0.0)
    sa = raw["gamma_a"] / jnp.sqrt(raw["var_a"] + eps)
    ta = raw["beta_a"] - raw["mean_a"] * sa
    h = h * sa + ta
    logits = jnp.einsum("nhwc,cd->nhwd", h, raw["wb"]) + raw["bb"]
    sb = raw["gamma_b"] / jnp.sqrt(raw["var_b"] + eps)
    tb = raw["beta_b"] - raw["mean_b"] * sb
    logits = logits * sb + tb
    prob = jax.nn.softmax(logits, axis=-1)[..., :-1]
    r = grid_size
    prob = prob.reshape(N, H, W, r, r)
    prob = jnp.transpose(prob, (0, 1, 3, 2, 4)).reshape(N, 1, H * r, W * r)
    return jnp.transpose(logits, (0, 3, 1, 2)), prob


if __name__ == "__main__":
    N, Cin, H, W = 2, 4, 16, 16
    grid_size = 4

    key = jax.random.PRNGKey(0)
    kx, kp = jax.random.split(key)
    x = jax.random.normal(kx, (N, Cin, H, W), jnp.float32)
    raw = init_raw_params(kp, Cin, grid_size)
    packed = pack_params(raw, Cin, grid_size)

    fwd = jax.jit(functools.partial(detector_head_pallas, grid_size=grid_size))
    out = fwd(x, packed)
    jax.block_until_ready(out)

    ref_logits, ref_prob = _reference(x, raw, grid_size)
    assert out["logits"].shape == (N, grid_size ** 2 + 1, H, W)
    assert out["prob"].shape == (N, 1, H * grid_size, W * grid_size)
    # bf16 matmul inputs (f32 accumulation) + bf16 prob storage -> loosened tolerances.
    assert jnp.allclose(out["logits"], ref_logits, atol=1e-1, rtol=5e-2), \
        float(jnp.max(jnp.abs(out["logits"] - ref_logits)))
    prob_f32 = out["prob"].astype(jnp.float32)
    assert jnp.allclose(prob_f32, ref_prob, atol=2e-2, rtol=5e-2), \
        float(jnp.max(jnp.abs(prob_f32 - ref_prob)))

    print("KERNEL_OK")
</pallas_src>

<mosaic_0001>
module attributes {stable_mosaic.version = 11 : i64} {
  func.func @_head_kernel(%arg0: i32, %arg1: memref<1x328x128xbf16, #tpu.memory_space<vmem>>, %arg2: memref<9x128x256xbf16, #tpu.memory_space<vmem>>, %arg3: memref<1x256xf32, #tpu.memory_space<vmem>>, %arg4: memref<256x128xbf16, #tpu.memory_space<vmem>>, %arg5: memref<1x128xf32, #tpu.memory_space<vmem>>, %arg6: memref<1x288x128xf32, #tpu.memory_space<vmem>>, %arg7: memref<1x288x128xbf16, #tpu.memory_space<vmem>>) attributes {dimension_semantics = [#tpu.dimension_semantics<parallel>], iteration_bounds = array<i64: 2>, scalar_prefetch = 0 : i64, scratch_operands = 0 : i64, tpu.core_type = #tpu.core_type<tc>, window_params = [{transform_indices = @transform_0, window_bounds = array<i64: 1, 328, 128>}, {pipeline_mode = #tpu.pipeline_mode<synchronous>, transform_indices = @transform_1, window_bounds = array<i64: 9, 128, 256>}, {pipeline_mode = #tpu.pipeline_mode<synchronous>, transform_indices = @transform_2, window_bounds = array<i64: 1, 256>}, {pipeline_mode = #tpu.pipeline_mode<synchronous>, transform_indices = @transform_3, window_bounds = array<i64: 256, 128>}, {pipeline_mode = #tpu.pipeline_mode<synchronous>, transform_indices = @transform_4, window_bounds = array<i64: 1, 128>}, {transform_indices = @transform_5, window_bounds = array<i64: 1, 288, 128>}, {transform_indices = @transform_6, window_bounds = array<i64: 1, 288, 128>}]} {
    %c0 = arith.constant 0 : index
    %c0_0 = arith.constant 0 : index
    %c0_1 = arith.constant 0 : index
    %0 = vector.load %arg1[%c0, %c0_0, %c0_1] : memref<1x328x128xbf16, #tpu.memory_space<vmem>>, vector<1x288x128xbf16>
    %1 = vector.shape_cast %0 : vector<1x288x128xbf16> to vector<288x128xbf16>
    %c0_2 = arith.constant 0 : index
    %c0_3 = arith.constant 0 : index
    %c0_4 = arith.constant 0 : index
    %2 = vector.load %arg2[%c0_2, %c0_3, %c0_4] : memref<9x128x256xbf16, #tpu.memory_space<vmem>>, vector<1x128x256xbf16>
    %3 = vector.shape_cast %2 : vector<1x128x256xbf16> to vector<128x256xbf16>
    %cst = arith.constant dense<0.000000e+00> : vector<288x256xf32>
    %4 = tpu.matmul %1, %3, %cst {dimension_numbers = #tpu.dot_dimension_numbers<[1], [0], [0], [1], [0, 0, 1, 1], [], []>} : vector<288x128xbf16>, vector<128x256xbf16>, vector<288x256xf32> -> vector<288x256xf32>
    %c0_5 = arith.constant 0 : index
    %c1 = arith.constant 1 : index
    %c0_6 = arith.constant 0 : index
    %5 = vector.load %arg1[%c0_5, %c1, %c0_6] : memref<1x328x128xbf16, #tpu.memory_space<vmem>>, vector<1x288x128xbf16>
    %6 = vector.shape_cast %5 : vector<1x288x128xbf16> to vector<288x128xbf16>
    %c1_7 = arith.constant 1 : index
    %c0_8 = arith.constant 0 : index
    %c0_9 = arith.constant 0 : index
    %7 = vector.load %arg2[%c1_7, %c0_8, %c0_9] : memref<9x128x256xbf16, #tpu.memory_space<vmem>>, vector<1x128x256xbf16>
    %8 = vector.shape_cast %7 : vector<1x128x256xbf16> to vector<128x256xbf16>
    %cst_10 = arith.constant dense<0.000000e+00> : vector<288x256xf32>
    %9 = tpu.matmul %6, %8, %cst_10 {dimension_numbers = #tpu.dot_dimension_numbers<[1], [0], [0], [1], [0, 0, 1, 1], [], []>} : vector<288x128xbf16>, vector<128x256xbf16>, vector<288x256xf32> -> vector<288x256xf32>
    %10 = arith.addf %4, %9 : vector<288x256xf32>
    %c0_11 = arith.constant 0 : index
    %c2 = arith.constant 2 : index
    %c0_12 = arith.constant 0 : index
    %11 = vector.load %arg1[%c0_11, %c2, %c0_12] : memref<1x328x128xbf16, #tpu.memory_space<vmem>>, vector<1x288x128xbf16>
    %12 = vector.shape_cast %11 : vector<1x288x128xbf16> to vector<288x128xbf16>
    %c2_13 = arith.constant 2 : index
    %c0_14 = arith.constant 0 : index
    %c0_15 = arith.constant 0 : index
    %13 = vector.load %arg2[%c2_13, %c0_14, %c0_15] : memref<9x128x256xbf16, #tpu.memory_space<vmem>>, vector<1x128x256xbf16>
    %14 = vector.shape_cast %13 : vector<1x128x256xbf16> to vector<128x256xbf16>
    %cst_16 = arith.constant dense<0.000000e+00> : vector<288x256xf32>
    %15 = tpu.matmul %12, %14, %cst_16 {dimension_numbers = #tpu.dot_dimension_numbers<[1], [0], [0], [1], [0, 0, 1, 1], [], []>} : vector<288x128xbf16>, vector<128x256xbf16>, vector<288x256xf32> -> vector<288x256xf32>
    %16 = arith.addf %10, %15 : vector<288x256xf32>
    %c0_17 = arith.constant 0 : index
    %c18 = arith.constant 18 : index
    %c0_18 = arith.constant 0 : index
    %17 = vector.load %arg1[%c0_17, %c18, %c0_18] : memref<1x328x128xbf16, #tpu.memory_space<vmem>>, vector<1x288x128xbf16>
    %18 = vector.shape_cast %17 : vector<1x288x128xbf16> to vector<288x128xbf16>
    %c3 = arith.constant 3 : index
    %c0_19 = arith.constant 0 : index
    %c0_20 = arith.constant 0 : index
    %19 = vector.load %arg2[%c3, %c0_19, %c0_20] : memref<9x128x256xbf16, #tpu.memory_space<vmem>>, vector<1x128x256xbf16>
    %20 = vector.shape_cast %19 : vector<1x128x256xbf16> to vector<128x256xbf16>
    %cst_21 = arith.constant dense<0.000000e+00> : vector<288x256xf32>
    %21 = tpu.matmul %18, %20, %cst_21 {dimension_numbers = #tpu.dot_dimension_numbers<[1], [0], [0], [1], [0, 0, 1, 1], [], []>} : vector<288x128xbf16>, vector<128x256xbf16>, vector<288x256xf32> -> vector<288x256xf32>
    %22 = arith.addf %16, %21 : vector<288x256xf32>
    %c0_22 = arith.constant 0 : index
    %c19 = arith.constant 19 : index
    %c0_23 = arith.constant 0 : index
    %23 = vector.load %arg1[%c0_22, %c19, %c0_23] : memref<1x328x128xbf16, #tpu.memory_space<vmem>>, vector<1x288x128xbf16>
    %24 = vector.shape_cast %23 : vector<1x288x128xbf16> to vector<288x128xbf16>
    %c4 = arith.constant 4 : index
    %c0_24 = arith.constant 0 : index
    %c0_25 = arith.constant 0 : index
    %25 = vector.load %arg2[%c4, %c0_24, %c0_25] : memref<9x128x256xbf16, #tpu.memory_space<vmem>>, vector<1x128x256xbf16>
    %26 = vector.shape_cast %25 : vector<1x128x256xbf16> to vector<128x256xbf16>
    %cst_26 = arith.constant dense<0.000000e+00> : vector<288x256xf32>
    %27 = tpu.matmul %24, %26, %cst_26 {dimension_numbers = #tpu.dot_dimension_numbers<[1], [0], [0], [1], [0, 0, 1, 1], [], []>} : vector<288x128xbf16>, vector<128x256xbf16>, vector<288x256xf32> -> vector<288x256xf32>
    %28 = arith.addf %22, %27 : vector<288x256xf32>
    %c0_27 = arith.constant 0 : index
    %c20 = arith.constant 20 : index
    %c0_28 = arith.constant 0 : index
    %29 = vector.load %arg1[%c0_27, %c20, %c0_28] : memref<1x328x128xbf16, #tpu.memory_space<vmem>>, vector<1x288x128xbf16>
    %30 = vector.shape_cast %29 : vector<1x288x128xbf16> to vector<288x128xbf16>
    %c5 = arith.constant 5 : index
    %c0_29 = arith.constant 0 : index
    %c0_30 = arith.constant 0 : index
    %31 = vector.load %arg2[%c5, %c0_29, %c0_30] : memref<9x128x256xbf16, #tpu.memory_space<vmem>>, vector<1x128x256xbf16>
    %32 = vector.shape_cast %31 : vector<1x128x256xbf16> to vector<128x256xbf16>
    %cst_31 = arith.constant dense<0.000000e+00> : vector<288x256xf32>
    %33 = tpu.matmul %30, %32, %cst_31 {dimension_numbers = #tpu.dot_dimension_numbers<[1], [0], [0], [1], [0, 0, 1, 1], [], []>} : vector<288x128xbf16>, vector<128x256xbf16>, vector<288x256xf32> -> vector<288x256xf32>
    %34 = arith.addf %28, %33 : vector<288x256xf32>
    %c0_32 = arith.constant 0 : index
    %c36 = arith.constant 36 : index
    %c0_33 = arith.constant 0 : index
    %35 = vector.load %arg1[%c0_32, %c36, %c0_33] : memref<1x328x128xbf16, #tpu.memory_space<vmem>>, vector<1x288x128xbf16>
    %36 = vector.shape_cast %35 : vector<1x288x128xbf16> to vector<288x128xbf16>
    %c6 = arith.constant 6 : index
    %c0_34 = arith.constant 0 : index
    %c0_35 = arith.constant 0 : index
    %37 = vector.load %arg2[%c6, %c0_34, %c0_35] : memref<9x128x256xbf16, #tpu.memory_space<vmem>>, vector<1x128x256xbf16>
    %38 = vector.shape_cast %37 : vector<1x128x256xbf16> to vector<128x256xbf16>
    %cst_36 = arith.constant dense<0.000000e+00> : vector<288x256xf32>
    %39 = tpu.matmul %36, %38, %cst_36 {dimension_numbers = #tpu.dot_dimension_numbers<[1], [0], [0], [1], [0, 0, 1, 1], [], []>} : vector<288x128xbf16>, vector<128x256xbf16>, vector<288x256xf32> -> vector<288x256xf32>
    %40 = arith.addf %34, %39 : vector<288x256xf32>
    %c0_37 = arith.constant 0 : index
    %c37 = arith.constant 37 : index
    %c0_38 = arith.constant 0 : index
    %41 = vector.load %arg1[%c0_37, %c37, %c0_38] : memref<1x328x128xbf16, #tpu.memory_space<vmem>>, vector<1x288x128xbf16>
    %42 = vector.shape_cast %41 : vector<1x288x128xbf16> to vector<288x128xbf16>
    %c7 = arith.constant 7 : index
    %c0_39 = arith.constant 0 : index
    %c0_40 = arith.constant 0 : index
    %43 = vector.load %arg2[%c7, %c0_39, %c0_40] : memref<9x128x256xbf16, #tpu.memory_space<vmem>>, vector<1x128x256xbf16>
    %44 = vector.shape_cast %43 : vector<1x128x256xbf16> to vector<128x256xbf16>
    %cst_41 = arith.constant dense<0.000000e+00> : vector<288x256xf32>
    %45 = tpu.matmul %42, %44, %cst_41 {dimension_numbers = #tpu.dot_dimension_numbers<[1], [0], [0], [1], [0, 0, 1, 1], [], []>} : vector<288x128xbf16>, vector<128x256xbf16>, vector<288x256xf32> -> vector<288x256xf32>
    %46 = arith.addf %40, %45 : vector<288x256xf32>
    %c0_42 = arith.constant 0 : index
    %c38 = arith.constant 38 : index
    %c0_43 = arith.constant 0 : index
    %47 = vector.load %arg1[%c0_42, %c38, %c0_43] : memref<1x328x128xbf16, #tpu.memory_space<vmem>>, vector<1x288x128xbf16>
    %48 = vector.shape_cast %47 : vector<1x288x128xbf16> to vector<288x128xbf16>
    %c8 = arith.constant 8 : index
    %c0_44 = arith.constant 0 : index
    %c0_45 = arith.constant 0 : index
    %49 = vector.load %arg2[%c8, %c0_44, %c0_45] : memref<9x128x256xbf16, #tpu.memory_space<vmem>>, vector<1x128x256xbf16>
    %50 = vector.shape_cast %49 : vector<1x128x256xbf16> to vector<128x256xbf16>
    %cst_46 = arith.constant dense<0.000000e+00> : vector<288x256xf32>
    %51 = tpu.matmul %48, %50, %cst_46 {dimension_numbers = #tpu.dot_dimension_numbers<[1], [0], [0], [1], [0, 0, 1, 1], [], []>} : vector<288x128xbf16>, vector<128x256xbf16>, vector<288x256xf32> -> vector<288x256xf32>
    %52 = arith.addf %46, %51 : vector<288x256xf32>
    %c0_47 = arith.constant 0 : index
    %c0_48 = arith.constant 0 : index
    %53 = vector.load %arg3[%c0_47, %c0_48] : memref<1x256xf32, #tpu.memory_space<vmem>>, vector<1x256xf32>
    %54 = vector.broadcast %53 : vector<1x256xf32> to vector<288x256xf32>
    %55 = arith.addf %52, %54 : vector<288x256xf32>
    %cst_49 = arith.constant 0.000000e+00 : f32
    %56 = vector.broadcast %cst_49 : f32 to vector<288x256xf32>
    %57 = arith.maximumf %55, %56 : vector<288x256xf32>
    %58 = arith.truncf %57 : vector<288x256xf32> to vector<288x256xbf16>
    %c0_50 = arith.constant 0 : index
    %c0_51 = arith.constant 0 : index
    %59 = vector.load %arg4[%c0_50, %c0_51] : memref<256x128xbf16, #tpu.memory_space<vmem>>, vector<256x128xbf16>
    %cst_52 = arith.constant dense<0.000000e+00> : vector<288x128xf32>
    %60 = tpu.matmul %58, %59, %cst_52 {dimension_numbers = #tpu.dot_dimension_numbers<[1], [0], [0], [1], [0, 0, 1, 1], [], []>} : vector<288x256xbf16>, vector<256x128xbf16>, vector<288x128xf32> -> vector<288x128xf32>
    %c0_53 = arith.constant 0 : index
    %c0_54 = arith.constant 0 : index
    %61 = vector.load %arg5[%c0_53, %c0_54] : memref<1x128xf32, #tpu.memory_space<vmem>>, vector<1x128xf32>
    %62 = vector.broadcast %61 : vector<1x128xf32> to vector<288x128xf32>
    %63 = arith.addf %60, %62 : vector<288x128xf32>
    %c0_55 = arith.constant 0 : index
    %c0_56 = arith.constant 0 : index
    %c0_57 = arith.constant 0 : index
    %64 = vector.load %arg6[%c0_55, %c0_56, %c0_57] : memref<1x288x128xf32, #tpu.memory_space<vmem>>, vector<1x288x128xf32>
    %65 = vector.shape_cast %64 : vector<1x288x128xf32> to vector<288x128xf32>
    %66 = vector.shape_cast %63 : vector<288x128xf32> to vector<1x288x128xf32>
    tpu.vector_store %arg6[%c0_55, %c0_56, %c0_57], %66 {strides = array<i32>} : memref<1x288x128xf32, #tpu.memory_space<vmem>>, vector<1x288x128xf32>,
    %cst_58 = arith.constant dense<0xFF800000> : vector<288xf32>
    %67 = vector.multi_reduction <maximumf>, %63, %cst_58 [1] : vector<288x128xf32> to vector<288xf32>
    %68 = vector.shape_cast %67 : vector<288xf32> to vector<288x1xf32>
    %69 = vector.broadcast %68 : vector<288x1xf32> to vector<288x128xf32>
    %70 = arith.subf %63, %69 : vector<288x128xf32>
    %71 = math.exp %70 : vector<288x128xf32>
    %cst_59 = arith.constant dense<0.000000e+00> : vector<288xf32>
    %72 = vector.multi_reduction <add>, %71, %cst_59 [1] : vector<288x128xf32> to vector<288xf32>
    %73 = vector.shape_cast %72 : vector<288xf32> to vector<288x1xf32>
    %74 = tpu.reciprocal %73 : vector<288x1xf32> -> vector<288x1xf32>
    %75 = vector.broadcast %74 : vector<288x1xf32> to vector<288x128xf32>
    %76 = arith.mulf %71, %75 : vector<288x128xf32>
    %77 = arith.truncf %76 : vector<288x128xf32> to vector<288x128xbf16>
    %c0_60 = arith.constant 0 : index
    %c0_61 = arith.constant 0 : index
    %c0_62 = arith.constant 0 : index
    %78 = vector.load %arg7[%c0_60, %c0_61, %c0_62] : memref<1x288x128xbf16, #tpu.memory_space<vmem>>, vector<1x288x128xbf16>
    %79 = vector.shape_cast %78 : vector<1x288x128xbf16> to vector<288x128xbf16>
    %80 = vector.shape_cast %77 : vector<288x128xbf16> to vector<1x288x128xbf16>
    tpu.vector_store %arg7[%c0_60, %c0_61, %c0_62], %80 {strides = array<i32>} : memref<1x288x128xbf16, #tpu.memory_space<vmem>>, vector<1x288x128xbf16>,
    return
  }
  func.func @transform_0(%arg0: i32) -> (i32, i32, i32) {
    %c0_i32 = arith.constant 0 : i32
    %c0_i32_0 = arith.constant 0 : i32
    %c0_i32_1 = arith.constant 0 : i32
    return %arg0, %c0_i32, %c0_i32_0 : i32, i32, i32
  }
  func.func @transform_1(%arg0: i32) -> (i32, i32, i32) {
    %c0_i32 = arith.constant 0 : i32
    %c0_i32_0 = arith.constant 0 : i32
    %c0_i32_1 = arith.constant 0 : i32
    %c0_i32_2 = arith.constant 0 : i32
    return %c0_i32, %c0_i32_0, %c0_i32_1 : i32, i32, i32
  }
  func.func @transform_2(%arg0: i32) -> (i32, i32) {
    %c0_i32 = arith.constant 0 : i32
    %c0_i32_0 = arith.constant 0 : i32
    %c0_i32_1 = arith.constant 0 : i32
    return %c0_i32, %c0_i32_0 : i32, i32
  }
  func.func @transform_3(%arg0: i32) -> (i32, i32) {
    %c0_i32 = arith.constant 0 : i32
    %c0_i32_0 = arith.constant 0 : i32
    %c0_i32_1 = arith.constant 0 : i32
    return %c0_i32, %c0_i32_0 : i32, i32
  }
  func.func @transform_4(%arg0: i32) -> (i32, i32) {
    %c0_i32 = arith.constant 0 : i32
    %c0_i32_0 = arith.constant 0 : i32
    %c0_i32_1 = arith.constant 0 : i32
    return %c0_i32, %c0_i32_0 : i32, i32
  }
  func.func @transform_5(%arg0: i32) -> (i32, i32, i32) {
    %c0_i32 = arith.constant 0 : i32
    %c0_i32_0 = arith.constant 0 : i32
    %c0_i32_1 = arith.constant 0 : i32
    return %arg0, %c0_i32, %c0_i32_0 : i32, i32, i32
  }
  func.func @transform_6(%arg0: i32) -> (i32, i32, i32) {
    %c0_i32 = arith.constant 0 : i32
    %c0_i32_0 = arith.constant 0 : i32
    %c0_i32_1 = arith.constant 0 : i32
    return %arg0, %c0_i32, %c0_i32_0 : i32, i32, i32
  }
}

</mosaic_0001>

<bundles_post_ra>
// kernel: detector_head_pallas.1
= control target key start
LH: loop header
LB: loop body
LE: loop exit
PB: predicated region body
PF: predicated region fallthrough
CT: control target
= control target key end

     0   :  { %s7586_s21 = smov 0   ;;  %s9527_s0 = inlined_call_operand.vmem [shape: bf16[2,328,128], index: 0, kind: input, shape index: {}]   ;;  %s9528_s1 = inlined_call_operand.vmem [shape: bf16[9,128,256], index: 1, kind: input, shape index: {}]   ;;  %s9529_s2 = inlined_call_operand.vmem [shape: f32[1,256], index: 2, kind: input, shape index: {}]   ;;  %s9530_s3 = inlined_call_operand.vmem [shape: bf16[256,128], index: 3, kind: input, shape index: {}]   ;;  %s9531_s4 = inlined_call_operand.vmem [shape: f32[1,128], index: 4, kind: input, shape index: {}]   ;;  %s9532_s5 = inlined_call_operand.vmem [shape: f32[2,288,128], index: 5, kind: output, shape index: {0}]   ;;  %s9533_s6 = inlined_call_operand.vmem [shape: bf16[2,288,128], index: 6, kind: output, shape index: {1}]  }
   0x1 LB: > { %s5942_s22 = sadd.s32 4294967295, %s7548_s21   ;;  %p5946_p0 = scmp.ge.s32.totalorder %s7548_s21, 1  ;;  %s7548_s21 = sphi %s7586_s21, %s17_s21  }
   0x2   : > { %p215_p1 = scmp.lt.s32.totalorder %s7548_s21, 3 }
   0x4   : > { %p216_p2 = pnand %p5946_p0, %p215_p1 }
   0x6   : > { %219 = sbr.rel (%p216_p2) target bundleno = 1514 (0x5ea), region = 40 }
   0xd   : > { %v7070_v0 = vld [vmem:[%s9528_s1 + $0x84] ss:$8 sps:$4 sm:$0xff]   ;;  %v7550_v2 = vmov 0   ;;  %v7074_v3 = vld [vmem:[%s9528_s1 + $0x80] ss:$8 sps:$4 sm:$0xff]   ;;  %p250_p3 = scmp.lt.s32.totalorder %s5942_s22, 1 }
   0xe   : > { %v7072_v1 = vld [vmem:[%s9528_s1 + $0x204] ss:$8 sps:$4 sm:$0xff]   ;;  %708 = vmatprep.mubr.bf16.mxu1 %v7550_v2  ;;  %2531 = vmatprep.mubr.bf16.mxu0 %v7550_v2  ;;  %v7075_v4 = vld [vmem:[%s9528_s1 + $0x200] ss:$8 sps:$4 sm:$0xff]   ;;  %v7076_v5 = vld [vmem:[%s9528_s1 + $0x94] ss:$8 sps:$4 sm:$0xff]  }
   0xf   : > { %676 = vmatprep.subr.bf16.mxu1 %v7070_v0  ;;  %2499 = vmatprep.subr.bf16.mxu0 %v7072_v1  ;;  %v7078_v6 = vld [vmem:[%s9528_s1 + $0x214] ss:$8 sps:$4 sm:$0xff]   ;;  %v7080_v7 = vld [vmem:[%s9528_s1 + $0x90] ss:$8 sps:$4 sm:$0xff]   ;;  %v7082_v9 = vld [vmem:[%s9528_s1 + $0xa4] ss:$8 sps:$4 sm:$0xff]  }
  0x10   : > { %677 = vmatpush1.bf16.msra.mxu1 %v7074_v3  ;;  %2500 = vmatpush1.bf16.msra.mxu0 %v7075_v4  ;;  %v7081_v8 = vld [vmem:[%s9528_s1 + $0x210] ss:$8 sps:$4 sm:$0xff]   ;;  %v7084_v10 = vld [vmem:[%s9528_s1 + $0x224] ss:$8 sps:$4 sm:$0xff]   ;;  %v7086_v11 = vld [vmem:[%s9528_s1 + $0xa0] ss:$8 sps:$4 sm:$0xff]  }
  0x11   : > { %678 = vmatprep.subr.bf16.mxu1 %v7076_v5  ;;  %2501 = vmatprep.subr.bf16.mxu0 %v7078_v6  ;;  %v7087_v12 = vld [vmem:[%s9528_s1 + $0x220] ss:$8 sps:$4 sm:$0xff]   ;;  %v7088_v13 = vld [vmem:[%s9528_s1 + $0xb4] ss:$8 sps:$4 sm:$0xff]   ;;  %s9587_s22 = smov (!%p250_p3, %s5942_s22), 1  ;;  %vm2805_vm2 = vcmask 1045504  }
  0x12   : > { %v7090_v14 = vld [vmem:[%s9528_s1 + $0x234] ss:$8 sps:$4 sm:$0xff]   ;;  %v7092_v15 = vld [vmem:[%s9528_s1 + $0xb0] ss:$8 sps:$4 sm:$0xff]   ;;  %v7094_v17 = vld [vmem:[%s9528_s1 + $0xc4] ss:$8 sps:$4 sm:$0xff]  }
  0x13   : > { %v7093_v16 = vld [vmem:[%s9528_s1 + $0x230] ss:$8 sps:$4 sm:$0xff]   ;;  %v7096_v18 = vld [vmem:[%s9528_s1 + $0x244] ss:$8 sps:$4 sm:$0xff]   ;;  %s7058_s13 = smul.u32 164, %s9587_s22  ;;  %vm1221_vm3 = vcmask 1046528  }
  0x14   : > { %679 = vmatpush1.bf16.msra.mxu1 %v7080_v7  ;;  %2502 = vmatpush1.bf16.msra.mxu0 %v7081_v8  ;;  %v7098_v19 = vld [vmem:[%s9528_s1 + $0xc0] ss:$8 sps:$4 sm:$0xff]   ;;  %v7100_v21 = vld [vmem:[%s9528_s1 + $0xd4] ss:$8 sps:$4 sm:$0xff]   ;;  %v7104_v23 = vld [vmem:[%s9528_s1 + $0xd0] ss:$8 sps:$4 sm:$0xff]  }
  0x15   : > { %680 = vmatprep.subr.bf16.mxu1 %v7082_v9  ;;  %2503 = vmatprep.subr.bf16.mxu0 %v7084_v10  ;;  %v7099_v20 = vld [vmem:[%s9528_s1 + $0x240] ss:$8 sps:$4 sm:$0xff]   ;;  %v7102_v22 = vld [vmem:[%s9528_s1 + $0x254] ss:$8 sps:$4 sm:$0xff]   ;;  %s7672_s26 = scalar_lea.vmem %s9527_s0, %s7058_s13  ;;  %v7105_v24 = vld [vmem:[%s9528_s1 + $0x250] ss:$8 sps:$4 sm:$0xff]  }
  0x16   : > { %v7106_v25 = vld [vmem:[%s9528_s1 + $0xe4] ss:$8 sps:$4 sm:$0xff]   ;;  %v266_v27 = vld [vmem:[%s7672_s26] sm:$0xf]  ;;  %v7112_v33 = vld [vmem:[%s9528_s1 + $0xf4] ss:$8 sps:$4 sm:$0xff]  }
  0x17   : > { %v7108_v26 = vld [vmem:[%s9528_s1 + $0x264] ss:$8 sps:$4 sm:$0xff]   ;;  %v7110_v29 = vld [vmem:[%s9528_s1 + $0xe0] ss:$8 sps:$4 sm:$0xff]   ;;  %v7121_v40 = vld [vmem:[%s7672_s26 + $0x10] sm:$0xff]   ;;  %vm4389_vm5 = vcmask 1044480  }
  0x18   : > { %681 = vmatpush1.bf16.msra.mxu1 %v7086_v11  ;;  %2504 = vmatpush1.bf16.msra.mxu0 %v7087_v12  ;;  %v267_v28 = vld [vmem:[%s7672_s26 + $0x4] sm:$0xf]  ;;  %v7111_v30 = vld [vmem:[%s9528_s1 + $0x260] ss:$8 sps:$4 sm:$0xff]   ;;  %v1643_v35 = vld [vmem:[%s7672_s26 + $0xc] sm:$0xf] }
  0x19   : > { %682 = vmatprep.subr.bf16.mxu1 %v7088_v13  ;;  %2505 = vmatprep.subr.bf16.mxu0 %v7090_v14  ;;  %v7694_v31 = vcombine.low %v266_v27, %v267_v28  ;;  %v7119_v32 = vld [vmem:[%s7672_s26 + $0x8] sm:$0xff]   ;;  %v7114_v41 = vld [vmem:[%s9528_s1 + $0x274] ss:$8 sps:$4 sm:$0xff]   ;;  %vm429_vm0 = vsmask.f32 7424  ;;  %v2240_v48 = vshrl.u32 %v7121_v40, 16 }
  0x1a   : > { %v1642_v34 = vld [vmem:[%s7672_s26 + $0x8] sm:$0xe]  ;;  %v438_v38 = vshll.u32 %v7119_v32, 16  ;;  %v7116_v42 = vld [vmem:[%s9528_s1 + $0xf0] ss:$8 sps:$4 sm:$0xff]   ;;  %v2243_v49 = vshll.u32 %v7121_v40, 16 }
  0x1b   : > { %v431_v36 = vshrl.u32 %v7694_v31, 16  ;;  %v433_v37 = vshll.u32 %v7694_v31, 16  ;;  %v7704_v39 = vcombine.low %v1642_v34, %v1643_v35  ;;  %v7117_v43 = vld [vmem:[%s9528_s1 + $0x270] ss:$8 sps:$4 sm:$0xff]   ;;  %v7124_v50 = vld [vmem:[%s9528_s1 + $0x284] ss:$8 sps:$4 sm:$0xff]  }
  0x1c   : > { %683 = vmatpush1.bf16.msra.mxu1 %v7092_v15  ;;  %2506 = vmatpush1.bf16.msra.mxu0 %v7093_v16  ;;  %v440_v45 = vrot.slane %v438_v38, 1  ;;  %v7125_v54 = vld [vmem:[%s7672_s26 + $0x10] sm:$0xff]   ;;  %v7126_v55 = vld [vmem:[%s7672_s26 + $0x18] sm:$0xff]   ;;  %v2242_v56 = vrot.slane %v2240_v48, 1  ;;  %v2245_v57 = vrot.slane %v2243_v49, 2  ;;  %v7128_v63 = vld [vmem:[%s7672_s26 + $0x20] sm:$0xff]  }
  0x1d   : > { %684 = vmatprep.subr.bf16.mxu1 %v7094_v17  ;;  %2507 = vmatprep.subr.bf16.mxu0 %v7096_v18  ;;  %v435_v44 = vrot.slane %v433_v37, 1  ;;  %v2232_v46 = vshrl.u32 %v7704_v39, 16  ;;  %v2235_v47 = vshll.u32 %v7704_v39, 16  ;;  %vm2230_vm1 = vsmask.f32 6400  ;;  %v7127_v9 = vld [vmem:[%s7672_s26 + $0x18] sm:$0xff]  }
  0x1e   : > { %v446_v59 = vshll.u32 %v7125_v54, 16  ;;  %v2249_v60 = vshrl.u32 %v7126_v55, 16  ;;  %v2246_v61 = vor.u32 %v2245_v57, %v2242_v56  ;;  %v2252_v62 = vshll.u32 %v7126_v55, 16  ;;  %v7122_v1 = vld [vmem:[%s9528_s1 + $0x280] ss:$8 sps:$4 sm:$0xff]   ;;  %v7135_v40 = vld [vmem:[%s7672_s26 + $0x30] sm:$0xff]  }
  0x1f   : > { %v436_v51 = vor.u32 %v435_v44, %v431_v36  ;;  %v2234_v52 = vrot.slane %v2232_v46, 1  ;;  %v2237_v53 = vrot.slane %v2235_v47, 2  ;;  %v442_v3 = vshrl.u32 %v7119_v32, 16  ;;  %v7131_v7 = vld [vmem:[%s9528_s1 + $0x294] ss:$8 sps:$4 sm:$0xff]   ;;  %v7132_v27 = vld [vmem:[%s7672_s26 + $0x20] sm:$0xff]  }
  0x20   : > { %685 = vmatpush1.bf16.msra.mxu1 %v7098_v19  ;;  %2508 = vmatpush1.bf16.msra.mxu0 %v7099_v20  ;;  %v2251_v4 = vrot.slane %v2249_v60, 1  ;;  %v2254_v6 = vrot.slane %v2252_v62, 2  ;;  %v448_v8 = vrot.slane %v446_v59, 1  ;;  %v2258_v10 = vshrl.u32 %v7128_v63, 16  ;;  %v7129_v12 = vld [vmem:[%s9528_s1 + $0x290] ss:$8 sps:$4 sm:$0xff]  }
  0x21   : > { %686 = vmatprep.subr.bf16.mxu1 %v7100_v21  ;;  %2509 = vmatprep.subr.bf16.mxu0 %v7102_v22  ;;  %v2238_v58 = vor.u32 %v2237_v53, %v2234_v52  ;;  %v441_v0 = vsel %vm429_vm0, %v436_v51, %v440_v45  ;;  %v2261_v11 = vshll.u32 %v7128_v63, 16  ;;  %v444_v13 = vor.u32 %v442_v3, %v440_v45  ;;  %v7138_v17 = vld [vmem:[%s9528_s1 + $0x2a4] ss:$8 sps:$4 sm:$0xff]   ;;  %v7145_v34 = vld [vmem:[%s9528_s1 + $0x2b4] ss:$8 sps:$4 sm:$0xff]   ;;  %s7059_s30 = smul.u32 288, %s9587_s22 }
  0x22   : > { %v2255_v14 = vor.u32 %v2254_v6, %v2251_v4  ;;  %v450_v15 = vshrl.u32 %v7125_v54, 16  ;;  %v454_v16 = vshll.u32 %v7127_v9, 16  ;;  %v2260_v20 = vrot.slane %v2258_v10, 1  ;;  %v7133_v22 = vld [vmem:[%s7672_s26 + $0x28] sm:$0xff]   ;;  %v7140_v53 = vld [vmem:[%s7672_s26 + $0x38] sm:$0xff]   ;;  %s7060_s12 = smul.u32 144, %s9587_s22 }
  0x23   : > { %v2247_v5 = vsel %vm2230_vm1, %v2238_v58, %v2246_v61  ;;  %v449_v18 = vsel %vm429_vm0, %v444_v13, %v448_v8  ;;  %v2263_v21 = vrot.slane %v2261_v11, 2  ;;  %v2267_v28 = vshrl.u32 %v7133_v22, 16  ;;  %v7154_v54 = vld [vmem:[%s9528_s1 + $0x2c4] ss:$8 sps:$4 sm:$0xff]   ;;  %v7152_v55 = vld [vmem:[%s9528_s1 + $0x2c0] ss:$8 sps:$4 sm:$0xff]   ;;  %s9102_s11 = scalar_lea.vmem %s9532_s5, %s7059_s30 }
  0x24   : > { %687 = vmatpush1.bf16.msra.mxu1 %v7104_v23  ;;  %2510 = vmatpush1.bf16.msra.mxu0 %v7105_v24  ;;  %v2256_v19 = vsel %vm2230_vm1, %v2246_v61, %v2255_v14  ;;  %v7136_v23 = vld [vmem:[%s9528_s1 + $0x2a0] ss:$8 sps:$4 sm:$0xff]   ;;  %v452_v24 = vor.u32 %v450_v15, %v448_v8  ;;  %v462_v36 = vshll.u32 %v7132_v27, 16  ;;  %v2276_v45 = vshrl.u32 %v7135_v40, 16  ;;  %v7139_v58 = vld [vmem:[%s7672_s26 + $0x30] sm:$0xff]   ;;  %s9470_s15 = scalar_lea.vmem %s9533_s6, %s7060_s12 }
  0x25   : > { %688 = vmatprep.subr.bf16.mxu1 %v7106_v25  ;;  %2511 = vmatprep.subr.bf16.mxu0 %v7108_v26  ;;  %v456_v25 = vrot.slane %v454_v16, 1  ;;  %v2264_v26 = vor.u32 %v2263_v21, %v2260_v20  ;;  %v2269_v37 = vrot.slane %v2267_v28, 1  ;;  %v2279_v46 = vshll.u32 %v7135_v40, 16  ;;  %v7159_v62 = vld [vmem:[%s9528_s1 + $0x2d0] ss:$8 sps:$4 sm:$0xff]  }
  0x26   : > { %v466_v47 = vshrl.u32 %v7132_v27, 16  ;;  %v2278_v51 = vrot.slane %v2276_v45, 1  ;;  %v2285_v60 = vshrl.u32 %v7140_v53, 16  ;;  %v2288_v61 = vshll.u32 %v7140_v53, 16  ;;  %v7161_v63 = vld [vmem:[%s9528_s1 + $0x2d4] ss:$8 sps:$4 sm:$0xff]  }
  0x27   : > { %v457_v32 = vsel %vm429_vm0, %v452_v24, %v456_v25  ;;  %v2265_v35 = vsel %vm2230_vm1, %v2255_v14, %v2264_v26  ;;  %v2281_v52 = vrot.slane %v2279_v46, 2  ;;  %v478_v4 = vshll.u32 %v7139_v58, 16  ;;  %v7166_v14 = vld [vmem:[%s9528_s1 + $0x2e0] ss:$8 sps:$4 sm:$0xff]   ;;  %v7168_v15 = vld [vmem:[%s9528_s1 + $0x2e4] ss:$8 sps:$4 sm:$0xff]  }
  0x28   : > { %689 = vmatpush1.bf16.msra.mxu1 %v7110_v29  ;;  %2512 = vmatpush1.bf16.msra.mxu0 %v7111_v30  ;;  %v2270_v29 = vshll.u32 %v7133_v22, 16  ;;  %v7143_v30 = vld [vmem:[%s9528_s1 + $0x2b0] ss:$8 sps:$4 sm:$0xff]   ;;  %v2290_v6 = vrot.slane %v2288_v61, 2  ;;  %v482_v16 = vshrl.u32 %v7139_v58, 16  ;;  %v7147_v22 = vld [vmem:[%s7672_s26 + $0x48] sm:$0xff]  }
  0x29   : > { %690 = vmatprep.subr.bf16.mxu1 %v7112_v33  ;;  %2513 = vmatprep.subr.bf16.mxu0 %v7114_v41  ;;  %v458_v33 = vshrl.u32 %v7127_v9, 16  ;;  %v2282_v59 = vor.u32 %v2281_v52, %v2278_v51  ;;  %v7141_v9 = vld [vmem:[%s7672_s26 + $0x38] sm:$0xff]   ;;  %v480_v10 = vrot.slane %v478_v4, 1  ;;  %v7170_v24 = vld [vmem:[%s9528_s1] ss:$8 sps:$4 sm:$0xff]  }
  0x2a   : > { %v2272_v38 = vrot.slane %v2270_v29, 2  ;;  %v7176_v27 = vld [vmem:[%s9528_s1 + $0x14] ss:$8 sps:$4 sm:$0xff]   ;;  %v7185_v46 = vld [vmem:[%s9528_s1 + $0x2f0] ss:$8 sps:$4 sm:$0xff]  }
  0x2b   : > { %v460_v41 = vor.u32 %v458_v33, %v456_v25  ;;  %v484_v25 = vor.u32 %v482_v16, %v480_v10  ;;  %v7174_v33 = vld [vmem:[%s9528_s1 + $0x10] ss:$8 sps:$4 sm:$0xff]   ;;  %v7187_v45 = vld [vmem:[%s9528_s1 + $0x2f4] ss:$8 sps:$4 sm:$0xff]   ;;  %vm3814_vm4 = vsmask.f32 5376 }
  0x2c   : > { %691 = vmatpush1.bf16.msra.mxu1 %v7116_v42  ;;  %2514 = vmatpush1.bf16.msra.mxu0 %v7117_v43  ;;  %v7134_v42 = vld [vmem:[%s7672_s26 + $0x28] sm:$0xff]   ;;  %v464_v43 = vrot.slane %v462_v36, 1  ;;  %v2273_v44 = vor.u32 %v2272_v38, %v2269_v37  ;;  %v7182_v53 = vld [vmem:[%s9528_s1 + $0x30] ss:$8 sps:$4 sm:$0xff]  }
  0x2d   : > { %2941 = vmatprep.subr.bf16.mxu0 %v7124_v50  ;;  %v470_v48 = vshll.u32 %v7134_v42, 16  ;;  %v7847_v61 = vld [vmem:[%s7672_s26 + $0x58] sm:$0xff]  }
  0x2e   : > { %v465_v49 = vsel %vm429_vm0, %v460_v41, %v464_v43  ;;  %v2274_v50 = vsel %vm2230_vm1, %v2264_v26, %v2273_v44  ;;  %v468_v56 = vor.u32 %v466_v47, %v464_v43  ;;  %v2283_v3 = vsel %vm2230_vm1, %v2273_v44, %v2282_v59  ;;  %v7146_v26 = vld [vmem:[%s7672_s26 + $0x40] sm:$0xff]   ;;  %v7184_v44 = vld [vmem:[%s9528_s1 + $0x34] ss:$8 sps:$4 sm:$0xff]  }
  0x2f   : > { %709 = vmatmul.mubr.bf16.vlgmr.msra.gmra.mrb[0].mxu1 %v441_v0  ;;  %2532 = vmatmul.mubr.bf16.vlgmr.msra.gmra.mrb[0].mxu0 %v2247_v5  ;;  %v472_v57 = vrot.slane %v470_v48, 1  ;;  %v2287_v5 = vrot.slane %v2285_v60, 1  ;;  %v494_v36 = vshll.u32 %v7146_v26, 16  ;;  %v7178_v43 = vld [vmem:[%s9528_s1 + $0x20] ss:$8 sps:$4 sm:$0xff]  }
  0x30   : > { %2942 = vmatpush1.bf16.msra.mxu0 %v7122_v1  ;;  %718 = vmatprep.mubr.bf16.mxu1 %v7550_v2  ;;  %v474_v1 = vshrl.u32 %v7134_v42, 16  ;;  %v7816_v42 = vld [vmem:[%s7672_s26 + $0x50] sm:$0xff]  }
  0x31   : > { %2541 = vmatprep.mubr.bf16.mxu0 %v7550_v2  ;;  %2943 = vmatprep.subr.bf16.mxu0 %v7131_v7  ;;  %v473_v0 = vsel %vm429_vm0, %v468_v56, %v472_v57  ;;  %v7142_v7 = vld [vmem:[%s7672_s26 + $0x40] sm:$0xff]   ;;  %v2291_v11 = vor.u32 %v2290_v6, %v2287_v5  ;;  %v496_v48 = vrot.slane %v494_v36, 1  ;;  %v2312_v51 = vshrl.u32 %v7816_v42, 16 }
  0x32   : > { %v476_v8 = vor.u32 %v474_v1, %v472_v57  ;;  %v2297_v13 = vshll.u32 %v7142_v7, 16  ;;  %v2315_v52 = vshll.u32 %v7816_v42, 16  ;;  %v498_v56 = vshrl.u32 %v7146_v26, 16  ;;  %v7856_v1 = vld [vmem:[%s7672_s26 + $0x50] sm:$0xff]   ;;  %v7895_v26 = vld [vmem:[%s7672_s26 + $0x60] sm:$0xff]  }
  0x33   : > { %v2321_v5 = vshrl.u32 %v7847_v61, 16  ;;  %v2324_v6 = vshll.u32 %v7847_v61, 16  ;;  %v526_v36 = vshll.u32 %v7895_v26, 16 }
  0x34   : > { %2944 = vmatpush1.bf16.msra.mxu0 %v7129_v12  ;;  %v2294_v12 = vshrl.u32 %v7142_v7, 16  ;;  %v2299_v21 = vrot.slane %v2297_v13, 2  ;;  %v2317_v60 = vrot.slane %v2315_v52, 2  ;;  %v7193_v7 = vld [vmem:[%s9528_s1 + $0x50] ss:$8 sps:$4 sm:$0xff]  }
  0x35   : > { %2945 = vmatprep.subr.bf16.mxu0 %v7138_v17  ;;  %v486_v17 = vshll.u32 %v7141_v9, 16  ;;  %v7197_v13 = vld [vmem:[%s9528_s1 + $0x60] ss:$8 sps:$4 sm:$0xff]   ;;  %v2323_v16 = vrot.slane %v2321_v5, 1 }
  0x36   : > { %v2296_v20 = vrot.slane %v2294_v12, 1  ;;  %v510_v12 = vshll.u32 %v7856_v1, 16 }
  0x37   : > { %719 = vmatmul.mubr.bf16.gmra.mrb[4].mxu1 %v449_v18  ;;  %2542 = vmatmul.mubr.bf16.gmra.mrb[4].mxu0 %v2256_v19  ;;  %v481_v18 = vsel %vm429_vm0, %v476_v8, %v480_v10  ;;  %v2292_v19 = vsel %vm2230_vm1, %v2282_v59, %v2291_v11  ;;  %v488_v28 = vrot.slane %v486_v17, 1  ;;  %v2314_v59 = vrot.slane %v2312_v51, 1  ;;  %v7207_v8 = vld [vmem:[%s9528_s1 + $0x304] ss:$8 sps:$4 sm:$0xff]  }
  0x38   : > { %728 = vmatprep.mubr.bf16.mxu1 %v7550_v2  ;;  %2551 = vmatprep.mubr.bf16.mxu0 %v7550_v2  ;;  %v2300_v29 = vor.u32 %v2299_v21, %v2296_v20  ;;  %v7199_v10 = vld [vmem:[%s9528_s1 + $0x64] ss:$8 sps:$4 sm:$0xff]   ;;  %v2326_v17 = vrot.slane %v2324_v6, 2  ;;  %v7201_v21 = vld [vmem:[%s9528_s1 + $0x70] ss:$8 sps:$4 sm:$0xff]  }
  0x39   : > { %2946 = vmatpush1.bf16.msra.mxu0 %v7136_v23  ;;  %v7172_v23 = vld [vmem:[%s9528_s1 + $0x4] ss:$8 sps:$4 sm:$0xff]   ;;  %v489_v37 = vsel %vm429_vm0, %v484_v25, %v488_v28  ;;  %v2318_v4 = vor.u32 %v2317_v60, %v2314_v59 }
  0x3a   : > { %2947 = vmatprep.subr.bf16.mxu0 %v7145_v34  ;;  %987 = vmatprep.subr.bf16.mxu1 %v7172_v23  ;;  %v7180_v34 = vld [vmem:[%s9528_s1 + $0x24] ss:$8 sps:$4 sm:$0xff]   ;;  %v2301_v38 = vsel %vm2230_vm1, %v2291_v11, %v2300_v29  ;;  %v2327_v23 = vor.u32 %v2326_v17, %v2323_v16 }
  0x3b   : > { %988 = vmatpush1.bf16.msra.mxu1 %v7170_v24  ;;  %v7916_v51 = vld [vmem:[%s7672_s26 + $0x68] sm:$0xff]  }
  0x3c   : > { %989 = vmatprep.subr.bf16.mxu1 %v7176_v27 }
  0x3d   : > { %2948 = vmatpush1.bf16.msra.mxu0 %v7143_v30  ;;  %v2303_v30 = vshrl.u32 %v7147_v22, 16 }
  0x3e   : > { %2949 = vmatprep.subr.bf16.mxu0 %v7154_v54  ;;  %v7191_v54 = vld [vmem:[%s9528_s1 + $0x44] ss:$8 sps:$4 sm:$0xff]  }
  0x3f   : > { %729 = vmatmul.mubr.bf16.gmra.mrb[8].mxu1 %v457_v32  ;;  %2552 = vmatmul.mubr.bf16.gmra.mrb[8].mxu0 %v2265_v35  ;;  %v2306_v32 = vshll.u32 %v7147_v22, 16  ;;  %v490_v35 = vshrl.u32 %v7141_v9, 16  ;;  %v2305_v40 = vrot.slane %v2303_v30, 1  ;;  %v7869_v9 = vld [vmem:[%s7672_s26 + $0x60] sm:$0xff]   ;;  %v512_v22 = vrot.slane %v510_v12, 1  ;;  %v7942_v12 = vld [vmem:[%s7672_s26 + $0x78] sm:$0xff]  }
  0x40   : > { %738 = vmatprep.mubr.bf16.mxu1 %v7550_v2  ;;  %2561 = vmatprep.mubr.bf16.mxu0 %v7550_v2  ;;  %v2330_v24 = vshrl.u32 %v7869_v9, 16  ;;  %v2333_v25 = vshll.u32 %v7869_v9, 16 }
  0x41   : > { %2950 = vmatpush1.bf16.msra.mxu0 %v7152_v55  ;;  %v2308_v41 = vrot.slane %v2306_v32, 2  ;;  %990 = vmatpush1.bf16.msra.mxu1 %v7174_v33  ;;  %v492_v47 = vor.u32 %v490_v35, %v488_v28  ;;  %v7899_v28 = vld [vmem:[%s7672_s26 + $0x68] sm:$0xff]   ;;  %v2328_v32 = vsel %vm2230_vm1, %v2318_v4, %v2327_v23 }
  0x42   : > { %2951 = vmatprep.subr.bf16.mxu0 %v7161_v63  ;;  %991 = vmatprep.subr.bf16.mxu1 %v7180_v34  ;;  %v7195_v63 = vld [vmem:[%s9528_s1 + $0x54] ss:$8 sps:$4 sm:$0xff]   ;;  %v2332_v33 = vrot.slane %v2330_v24, 1  ;;  %v2335_v34 = vrot.slane %v2333_v25, 2  ;;  %v550_v25 = vshll.u32 %v7942_v12, 16 }
  0x43   : > { %v497_v55 = vsel %vm429_vm0, %v492_v47, %v496_v48 }
  0x45   : > { %2952 = vmatpush1.bf16.msra.mxu0 %v7159_v62  ;;  %992 = vmatpush1.bf16.msra.mxu1 %v7178_v43  ;;  %v7189_v62 = vld [vmem:[%s9528_s1 + $0x40] ss:$8 sps:$4 sm:$0xff]   ;;  %v7910_v43 = vld [vmem:[%s7672_s26 + $0x70] sm:$0xff]  }
  0x46   : > { %2953 = vmatprep.subr.bf16.mxu0 %v7168_v15  ;;  %993 = vmatprep.subr.bf16.mxu1 %v7184_v44  ;;  %v2348_v52 = vshrl.u32 %v7910_v43, 16 }
  0x47   : > { %739 = vmatmul.mubr.bf16.gmra.mrb[12].mxu1 %v465_v49  ;;  %2562 = vmatmul.mubr.bf16.gmra.mrb[12].mxu0 %v2274_v50  ;;  %v7831_v49 = vld [vmem:[%s7672_s26 + $0x48] sm:$0xff]   ;;  %v2309_v50 = vor.u32 %v2308_v41, %v2305_v40  ;;  %v2339_v40 = vshrl.u32 %v7899_v28, 16  ;;  %v2342_v41 = vshll.u32 %v7899_v28, 16 }
  0x48   : > { %748 = vmatprep.mubr.bf16.mxu1 %v7550_v2  ;;  %2571 = vmatprep.mubr.bf16.mxu0 %v7550_v2  ;;  %v502_v58 = vshll.u32 %v7831_v49, 16  ;;  %v506_v11 = vshrl.u32 %v7831_v49, 16  ;;  %v2350_v59 = vrot.slane %v2348_v52, 1  ;;  %v7972_v52 = vld [vmem:[%s7672_s26 + $0x88] sm:$0xff]  }
  0x49   : > { %2954 = vmatpush1.bf16.msra.mxu0 %v7166_v14  ;;  %v2310_v57 = vsel %vm2230_vm1, %v2300_v29, %v2309_v50  ;;  %994 = vmatpush1.bf16.msra.mxu1 %v7182_v53  ;;  %v2319_v15 = vsel %vm2230_vm1, %v2309_v50, %v2318_v4  ;;  %v514_v29 = vshrl.u32 %v7856_v1, 16  ;;  %v2344_v50 = vrot.slane %v2342_v41, 2 }
  0x4a   : > { %2955 = vmatprep.subr.bf16.mxu0 %v7187_v45  ;;  %995 = vmatprep.subr.bf16.mxu1 %v7191_v54  ;;  %v528_v45 = vrot.slane %v526_v36, 1  ;;  %v2351_v53 = vshll.u32 %v7910_v43, 16  ;;  %v552_v36 = vrot.slane %v550_v25, 1 }
  0x4d   : > { %2956 = vmatpush1.bf16.msra.mxu0 %v7185_v46  ;;  %996 = vmatpush1.bf16.msra.mxu1 %v7189_v62 }
  0x4e   : > { %997 = vmatprep.subr.bf16.mxu1 %v7195_v63  ;;  %3508 = vmatprep.subr.bf16.mxu0 %v7207_v8  ;;  %v2353_v63 = vrot.slane %v2351_v53, 2  ;;  %v7937_v8 = vld [vmem:[%s7672_s26 + $0x80] sm:$0xff]  }
  0x4f   : > { %749 = vmatmul.mubr.bf16.gmra.mrb[16].mxu1 %v473_v0  ;;  %2572 = vmatmul.mubr.bf16.gmra.mrb[16].mxu0 %v2283_v3  ;;  %v500_v0 = vor.u32 %v498_v56, %v496_v48  ;;  %v504_v3 = vrot.slane %v502_v58, 1  ;;  %v2341_v48 = vrot.slane %v2339_v40, 1  ;;  %v7923_v56 = vld [vmem:[%s7672_s26 + $0x78] sm:$0xff]   ;;  %v534_v58 = vshll.u32 %v7916_v51, 16 }
  0x50   : > { %758 = vmatprep.mubr.bf16.mxu1 %v7550_v2  ;;  %2581 = vmatprep.mubr.bf16.mxu0 %v7550_v2  ;;  %v2354_v5 = vor.u32 %v2353_v63, %v2350_v59  ;;  %v2357_v6 = vshrl.u32 %v7923_v56, 16  ;;  %v2369_v24 = vshll.u32 %v7937_v8, 16  ;;  %v566_v59 = vshll.u32 %v7972_v52, 16 }
  0x51   : > { %v505_v14 = vsel %vm429_vm0, %v500_v0, %v504_v3  ;;  %998 = vmatpush1.bf16.msra.mxu1 %v7193_v7  ;;  %v508_v20 = vor.u32 %v506_v11, %v504_v3  ;;  %v7930_v3 = vld [vmem:[%s7672_s26 + $0x70] sm:$0xff]   ;;  %v536_v4 = vrot.slane %v534_v58, 1  ;;  %v2360_v7 = vshll.u32 %v7923_v56, 16 }
  0x52   : > { %999 = vmatprep.subr.bf16.mxu1 %v7199_v10  ;;  %v538_v10 = vshrl.u32 %v7916_v51, 16  ;;  %v542_v11 = vshll.u32 %v7930_v3, 16  ;;  %v2359_v16 = vrot.slane %v2357_v6, 1  ;;  %v568_v6 = vrot.slane %v566_v59, 1  ;;  %v7232_v59 = vld [vmem:[%s9528_s1 + $0x120] ss:$8 sps:$4 sm:$0xff]  }
  0x53   : > { %v513_v30 = vsel %vm429_vm0, %v508_v20, %v512_v22  ;;  %v2362_v17 = vrot.slane %v2360_v7, 2 }
  0x54   : > { %v544_v20 = vrot.slane %v542_v11, 1 }
  0x55   : > { %1000 = vmatpush1.bf16.msra.mxu1 %v7197_v13  ;;  %v7945_v13 = vld [vmem:[%s7672_s26 + $0x88] sm:$0xff]  }
  0x56   : > { %v2378_v40 = vshll.u32 %v7945_v13, 16 }
  0x57   : > { %759 = vmatmul.mubr.bf16.gmra.mrb[20].mxu1 %v481_v18  ;;  %2582 = vmatmul.mubr.bf16.gmra.mrb[20].mxu0 %v2292_v19  ;;  %v7882_v18 = vld [vmem:[%s7672_s26 + $0x58] sm:$0xff]  }
  0x58   : > { %768 = vmatprep.mubr.bf16.mxu1 %v7550_v2  ;;  %2591 = vmatprep.mubr.bf16.mxu0 %v7550_v2  ;;  %v7203_v19 = vld [vmem:[%s9528_s1 + $0x74] ss:$8 sps:$4 sm:$0xff]   ;;  %v518_v27 = vshll.u32 %v7882_v18, 16  ;;  %v522_v44 = vshrl.u32 %v7882_v18, 16 }
  0x59   : > { %1001 = vmatprep.subr.bf16.mxu1 %v7203_v19  ;;  %v540_v19 = vor.u32 %v538_v10, %v536_v4  ;;  %v7988_v10 = vld [vmem:[%s7672_s26 + $0x90] ss:$0 sps:$4 sm:$0x11]  }
  0x5a   : > { %1002 = vmatpush1.bf16.msra.mxu1 %v7201_v21  ;;  %v520_v35 = vrot.slane %v518_v27, 1  ;;  %v2363_v21 = vor.u32 %v2362_v17, %v2359_v16  ;;  %v7956_v27 = vld [vmem:[%s7672_s26 + $0x80] sm:$0xff]   ;;  %v570_v16 = vshrl.u32 %v7972_v52, 16 }
  0x5b   : > { %v562_v58 = vshrl.u32 %v7956_v27, 16 }
  0x5c   : > { %v524_v54 = vor.u32 %v522_v44, %v520_v35 }
  0x5e   : > { %v529_v60 = vsel %vm429_vm0, %v524_v54, %v528_v45 }
  0x5f   : > { %769 = vmatmul.mubr.bf16.gmra.mrb[24].mxu1 %v489_v37  ;;  %2592 = vmatmul.mubr.bf16.gmra.mrb[24].mxu0 %v2301_v38  ;;  %v516_v37 = vor.u32 %v514_v29, %v512_v22  ;;  %v2336_v38 = vor.u32 %v2335_v34, %v2332_v33  ;;  %v546_v22 = vshrl.u32 %v7930_v3, 16  ;;  %v554_v29 = vshrl.u32 %v7942_v12, 16 }
  0x60   : > { %778 = vmatprep.mubr.bf16.mxu1 %v7550_v2  ;;  %2601 = vmatprep.mubr.bf16.mxu0 %v7550_v2  ;;  %v2364_v33 = vsel %vm2230_vm1, %v2354_v5, %v2363_v21 }
  0x61   : > { %v521_v46 = vsel %vm429_vm0, %v516_v37, %v520_v35  ;;  %v2337_v47 = vsel %vm2230_vm1, %v2327_v23, %v2336_v38  ;;  %v2366_v23 = vshrl.u32 %v7937_v8, 16  ;;  %v2371_v35 = vrot.slane %v2369_v24, 2 }
  0x62   : > { %v558_v37 = vshll.u32 %v7956_v27, 16  ;;  %v548_v41 = vor.u32 %v546_v22, %v544_v20  ;;  %v7228_v22 = vld [vmem:[%s9528_s1 + $0x104] ss:$8 sps:$4 sm:$0xff]  }
  0x63   : > { %v2368_v34 = vrot.slane %v2366_v23, 1  ;;  %v572_v23 = vor.u32 %v570_v16, %v568_v6  ;;  %1357 = vmatprep.subr.bf16.mxu1 %v7228_v22  ;;  %v7222_v16 = vld [vmem:[%s9528_s1 + $0x354] ss:$8 sps:$4 sm:$0xff]  }
  0x64   : > { %v560_v53 = vrot.slane %v558_v37, 1 }
  0x65   : > { %v2372_v44 = vor.u32 %v2371_v35, %v2368_v34 }
  0x67   : > { %779 = vmatmul.mubr.bf16.gmra.mrb[28].mxu1 %v497_v55  ;;  %2602 = vmatmul.mubr.bf16.gmra.mrb[28].mxu0 %v2310_v57  ;;  %v2345_v55 = vor.u32 %v2344_v50, %v2341_v48  ;;  %v530_v57 = vshrl.u32 %v7895_v26, 16  ;;  %v7969_v48 = vld [vmem:[%s7672_s26 + $0x90] sm:$0xff]   ;;  %v556_v50 = vor.u32 %v554_v29, %v552_v36  ;;  %v2784_v29 = vld [vmem:[%s7672_s26 + $0x8] sm:$0xc] }
  0x68   : > { %788 = vmatprep.mubr.bf16.mxu1 %v7550_v2  ;;  %2611 = vmatprep.mubr.bf16.mxu0 %v7550_v2 }
  0x69   : > { %v2346_v62 = vsel %vm2230_vm1, %v2336_v38, %v2345_v55  ;;  %v532_v0 = vor.u32 %v530_v57, %v528_v45  ;;  %v553_v45 = vsel %vm429_vm0, %v548_v41, %v552_v36  ;;  %v2387_v57 = vshll.u32 %v7969_v48, 16  ;;  %v8008_v36 = vld [vmem:[%s7672_s26 + $0x10] sm:$0xff]  }
  0x6a   : > { %v2807_v37 = vrot.slane %v8008_v36, 2  ;;  %v7210_v41 = vld [vmem:[%s9528_s1 + $0x314] ss:$8 sps:$4 sm:$0xff]  }
  0x6f   : > { %789 = vmatmul.mubr.bf16.gmra.mrb[32].mxu1 %v505_v14  ;;  %2612 = vmatmul.mubr.bf16.gmra.mrb[32].mxu0 %v2319_v15  ;;  %v537_v14 = vsel %vm429_vm0, %v532_v0, %v536_v4  ;;  %v2355_v15 = vsel %vm2230_vm1, %v2345_v55, %v2354_v5  ;;  %v2384_v55 = vshrl.u32 %v7969_v48, 16  ;;  %v2389_v0 = vrot.slane %v2387_v57, 2  ;;  %v7983_v4 = vld [vmem:[%s7672_s26 + $0x98] ss:$0 sps:$4 sm:$0x33]  }
  0x70   : > { %798 = vmatprep.mubr.bf16.mxu1 %v7550_v2  ;;  %2621 = vmatprep.mubr.bf16.mxu0 %v7550_v2  ;;  %v564_v5 = vor.u32 %v562_v58, %v560_v53  ;;  %v2393_v11 = vshrl.u32 %v7983_v4, 16  ;;  %v7234_v57 = vld [vmem:[%s9528_s1 + $0x124] ss:$8 sps:$4 sm:$0xff]   ;;  %v7216_v58 = vld [vmem:[%s9528_s1 + $0x334] ss:$8 sps:$4 sm:$0xff]  }
  0x71   : > { %v2386_v63 = vrot.slane %v2384_v55, 1  ;;  %v7211_v55 = vld [vmem:[%s9528_s1 + $0x320] ss:$8 sps:$4 sm:$0xff]  }
  0x73   : > { %v2390_v7 = vor.u32 %v2389_v0, %v2386_v63  ;;  %v8063_v63 = vld [vmem:[%s7672_s26 + $0x20] sm:$0xff]  }
  0x74   : > { %v2811_v0 = vrot.slane %v8063_v63, 2 }
  0x77   : > { %799 = vmatmul.mubr.bf16.gmra.mrb[36].mxu1 %v513_v30  ;;  %2622 = vmatmul.mubr.bf16.gmra.mrb[36].mxu0 %v2328_v32  ;;  %v2375_v30 = vshrl.u32 %v7945_v13, 16  ;;  %v545_v32 = vsel %vm429_vm0, %v540_v19, %v544_v20  ;;  %v574_v19 = vshll.u32 %v7988_v10, 16  ;;  %v2395_v20 = vrot.slane %v2393_v11, 1 }
  0x78   : > { %808 = vmatprep.mubr.bf16.mxu1 %v7550_v2  ;;  %2631 = vmatprep.mubr.bf16.mxu0 %v7550_v2 }
  0x79   : > { %v2377_v38 = vrot.slane %v2375_v30, 1  ;;  %v576_v24 = vrot.slane %v574_v19, 1  ;;  %v8089_v19 = vld [vmem:[%s7672_s26 + $0x10] sm:$0xff]  }
  0x7b   : > { %v577_v30 = vsel %vm429_vm0, %v572_v23, %v576_v24  ;;  %v7220_v23 = vld [vmem:[%s9528_s1 + $0x350] ss:$8 sps:$4 sm:$0xff]   ;;  %v7225_v24 = vld [vmem:[%s9528_s1 + $0x364] ss:$8 sps:$4 sm:$0xff]  }
  0x7f   : > { %809 = vmatmul.mubr.bf16.gmra.mrb[40].mxu1 %v521_v46  ;;  %2632 = vmatmul.mubr.bf16.gmra.mrb[40].mxu0 %v2337_v47  ;;  %v2373_v46 = vsel %vm2230_vm1, %v2363_v21, %v2372_v44  ;;  %v2380_v47 = vrot.slane %v2378_v40, 2  ;;  %v7205_v40 = vld [vmem:[%s9528_s1 + $0x300] ss:$8 sps:$4 sm:$0xff]  }
  0x80   : > { %818 = vmatprep.mubr.bf16.mxu1 %v7550_v2  ;;  %2641 = vmatprep.mubr.bf16.mxu0 %v7550_v2 }
  0x81   : > { %v2381_v54 = vor.u32 %v2380_v47, %v2377_v38 }
  0x83   : > { %v2391_v17 = vsel %vm2230_vm1, %v2381_v54, %v2390_v7 }
  0x87   : > { %819 = vmatmul.mubr.bf16.gmra.mrb[44].mxu1 %v529_v60  ;;  %2642 = vmatmul.mubr.bf16.gmra.mrb[44].mxu0 %v2346_v62  ;;  %v561_v60 = vsel %vm429_vm0, %v556_v50, %v560_v53  ;;  %v2382_v62 = vsel %vm2230_vm1, %v2372_v44, %v2381_v54  ;;  %v7226_v44 = vld [vmem:[%s9528_s1 + $0x100] ss:$8 sps:$4 sm:$0xff]   ;;  %v7208_v50 = vld [vmem:[%s9528_s1 + $0x310] ss:$8 sps:$4 sm:$0xff]  }
  0x88   : > { %828 = vmatprep.mubr.bf16.mxu1 %v7550_v2  ;;  %2651 = vmatprep.mubr.bf16.mxu0 %v7550_v2  ;;  %v7229_v53 = vld [vmem:[%s9528_s1 + $0x110] ss:$8 sps:$4 sm:$0xff]  }
  0x8f   : > { %829 = vmatmul.mubr.bf16.gmra.mrb[48].mxu1 %v537_v14  ;;  %2652 = vmatmul.mubr.bf16.gmra.mrb[48].mxu0 %v2355_v15  ;;  %v2396_v14 = vshll.u32 %v7983_v4, 16  ;;  %v569_v15 = vsel %vm429_vm0, %v564_v5, %v568_v6  ;;  %v7214_v5 = vld [vmem:[%s9528_s1 + $0x330] ss:$8 sps:$4 sm:$0xff]   ;;  %v7219_v6 = vld [vmem:[%s9528_s1 + $0x344] ss:$8 sps:$4 sm:$0xff]  }
  0x90   : > { %838 = vmatprep.mubr.bf16.mxu1 %v7550_v2  ;;  %2661 = vmatprep.mubr.bf16.mxu0 %v7550_v2 }
  0x91   : > { %v2398_v21 = vrot.slane %v2396_v14, 2  ;;  %v7217_v14 = vld [vmem:[%s9528_s1 + $0x340] ss:$8 sps:$4 sm:$0xff]  }
  0x93   : > { %v2399_v25 = vor.u32 %v2398_v21, %v2395_v20  ;;  %v7246_v20 = vld [vmem:[%s9528_s1 + $0x154] ss:$8 sps:$4 sm:$0xff]   ;;  %v8098_v21 = vld [vmem:[%s7672_s26 + $0x28] sm:$0xff]  }
  0x94   : > { %v2813_v22 = vrot.slane %v8098_v21, 2 }
  0x97   : > { %839 = vmatmul.mubr.bf16.gmra.mrb[52].mxu1 %v545_v32  ;;  %2662 = vmatmul.mubr.bf16.gmra.mrb[52].mxu0 %v2364_v33  ;;  %v2400_v32 = vsel %vm2230_vm1, %v2390_v7, %v2399_v25  ;;  %v7508_v33 = vld [vmem:[%s7672_s26 + $0xc] sm:$0xf]  ;;  %v7235_v7 = vld [vmem:[%s9528_s1 + $0x130] ss:$8 sps:$4 sm:$0xff]  }
  0x98   : > { %848 = vmatprep.mubr.bf16.mxu1 %v7550_v2  ;;  %2671 = vmatprep.mubr.bf16.mxu0 %v7550_v2  ;;  %v6150_v34 = vcombine.low %v2784_v29, %v7508_v33  ;;  %v7244_v25 = vld [vmem:[%s9528_s1 + $0x150] ss:$8 sps:$4 sm:$0xff]   ;;  %v2814_v29 = vsel %vm2805_vm2, %v2811_v0, %v2813_v22  ;;  %v7240_v33 = vld [vmem:[%s9528_s1 + $0x374] ss:$8 sps:$4 sm:$0xff]  }
  0x9a   : > { %v2806_v35 = vrot.slane %v6150_v34, 2  ;;  %v7247_v34 = vld [vmem:[%s9528_s1 + $0x160] ss:$8 sps:$4 sm:$0xff]  }
  0x9c   : > { %v2808_v38 = vsel %vm2805_vm2, %v2806_v35, %v2807_v37  ;;  %v8124_v35 = vld [vmem:[%s7672_s26 + $0x18] sm:$0xff]  }
  0x9f   : > { %849 = vmatmul.mubr.bf16.gmra.mrb[56].mxu1 %v553_v45  ;;  %2672 = vmatmul.mubr.bf16.gmra.mrb[56].mxu0 %v2373_v46  ;;  %v7231_v45 = vld [vmem:[%s9528_s1 + $0x114] ss:$8 sps:$4 sm:$0xff]  }
  0xa0   : > { %858 = vmatprep.mubr.bf16.mxu1 %v7550_v2  ;;  %2681 = vmatprep.mubr.bf16.mxu0 %v7550_v2  ;;  %v8027_v46 = vld [vmem:[%s7672_s26 + $0x18] sm:$0xff]  }
  0xa1   : > { %v2809_v47 = vrot.slane %v8027_v46, 2 }
  0xa3   : > { %v2810_v54 = vsel %vm2805_vm2, %v2807_v37, %v2809_v47  ;;  %v2812_v11 = vsel %vm2805_vm2, %v2809_v47, %v2811_v0  ;;  %v7252_v37 = vld [vmem:[%s9528_s1 + $0x174] ss:$8 sps:$4 sm:$0xff]   ;;  %v8175_v0 = vld [vmem:[%s7672_s26 + $0x48] sm:$0xff]  }
  0xa7   : > { %859 = vmatmul.mubr.bf16.gmra.mrb[60].mxu1 %v561_v60  ;;  %2682 = vmatmul.mubr.bf16.gmra.mrb[60].mxu0 %v2382_v62  ;;  %v8054_v60 = vld [vmem:[%s7672_s26 + $0x8] sm:$0xff]   ;;  %v7237_v62 = vld [vmem:[%s9528_s1 + $0x134] ss:$8 sps:$4 sm:$0xff]  }
  0xa8   : > { %868 = vmatprep.mubr.bf16.mxu1 %v7550_v2  ;;  %2691 = vmatprep.mubr.bf16.mxu0 %v7550_v2 }
  0xaf   : > { %869 = vmatmul.mubr.bf16.gmra.mrb[64].mxu1 %v569_v15  ;;  %2692 = vmatmul.mubr.bf16.gmra.mrb[64].mxu0 %v2391_v17  ;;  %v7243_v15 = vld [vmem:[%s9528_s1 + $0x144] ss:$8 sps:$4 sm:$0xff]   ;;  %v7241_v17 = vld [vmem:[%s9528_s1 + $0x140] ss:$8 sps:$4 sm:$0xff]  }
  0xb0   : > { %878 = vmatprep.mubr.bf16.mxu1 %v7550_v2  ;;  %2701 = vmatprep.mubr.bf16.mxu0 %v7550_v2 }
  0xb7   : > { %879 = vmatmul.mubr.bf16.gmra.mrb[68].mxu1 %v577_v30  ;;  %2702 = vmatmul.mubr.bf16.gmra.mrb[68].mxu0 %v2400_v32  ;;  %v7223_v30 = vld [vmem:[%s9528_s1 + $0x360] ss:$8 sps:$4 sm:$0xff]   ;;  %v7249_v32 = vld [vmem:[%s9528_s1 + $0x164] ss:$8 sps:$4 sm:$0xff]  }
  0xb8   : > { %1019 = vmatprep.mubr.bf16.mxu1 %v7550_v2  ;;  %2973 = vmatprep.mubr.bf16.mxu0 %v7550_v2 }
  0xbf   : > { %1020 = vmatmul.mubr.bf16.vlgmr.msra.gmra.mrb[0].mxu1 %v7694_v31  ;;  %2974 = vmatmul.mubr.bf16.vlgmr.msra.gmra.mrb[0].mxu0 %v2808_v38  ;;  %v7213_v31 = vld [vmem:[%s9528_s1 + $0x324] ss:$8 sps:$4 sm:$0xff]   ;;  %v8133_v38 = vld [vmem:[%s7672_s26 + $0x30] sm:$0xff]  }
  0xc0   : > { %3509 = vmatpush1.bf16.msra.mxu0 %v7205_v40  ;;  %1029 = vmatprep.mubr.bf16.mxu1 %v7550_v2  ;;  %v2815_v40 = vrot.slane %v8133_v38, 2 }
  0xc1   : > { %2983 = vmatprep.mubr.bf16.mxu0 %v7550_v2  ;;  %3510 = vmatprep.subr.bf16.mxu0 %v7210_v41  ;;  %v7238_v41 = vld [vmem:[%s9528_s1 + $0x370] ss:$8 sps:$4 sm:$0xff]  }
  0xc2   : > { %1358 = vmatpush1.bf16.msra.mxu1 %v7226_v44  ;;  %v7250_v44 = vld [vmem:[%s9528_s1 + $0x170] ss:$8 sps:$4 sm:$0xff]   ;;  %v2816_v47 = vsel %vm2805_vm2, %v2813_v22, %v2815_v40  ;;  %v1200_v22 = vld [vmem:[%s7672_s26] sm:$0xe] }
  0xc3   : > { %1359 = vmatprep.subr.bf16.mxu1 %v7231_v45  ;;  %v7258_v45 = vld [vmem:[%s9528_s1 + $0x384] ss:$8 sps:$4 sm:$0xff]  }
  0xc4   : > { %3511 = vmatpush1.bf16.msra.mxu0 %v7208_v50  ;;  %v8147_v50 = vld [vmem:[%s7672_s26 + $0x20] sm:$0xff]  }
  0xc5   : > { %3512 = vmatprep.subr.bf16.mxu0 %v7213_v31  ;;  %v8153_v31 = vld [vmem:[%s7672_s26 + $0x38] sm:$0xff]  }
  0xc6   : > { %1360 = vmatpush1.bf16.msra.mxu1 %v7229_v53  ;;  %v2817_v53 = vrot.slane %v8153_v31, 2 }
  0xc7   : > { %1030 = vmatmul.mubr.bf16.gmra.mrb[4].mxu1 %v8054_v60  ;;  %2984 = vmatmul.mubr.bf16.gmra.mrb[4].mxu0 %v2810_v54 }
  0xc8   : > { %1039 = vmatprep.mubr.bf16.mxu1 %v7550_v2  ;;  %2993 = vmatprep.mubr.bf16.mxu0 %v7550_v2  ;;  %v2818_v54 = vsel %vm2805_vm2, %v2815_v40, %v2817_v53 }
  0xc9   : > { %3513 = vmatpush1.bf16.msra.mxu0 %v7211_v55  ;;  %1361 = vmatprep.subr.bf16.mxu1 %v7234_v57  ;;  %v8158_v55 = vld [vmem:[%s7672_s26 + $0x28] sm:$0xff]   ;;  %v8164_v57 = vld [vmem:[%s7672_s26 + $0x40] sm:$0xff]  }
  0xca   : > { %3514 = vmatprep.subr.bf16.mxu0 %v7216_v58  ;;  %1362 = vmatpush1.bf16.msra.mxu1 %v7232_v59  ;;  %v2819_v58 = vrot.slane %v8164_v57, 2 }
  0xcb   : > { %1363 = vmatprep.subr.bf16.mxu1 %v7237_v62  ;;  %v8169_v62 = vld [vmem:[%s7672_s26 + $0x30] sm:$0xff]  }
  0xcc   : > { %v2820_v59 = vsel %vm2805_vm2, %v2817_v53, %v2819_v58  ;;  %v7296_v53 = vld [vmem:[%s9528_s1 + $0x194] ss:$8 sps:$4 sm:$0xff]  }
  0xcd   : > { %3515 = vmatpush1.bf16.msra.mxu0 %v7214_v5  ;;  %v2821_v5 = vrot.slane %v8175_v0, 2 }
  0xce   : > { %3516 = vmatprep.subr.bf16.mxu0 %v7219_v6  ;;  %1364 = vmatpush1.bf16.msra.mxu1 %v7235_v7  ;;  %v8180_v7 = vld [vmem:[%s7672_s26 + $0x38] sm:$0xff]  }
  0xcf   : > { %1040 = vmatmul.mubr.bf16.gmra.mrb[8].mxu1 %v8089_v19  ;;  %2994 = vmatmul.mubr.bf16.gmra.mrb[8].mxu0 %v2812_v11  ;;  %v2822_v6 = vsel %vm2805_vm2, %v2819_v58, %v2821_v5  ;;  %v2823_v11 = vrot.slane %v7816_v42, 2  ;;  %v2827_v42 = vrot.slane %v7869_v9, 2  ;;  %v2831_v9 = vrot.slane %v7910_v43, 2 }
  0xd0   : > { %1049 = vmatprep.mubr.bf16.mxu1 %v7550_v2  ;;  %3003 = vmatprep.mubr.bf16.mxu0 %v7550_v2  ;;  %v2835_v43 = vrot.slane %v7937_v8, 2 }
  0xd1   : > { %3517 = vmatpush1.bf16.msra.mxu0 %v7217_v14  ;;  %1365 = vmatprep.subr.bf16.mxu1 %v7243_v15  ;;  %v2824_v14 = vsel %vm2805_vm2, %v2821_v5, %v2823_v11  ;;  %v8188_v15 = vld [vmem:[%s7672_s26 + $0x40] sm:$0xff]  }
  0xd2   : > { %3518 = vmatprep.subr.bf16.mxu0 %v7222_v16  ;;  %1366 = vmatpush1.bf16.msra.mxu1 %v7241_v17  ;;  %v2825_v16 = vrot.slane %v7847_v61, 2  ;;  %v2829_v61 = vrot.slane %v7899_v28, 2  ;;  %v2833_v28 = vrot.slane %v7923_v56, 2  ;;  %v7268_v5 = vld [vmem:[%s9528_s1 + $0x3a4] ss:$8 sps:$4 sm:$0xff]  }
  0xd3   : > { %1367 = vmatprep.subr.bf16.mxu1 %v7246_v20 }
  0xd4   : > { %v2826_v17 = vsel %vm2805_vm2, %v2823_v11, %v2825_v16  ;;  %v2828_v20 = vsel %vm2805_vm2, %v2825_v16, %v2827_v42  ;;  %v7266_v16 = vld [vmem:[%s9528_s1 + $0x3a0] ss:$8 sps:$4 sm:$0xff]  }
  0xd5   : > { %3519 = vmatpush1.bf16.msra.mxu0 %v7220_v23  ;;  %v3226_v23 = vld [vmem:[%s7672_s26 + $0x10] sm:$0xc] }
  0xd6   : > { %3520 = vmatprep.subr.bf16.mxu0 %v7225_v24  ;;  %1368 = vmatpush1.bf16.msra.mxu1 %v7244_v25  ;;  %v8240_v24 = vld [vmem:[%s7672_s26 + $0x14] sm:$0xf]  ;;  %v7525_v25 = vld [vmem:[%s7672_s26 + $0x4] sm:$0xf] }
  0xd7   : > { %1050 = vmatmul.mubr.bf16.gmra.mrb[12].mxu1 %v8124_v35  ;;  %3004 = vmatmul.mubr.bf16.gmra.mrb[12].mxu0 %v2814_v29  ;;  %v6033_v29 = vcombine.low %v1200_v22, %v7525_v25  ;;  %v7311_v25 = vld [vmem:[%s9528_s1 + $0x1d0] ss:$8 sps:$4 sm:$0xff]  }
  0xd8   : > { %1059 = vmatprep.mubr.bf16.mxu1 %v7550_v2  ;;  %3013 = vmatprep.mubr.bf16.mxu0 %v7550_v2 }
  0xd9   : > { %3521 = vmatpush1.bf16.msra.mxu0 %v7223_v30  ;;  %1369 = vmatprep.subr.bf16.mxu1 %v7249_v32  ;;  %v8245_v30 = vcombine.low %v3226_v23, %v8240_v24  ;;  %v8248_v32 = vld [vmem:[%s7672_s26 + $0x18] sm:$0xff]  }
  0xda   : > { %3522 = vmatprep.subr.bf16.mxu0 %v7240_v33  ;;  %1370 = vmatpush1.bf16.msra.mxu1 %v7247_v34  ;;  %v1223_v33 = vrot.slane %v8054_v60, 1  ;;  %v7290_v60 = vld [vmem:[%s9528_s1 + $0x180] ss:$8 sps:$4 sm:$0xff]   ;;  %v7282_v23 = vld [vmem:[%s9528_s1 + $0x3d0] ss:$8 sps:$4 sm:$0xff]  }
  0xdb   : > { %1371 = vmatprep.subr.bf16.mxu1 %v7252_v37  ;;  %v3373_v34 = vrot.slane %v8245_v30, 2  ;;  %v3374_v37 = vrot.slane %v8248_v32, 2 }
  0xdd   : > { %3523 = vmatpush1.bf16.msra.mxu0 %v7238_v41  ;;  %v3375_v41 = vsel %vm2805_vm2, %v3373_v34, %v3374_v37  ;;  %v7316_v34 = vld [vmem:[%s9528_s1 + $0x1e4] ss:$8 sps:$4 sm:$0xff]  }
  0xde   : > { %1372 = vmatpush1.bf16.msra.mxu1 %v7250_v44  ;;  %4083 = vmatprep.subr.bf16.mxu0 %v7258_v45  ;;  %v7256_v44 = vld [vmem:[%s9528_s1 + $0x380] ss:$8 sps:$4 sm:$0xff]  }
  0xdf   : > { %1060 = vmatmul.mubr.bf16.gmra.mrb[16].mxu1 %v8147_v50  ;;  %3014 = vmatmul.mubr.bf16.gmra.mrb[16].mxu0 %v2816_v47  ;;  %v8262_v45 = vld [vmem:[%s7672_s26 + $0x20] sm:$0xff]   ;;  %v7263_v47 = vld [vmem:[%s9528_s1 + $0x394] ss:$8 sps:$4 sm:$0xff]  }
  0xe0   : > { %1069 = vmatprep.mubr.bf16.mxu1 %v7550_v2  ;;  %3023 = vmatprep.mubr.bf16.mxu0 %v7550_v2  ;;  %v3376_v58 = vrot.slane %v8262_v45, 2 }
  0xe2   : > { %v3377_v11 = vsel %vm2805_vm2, %v3374_v37, %v3376_v58  ;;  %v7306_v37 = vld [vmem:[%s9528_s1 + $0x3f4] ss:$8 sps:$4 sm:$0xff]  }
  0xe7   : > { %1070 = vmatmul.mubr.bf16.gmra.mrb[20].mxu1 %v8158_v55  ;;  %3024 = vmatmul.mubr.bf16.gmra.mrb[20].mxu0 %v2818_v54  ;;  %v1225_v54 = vrot.slane %v8089_v19, 1 }
  0xe8   : > { %1079 = vmatprep.mubr.bf16.mxu1 %v7550_v2  ;;  %3033 = vmatprep.mubr.bf16.mxu0 %v7550_v2 }
  0xe9   : > { %v1226_v19 = vsel %vm1221_vm3, %v1223_v33, %v1225_v54 }
  0xef   : > { %1080 = vmatmul.mubr.bf16.gmra.mrb[24].mxu1 %v8169_v62  ;;  %3034 = vmatmul.mubr.bf16.gmra.mrb[24].mxu0 %v2820_v59  ;;  %v7261_v59 = vld [vmem:[%s9528_s1 + $0x390] ss:$8 sps:$4 sm:$0xff]  }
  0xf0   : > { %1089 = vmatprep.mubr.bf16.mxu1 %v7550_v2  ;;  %3043 = vmatprep.mubr.bf16.mxu0 %v7550_v2 }
  0xf7   : > { %1090 = vmatmul.mubr.bf16.gmra.mrb[28].mxu1 %v8180_v7  ;;  %3044 = vmatmul.mubr.bf16.gmra.mrb[28].mxu0 %v2822_v6  ;;  %v7294_v6 = vld [vmem:[%s9528_s1 + $0x190] ss:$8 sps:$4 sm:$0xff]  }
  0xf8   : > { %1099 = vmatprep.mubr.bf16.mxu1 %v7550_v2  ;;  %3053 = vmatprep.mubr.bf16.mxu0 %v7550_v2 }
  0xff   : > { %1100 = vmatmul.mubr.bf16.gmra.mrb[32].mxu1 %v8188_v15  ;;  %3054 = vmatmul.mubr.bf16.gmra.mrb[32].mxu0 %v2824_v14  ;;  %v8289_v14 = vld [vmem:[%s7672_s26 + $0x28] sm:$0xff]  }
 0x100   : > { %1109 = vmatprep.mubr.bf16.mxu1 %v7550_v2  ;;  %3063 = vmatprep.mubr.bf16.mxu0 %v7550_v2 }
 0x107   : > { %1110 = vmatmul.mubr.bf16.gmra.mrb[36].mxu1 %v7831_v49  ;;  %3064 = vmatmul.mubr.bf16.gmra.mrb[36].mxu0 %v2826_v17  ;;  %v2830_v49 = vsel %vm2805_vm2, %v2827_v42, %v2829_v61  ;;  %v7299_v17 = vld [vmem:[%s9528_s1 + $0x1a4] ss:$8 sps:$4 sm:$0xff]   ;;  %v7273_v42 = vld [vmem:[%s9528_s1 + $0x3b4] ss:$8 sps:$4 sm:$0xff]  }
 0x108   : > { %1119 = vmatprep.mubr.bf16.mxu1 %v7550_v2  ;;  %3073 = vmatprep.mubr.bf16.mxu0 %v7550_v2 }
 0x10f   : > { %1120 = vmatmul.mubr.bf16.gmra.mrb[40].mxu1 %v7856_v1  ;;  %3074 = vmatmul.mubr.bf16.gmra.mrb[40].mxu0 %v2828_v20  ;;  %v2832_v1 = vsel %vm2805_vm2, %v2829_v61, %v2831_v9  ;;  %v7297_v20 = vld [vmem:[%s9528_s1 + $0x1a0] ss:$8 sps:$4 sm:$0xff]   ;;  %v7303_v61 = vld [vmem:[%s9528_s1 + $0x1b4] ss:$8 sps:$4 sm:$0xff]  }
 0x110   : > { %1129 = vmatprep.mubr.bf16.mxu1 %v7550_v2  ;;  %3083 = vmatprep.mubr.bf16.mxu0 %v7550_v2 }
 0x117   : > { %1130 = vmatmul.mubr.bf16.gmra.mrb[44].mxu1 %v7882_v18  ;;  %3084 = vmatmul.mubr.bf16.gmra.mrb[44].mxu0 %v2830_v49  ;;  %v2834_v18 = vsel %vm2805_vm2, %v2831_v9, %v2833_v28  ;;  %v1227_v49 = vrot.slane %v8124_v35, 1  ;;  %v3378_v9 = vrot.slane %v8289_v14, 2 }
 0x118   : > { %1139 = vmatprep.mubr.bf16.mxu1 %v7550_v2  ;;  %3093 = vmatprep.mubr.bf16.mxu0 %v7550_v2 }
 0x119   : > { %v1228_v35 = vsel %vm1221_vm3, %v1225_v54, %v1227_v49  ;;  %v7323_v54 = vld [vmem:[%s9528_s1 + $0x404] ss:$8 sps:$4 sm:$0xff]  }
 0x11f   : > { %1140 = vmatmul.mubr.bf16.gmra.mrb[48].mxu1 %v7895_v26  ;;  %3094 = vmatmul.mubr.bf16.gmra.mrb[48].mxu0 %v2832_v1  ;;  %v2836_v26 = vsel %vm2805_vm2, %v2833_v28, %v2835_v43  ;;  %v7271_v1 = vld [vmem:[%s9528_s1 + $0x3b0] ss:$8 sps:$4 sm:$0xff]   ;;  %v7279_v28 = vld [vmem:[%s9528_s1 + $0x3c4] ss:$8 sps:$4 sm:$0xff]  }
 0x120   : > { %1149 = vmatprep.mubr.bf16.mxu1 %v7550_v2  ;;  %3103 = vmatprep.mubr.bf16.mxu0 %v7550_v2 }
 0x127   : > { %1150 = vmatmul.mubr.bf16.gmra.mrb[52].mxu1 %v7916_v51  ;;  %3104 = vmatmul.mubr.bf16.gmra.mrb[52].mxu0 %v2834_v18  ;;  %v2837_v51 = vrot.slane %v7945_v13, 2  ;;  %v7292_v13 = vld [vmem:[%s9528_s1 + $0x184] ss:$8 sps:$4 sm:$0xff]   ;;  %v7301_v18 = vld [vmem:[%s9528_s1 + $0x1b0] ss:$8 sps:$4 sm:$0xff]  }
 0x128   : > { %1159 = vmatprep.mubr.bf16.mxu1 %v7550_v2  ;;  %3113 = vmatprep.mubr.bf16.mxu0 %v7550_v2 }
 0x129   : > { %v2838_v56 = vsel %vm2805_vm2, %v2835_v43, %v2837_v51  ;;  %1924 = vmatprep.subr.bf16.mxu1 %v7292_v13  ;;  %v3379_v43 = vsel %vm2805_vm2, %v3376_v58, %v3378_v9  ;;  %v7313_v13 = vld [vmem:[%s9528_s1 + $0x1d4] ss:$8 sps:$4 sm:$0xff]  }
 0x12f   : > { %1160 = vmatmul.mubr.bf16.gmra.mrb[56].mxu1 %v7930_v3  ;;  %3114 = vmatmul.mubr.bf16.gmra.mrb[56].mxu0 %v2836_v26  ;;  %v2839_v3 = vrot.slane %v7969_v48, 2  ;;  %v8322_v26 = vld [vmem:[%s7672_s26 + $0x30] sm:$0xff]  }
 0x130   : > { %1169 = vmatprep.mubr.bf16.mxu1 %v7550_v2  ;;  %3123 = vmatprep.mubr.bf16.mxu0 %v7550_v2  ;;  %v3380_v22 = vrot.slane %v8322_v26, 2 }
 0x131   : > { %v2840_v8 = vsel %vm2805_vm2, %v2837_v51, %v2839_v3  ;;  %v7277_v51 = vld [vmem:[%s9528_s1 + $0x3c0] ss:$8 sps:$4 sm:$0xff]  }
 0x137   : > { %1170 = vmatmul.mubr.bf16.gmra.mrb[60].mxu1 %v7942_v12  ;;  %3124 = vmatmul.mubr.bf16.gmra.mrb[60].mxu0 %v2838_v56  ;;  %v2841_v12 = vrot.slane %v7983_v4, 2  ;;  %v1222_v4 = vrot.slane %v6033_v29, 1  ;;  %v7309_v56 = vld [vmem:[%s9528_s1 + $0x1c4] ss:$8 sps:$4 sm:$0xff]   ;;  %v3381_v29 = vsel %vm2805_vm2, %v3378_v9, %v3380_v22 }
 0x138   : > { %1179 = vmatprep.mubr.bf16.mxu1 %v7550_v2  ;;  %3133 = vmatprep.mubr.bf16.mxu0 %v7550_v2 }
 0x139   : > { %v2842_v48 = vsel %vm2805_vm2, %v2839_v3, %v2841_v12  ;;  %v1224_v40 = vsel %vm1221_vm3, %v1222_v4, %v1223_v33  ;;  %v7284_v3 = vld [vmem:[%s9528_s1 + $0x3d4] ss:$8 sps:$4 sm:$0xff]   ;;  %v1229_v12 = vrot.slane %v8147_v50, 1  ;;  %v7287_v33 = vld [vmem:[%s9528_s1 + $0x3e0] ss:$8 sps:$4 sm:$0xff]  }
 0x13a   : > { %v8355_v4 = vld [vmem:[%s7672_s26 + $0x38] sm:$0xff]  }
 0x13b   : > { %v1230_v50 = vsel %vm1221_vm3, %v1227_v49, %v1229_v12  ;;  %v1237_v49 = vrot.slane %v8188_v15, 1 }
 0x13f   : > { %1180 = vmatmul.mubr.bf16.gmra.mrb[64].mxu1 %v7956_v27  ;;  %3134 = vmatmul.mubr.bf16.gmra.mrb[64].mxu0 %v2840_v8  ;;  %v7307_v8 = vld [vmem:[%s9528_s1 + $0x1c0] ss:$8 sps:$4 sm:$0xff]  }
 0x140   : > { %1189 = vmatprep.mubr.bf16.mxu1 %v7550_v2  ;;  %3143 = vmatprep.mubr.bf16.mxu0 %v7550_v2 }
 0x147   : > { %1190 = vmatmul.mubr.bf16.gmra.mrb[68].mxu1 %v7972_v52  ;;  %3144 = vmatmul.mubr.bf16.gmra.mrb[68].mxu0 %v2842_v48  ;;  %v7289_v48 = vld [vmem:[%s9528_s1 + $0x3e4] ss:$8 sps:$4 sm:$0xff]  }
 0x148   : > { %1389 = vmatprep.mubr.bf16.mxu1 %v7550_v2  ;;  %3540 = vmatprep.mubr.bf16.mxu0 %v7550_v2 }
 0x14f   : > { %1390 = vmatmul.mubr.bf16.vlgmr.msra.gmra.mrb[0].mxu1 %v1224_v40  ;;  %3541 = vmatmul.mubr.bf16.vlgmr.msra.gmra.mrb[0].mxu0 %v3375_v41  ;;  %v7314_v40 = vld [vmem:[%s9528_s1 + $0x1e0] ss:$8 sps:$4 sm:$0xff]   ;;  %v7320_v41 = vld [vmem:[%s9528_s1 + $0x1f4] ss:$8 sps:$4 sm:$0xff]  }
 0x150   : > { %4084 = vmatpush1.bf16.msra.mxu0 %v7256_v44  ;;  %1399 = vmatprep.mubr.bf16.mxu1 %v7550_v2  ;;  %v1231_v44 = vrot.slane %v8158_v55, 1 }
 0x151   : > { %3550 = vmatprep.mubr.bf16.mxu0 %v7550_v2  ;;  %4085 = vmatprep.subr.bf16.mxu0 %v7263_v47  ;;  %v3382_v47 = vrot.slane %v8355_v4, 2 }
 0x152   : > { %1925 = vmatpush1.bf16.msra.mxu1 %v7290_v60  ;;  %v7304_v60 = vld [vmem:[%s9528_s1 + $0x3f0] ss:$8 sps:$4 sm:$0xff]   ;;  %v1232_v55 = vsel %vm1221_vm3, %v1229_v12, %v1231_v44 }
 0x153   : > { %1926 = vmatprep.subr.bf16.mxu1 %v7296_v53  ;;  %v7318_v53 = vld [vmem:[%s9528_s1 + $0x1f0] ss:$8 sps:$4 sm:$0xff]   ;;  %v3383_v58 = vsel %vm2805_vm2, %v3380_v22, %v3382_v47 }
 0x154   : > { %4086 = vmatpush1.bf16.msra.mxu0 %v7261_v59  ;;  %v8388_v59 = vld [vmem:[%s7672_s26 + $0x40] sm:$0xff]  }
 0x155   : > { %4087 = vmatprep.subr.bf16.mxu0 %v7268_v5  ;;  %v1233_v5 = vrot.slane %v8169_v62, 1 }
 0x156   : > { %1927 = vmatpush1.bf16.msra.mxu1 %v7294_v6  ;;  %v3384_v6 = vrot.slane %v8388_v59, 2 }
 0x157   : > { %1400 = vmatmul.mubr.bf16.gmra.mrb[4].mxu1 %v1226_v19  ;;  %3551 = vmatmul.mubr.bf16.gmra.mrb[4].mxu0 %v3377_v11  ;;  %v1234_v19 = vsel %vm1221_vm3, %v1231_v44, %v1233_v5 }
 0x158   : > { %1409 = vmatprep.mubr.bf16.mxu1 %v7550_v2  ;;  %3560 = vmatprep.mubr.bf16.mxu0 %v7550_v2  ;;  %v3385_v11 = vsel %vm2805_vm2, %v3382_v47, %v3384_v6 }
 0x159   : > { %4088 = vmatpush1.bf16.msra.mxu0 %v7266_v16  ;;  %1928 = vmatprep.subr.bf16.mxu1 %v7299_v17  ;;  %v8398_v16 = vld [vmem:[%s7672_s26 + $0x48] sm:$0xff]   ;;  %v1235_v17 = vrot.slane %v8180_v7, 1 }
 0x15a   : > { %4089 = vmatprep.subr.bf16.mxu0 %v7273_v42  ;;  %1929 = vmatpush1.bf16.msra.mxu1 %v7297_v20  ;;  %v3386_v62 = vrot.slane %v8398_v16, 2 }
 0x15b   : > { %1930 = vmatprep.subr.bf16.mxu1 %v7303_v61  ;;  %v1236_v42 = vsel %vm1221_vm3, %v1233_v5, %v1235_v17  ;;  %v8407_v61 = vld [vmem:[%s7672_s26 + $0x50] sm:$0xff]   ;;  %v1238_v9 = vsel %vm1221_vm3, %v1235_v17, %v1237_v49 }
 0x15c   : > { %v3387_v20 = vsel %vm2805_vm2, %v3384_v6, %v3386_v62  ;;  %v3388_v7 = vrot.slane %v8407_v61, 2  ;;  %v8461_v6 = vld [vmem:[%s7672_s26 + $0x80] sm:$0xff]  }
 0x15d   : > { %4090 = vmatpush1.bf16.msra.mxu0 %v7271_v1  ;;  %v3400_v17 = vrot.slane %v8461_v6, 2 }
 0x15e   : > { %4091 = vmatprep.subr.bf16.mxu0 %v7279_v28  ;;  %1931 = vmatpush1.bf16.msra.mxu1 %v7301_v18  ;;  %v3389_v1 = vsel %vm2805_vm2, %v3386_v62, %v3388_v7  ;;  %v8416_v28 = vld [vmem:[%s7672_s26 + $0x58] sm:$0xff]   ;;  %v7526_v18 = vld [vmem:[%s7672_s26 + $0x48] sm:$0xff]  }
 0x15f   : > { %1410 = vmatmul.mubr.bf16.gmra.mrb[8].mxu1 %v1228_v35  ;;  %3561 = vmatmul.mubr.bf16.gmra.mrb[8].mxu0 %v3379_v43  ;;  %v1239_v35 = vrot.slane %v7526_v18, 1  ;;  %v3390_v15 = vrot.slane %v8416_v28, 2 }
 0x160   : > { %1419 = vmatprep.mubr.bf16.mxu1 %v7550_v2  ;;  %3570 = vmatprep.mubr.bf16.mxu0 %v7550_v2 }
 0x161   : > { %4092 = vmatpush1.bf16.msra.mxu0 %v7277_v51  ;;  %1932 = vmatprep.subr.bf16.mxu1 %v7309_v56  ;;  %v1240_v43 = vsel %vm1221_vm3, %v1237_v49, %v1239_v35  ;;  %v3391_v51 = vsel %vm2805_vm2, %v3388_v7, %v3390_v15  ;;  %v8425_v56 = vld [vmem:[%s7672_s26 + $0x60] sm:$0xff]   ;;  %v7532_v49 = vld [vmem:[%s7672_s26 + $0x78] sm:$0xff]  }
 0x162   : > { %4093 = vmatprep.subr.bf16.mxu0 %v7284_v3  ;;  %1933 = vmatpush1.bf16.msra.mxu1 %v7307_v8  ;;  %v7527_v3 = vld [vmem:[%s7672_s26 + $0x50] sm:$0xff]   ;;  %v1251_v7 = vrot.slane %v7532_v49, 1  ;;  %v1792_v49 = vrot.slane %v8027_v46, 1 }
 0x163   : > { %1934 = vmatprep.subr.bf16.mxu1 %v7313_v13  ;;  %v1241_v8 = vrot.slane %v7527_v3, 1  ;;  %v3392_v13 = vrot.slane %v8425_v56, 2 }
 0x165   : > { %4094 = vmatpush1.bf16.msra.mxu0 %v7282_v23  ;;  %v1242_v12 = vsel %vm1221_vm3, %v1239_v35, %v1241_v8  ;;  %v3393_v22 = vsel %vm2805_vm2, %v3390_v15, %v3392_v13  ;;  %v8434_v23 = vld [vmem:[%s7672_s26 + $0x68] sm:$0xff]   ;;  %v8479_v35 = vld [vmem:[%s7672_s26 + $0x90] sm:$0xff]   ;;  %v1253_v15 = vrot.slane %v7956_v27, 1 }
 0x166   : > { %4095 = vmatprep.subr.bf16.mxu0 %v7289_v48  ;;  %1935 = vmatpush1.bf16.msra.mxu1 %v7311_v25  ;;  %v7528_v48 = vld [vmem:[%s7672_s26 + $0x58] sm:$0xff]  }
 0x167   : > { %1420 = vmatmul.mubr.bf16.gmra.mrb[12].mxu1 %v1230_v50  ;;  %3571 = vmatmul.mubr.bf16.gmra.mrb[12].mxu0 %v3381_v29  ;;  %v1243_v25 = vrot.slane %v7528_v48, 1  ;;  %v3394_v50 = vrot.slane %v8434_v23, 2 }
 0x168   : > { %1429 = vmatprep.mubr.bf16.mxu1 %v7550_v2  ;;  %3580 = vmatprep.mubr.bf16.mxu0 %v7550_v2 }
 0x169   : > { %4096 = vmatpush1.bf16.msra.mxu0 %v7287_v33  ;;  %1936 = vmatprep.subr.bf16.mxu1 %v7316_v34  ;;  %v1244_v29 = vsel %vm1221_vm3, %v1241_v8, %v1243_v25  ;;  %v3395_v33 = vsel %vm2805_vm2, %v3392_v13, %v3394_v50  ;;  %v8443_v34 = vld [vmem:[%s7672_s26 + $0x70] sm:$0xff]   ;;  %v8488_v8 = vld [vmem:[%s7672_s26 + $0x98] sm:$0xff]   ;;  %v1255_v13 = vrot.slane %v7972_v52, 1  ;;  %v3819_v52 = vshll.u32 %v8245_v30, 16 }
 0x16a   : > { %4097 = vmatprep.subr.bf16.mxu0 %v7306_v37  ;;  %1937 = vmatpush1.bf16.msra.mxu1 %v7314_v40  ;;  %v7529_v37 = vld [vmem:[%s7672_s26 + $0x60] sm:$0xff]  }
 0x16b   : > { %1938 = vmatprep.subr.bf16.mxu1 %v7320_v41  ;;  %v1245_v40 = vrot.slane %v7529_v37, 1  ;;  %v3396_v41 = vrot.slane %v8443_v34, 2  ;;  %v1256_v27 = vsel %vm1221_vm3, %v1253_v15, %v1255_v13  ;;  %v3827_v37 = vshll.u32 %v8248_v32, 16 }
 0x16d   : > { %4098 = vmatpush1.bf16.msra.mxu0 %v7304_v60  ;;  %v1246_v44 = vsel %vm1221_vm3, %v1243_v25, %v1245_v40  ;;  %v3397_v47 = vsel %vm2805_vm2, %v3394_v50, %v3396_v41  ;;  %v8452_v60 = vld [vmem:[%s7672_s26 + $0x78] sm:$0xff]   ;;  %v1257_v25 = vrot.slane %v7988_v10, 1 }
 0x16e   : > { %1939 = vmatpush1.bf16.msra.mxu1 %v7318_v53  ;;  %4525 = vmatprep.subr.bf16.mxu0 %v7323_v54  ;;  %v7530_v53 = vld [vmem:[%s7672_s26 + $0x68] sm:$0xff]  }
 0x16f   : > { %1430 = vmatmul.mubr.bf16.gmra.mrb[16].mxu1 %v1232_v55  ;;  %3581 = vmatmul.mubr.bf16.gmra.mrb[16].mxu0 %v3383_v58  ;;  %v1247_v54 = vrot.slane %v7530_v53, 1  ;;  %v3398_v55 = vrot.slane %v8452_v60, 2  ;;  %v3829_v53 = vrot.slane %v3827_v37, 3 }
 0x170   : > { %1439 = vmatprep.mubr.bf16.mxu1 %v7550_v2  ;;  %3590 = vmatprep.mubr.bf16.mxu0 %v7550_v2 }
 0x171   : > { %5137 = vmatprep.subr.bf16.mxu1 %v7550_v2  ;;  %v1248_v58 = vsel %vm1221_vm3, %v1245_v40, %v1247_v54  ;;  %v3399_v5 = vsel %vm2805_vm2, %v3396_v41, %v3398_v55  ;;  %v1258_v40 = vsel %vm1221_vm3, %v1255_v13, %v1257_v25  ;;  %v7327_v13 = vld [vmem:[%s9528_s1 + $0x420] ss:$8 sps:$4 sm:$0xff]   ;;  %v3854_v25 = vshll.u32 %v8322_v26, 16 }
 0x173   : > { %v3856_v37 = vrot.slane %v3854_v25, 3 }
 0x177   : > { %1440 = vmatmul.mubr.bf16.gmra.mrb[20].mxu1 %v1234_v19  ;;  %3591 = vmatmul.mubr.bf16.gmra.mrb[20].mxu0 %v3385_v11  ;;  %v7531_v19 = vld [vmem:[%s7672_s26 + $0x70] sm:$0xff]  }
 0x178   : > { %1449 = vmatprep.mubr.bf16.mxu1 %v7550_v2  ;;  %3600 = vmatprep.mubr.bf16.mxu0 %v7550_v2  ;;  %v1249_v11 = vrot.slane %v7531_v19, 1  ;;  %v3836_v19 = vshll.u32 %v8262_v45, 16 }
 0x17a   : > { %v1250_v62 = vsel %vm1221_vm3, %v1247_v54, %v1249_v11  ;;  %v1789_v54 = vrot.slane %v7704_v39, 1  ;;  %v7321_v39 = vld [vmem:[%s9528_s1 + $0x400] ss:$8 sps:$4 sm:$0xff]  }
 0x17f   : > { %1450 = vmatmul.mubr.bf16.gmra.mrb[24].mxu1 %v1236_v42  ;;  %3601 = vmatmul.mubr.bf16.gmra.mrb[24].mxu0 %v3387_v20  ;;  %v3401_v42 = vsel %vm2805_vm2, %v3398_v55, %v3400_v17  ;;  %v8470_v20 = vld [vmem:[%s7672_s26 + $0x88] sm:$0xff]   ;;  %v1790_v55 = vrot.slane %v8008_v36, 1 }
 0x180   : > { %1459 = vmatprep.mubr.bf16.mxu1 %v7550_v2  ;;  %3610 = vmatprep.mubr.bf16.mxu0 %v7550_v2 }
 0x187   : > { %1460 = vmatmul.mubr.bf16.gmra.mrb[28].mxu1 %v1238_v9  ;;  %3611 = vmatmul.mubr.bf16.gmra.mrb[28].mxu0 %v3389_v1  ;;  %v3402_v9 = vrot.slane %v8470_v20, 2  ;;  %v1252_v1 = vsel %vm1221_vm3, %v1249_v11, %v1251_v7  ;;  %v1791_v11 = vsel %vm1221_vm3, %v1789_v54, %v1790_v55  ;;  %v7336_v54 = vld [vmem:[%s9528_s1 + $0x450] ss:$8 sps:$4 sm:$0xff]  }
 0x188   : > { %1469 = vmatprep.mubr.bf16.mxu1 %v7550_v2  ;;  %3620 = vmatprep.mubr.bf16.mxu0 %v7550_v2 }
 0x189   : > { %v3403_v18 = vsel %vm2805_vm2, %v3400_v17, %v3402_v9 }
 0x18f   : > { %1470 = vmatmul.mubr.bf16.gmra.mrb[32].mxu1 %v1240_v43  ;;  %3621 = vmatmul.mubr.bf16.gmra.mrb[32].mxu0 %v3391_v51  ;;  %v3404_v43 = vrot.slane %v8479_v35, 2  ;;  %v1254_v51 = vsel %vm1221_vm3, %v1251_v7, %v1253_v15  ;;  %v7329_v15 = vld [vmem:[%s9528_s1 + $0x424] ss:$8 sps:$4 sm:$0xff]  }
 0x190   : > { %1479 = vmatprep.mubr.bf16.mxu1 %v7550_v2  ;;  %3630 = vmatprep.mubr.bf16.mxu0 %v7550_v2 }
 0x191   : > { %v3405_v3 = vsel %vm2805_vm2, %v3402_v9, %v3404_v43  ;;  %v3842_v9 = vshrl.u32 %v8289_v14, 16 }
 0x197   : > { %1480 = vmatmul.mubr.bf16.gmra.mrb[36].mxu1 %v1242_v12  ;;  %3631 = vmatmul.mubr.bf16.gmra.mrb[36].mxu0 %v3393_v22  ;;  %v3406_v12 = vrot.slane %v8488_v8, 2  ;;  %v7317_v22 = vld [vmem:[%s7672_s26 + $0xa0] ss:$0 sps:$4 sm:$0x33]  }
 0x198   : > { %1489 = vmatprep.mubr.bf16.mxu1 %v7550_v2  ;;  %3640 = vmatprep.mubr.bf16.mxu0 %v7550_v2  ;;  %v3408_v50 = vrot.slane %v7317_v22, 2  ;;  %v1794_v22 = vrot.slane %v8063_v63, 1 }
 0x199   : > { %v3407_v48 = vsel %vm2805_vm2, %v3404_v43, %v3406_v12  ;;  %v1793_v43 = vsel %vm1221_vm3, %v1790_v55, %v1792_v49  ;;  %v7341_v55 = vld [vmem:[%s9528_s1 + $0x464] ss:$8 sps:$4 sm:$0xff]  }
 0x19a   : > { %v3409_v41 = vsel %vm2805_vm2, %v3406_v12, %v3408_v50  ;;  %v7332_v12 = vld [vmem:[%s9528_s1 + $0x434] ss:$8 sps:$4 sm:$0xff]   ;;  %v7330_v50 = vld [vmem:[%s9528_s1 + $0x430] ss:$8 sps:$4 sm:$0xff]  }
 0x19f   : > { %1490 = vmatmul.mubr.bf16.gmra.mrb[40].mxu1 %v1244_v29  ;;  %3641 = vmatmul.mubr.bf16.gmra.mrb[40].mxu0 %v3395_v33  ;;  %v3816_v29 = vshrl.u32 %v8245_v30, 16  ;;  %v3824_v33 = vshrl.u32 %v8248_v32, 16 }
 0x1a0   : > { %1499 = vmatprep.mubr.bf16.mxu1 %v7550_v2  ;;  %3650 = vmatprep.mubr.bf16.mxu0 %v7550_v2 }
 0x1a1   : > { %v3826_v10 = vrot.slane %v3824_v33, 2 }
 0x1a7   : > { %1500 = vmatmul.mubr.bf16.gmra.mrb[44].mxu1 %v1246_v44  ;;  %3651 = vmatmul.mubr.bf16.gmra.mrb[44].mxu0 %v3397_v47  ;;  %v3818_v44 = vrot.slane %v3816_v29, 2  ;;  %v3821_v47 = vrot.slane %v3819_v52, 3  ;;  %v7335_v29 = vld [vmem:[%s9528_s1 + $0x444] ss:$8 sps:$4 sm:$0xff]   ;;  %v1795_v52 = vsel %vm1221_vm3, %v1792_v49, %v1794_v22 }
 0x1a8   : > { %1509 = vmatprep.mubr.bf16.mxu1 %v7550_v2  ;;  %3660 = vmatprep.mubr.bf16.mxu0 %v7550_v2 }
 0x1a9   : > { %v3822_v30 = vor.u32 %v3821_v47, %v3818_v44  ;;  %v1796_v44 = vrot.slane %v8098_v21, 1 }
 0x1af   : > { %1510 = vmatmul.mubr.bf16.gmra.mrb[48].mxu1 %v1248_v58  ;;  %3661 = vmatmul.mubr.bf16.gmra.mrb[48].mxu0 %v3399_v5  ;;  %v3830_v58 = vor.u32 %v3829_v53, %v3826_v10  ;;  %v3833_v5 = vshrl.u32 %v8262_v45, 16  ;;  %v3860_v10 = vshrl.u32 %v8355_v4, 16  ;;  %v3863_v53 = vshll.u32 %v8355_v4, 16 }
 0x1b0   : > { %1519 = vmatprep.mubr.bf16.mxu1 %v7550_v2  ;;  %3670 = vmatprep.mubr.bf16.mxu0 %v7550_v2 }
 0x1b1   : > { %v3831_v17 = vsel %vm3814_vm4, %v3822_v30, %v3830_v58  ;;  %v3835_v36 = vrot.slane %v3833_v5, 2  ;;  %v1797_v30 = vsel %vm1221_vm3, %v1794_v22, %v1796_v44  ;;  %v3862_v21 = vrot.slane %v3860_v10, 2 }
 0x1b2   : > { %v3865_v5 = vrot.slane %v3863_v53, 3  ;;  %v3887_v22 = vshrl.u32 %v8407_v61, 16  ;;  %v3905_v53 = vshrl.u32 %v8425_v56, 16 }
 0x1b7   : > { %1520 = vmatmul.mubr.bf16.gmra.mrb[52].mxu1 %v1250_v62  ;;  %3671 = vmatmul.mubr.bf16.gmra.mrb[52].mxu0 %v3401_v42  ;;  %v3838_v62 = vrot.slane %v3836_v19, 3  ;;  %v7326_v42 = vld [vmem:[%s9528_s1 + $0x414] ss:$8 sps:$4 sm:$0xff]   ;;  %v7339_v19 = vld [vmem:[%s9528_s1 + $0x460] ss:$8 sps:$4 sm:$0xff]  }
 0x1b8   : > { %1529 = vmatprep.mubr.bf16.mxu1 %v7550_v2  ;;  %3680 = vmatprep.mubr.bf16.mxu0 %v7550_v2 }
 0x1b9   : > { %v3839_v7 = vor.u32 %v3838_v62, %v3835_v36  ;;  %v3869_v36 = vshrl.u32 %v8388_v59, 16  ;;  %v3872_v62 = vshll.u32 %v8388_v59, 16 }
 0x1bb   : > { %v3840_v46 = vsel %vm3814_vm4, %v3830_v58, %v3839_v7 }
 0x1bf   : > { %1530 = vmatmul.mubr.bf16.gmra.mrb[56].mxu1 %v1252_v1  ;;  %3681 = vmatmul.mubr.bf16.gmra.mrb[56].mxu0 %v3403_v18  ;;  %v3845_v1 = vshll.u32 %v8289_v14, 16  ;;  %v7324_v18 = vld [vmem:[%s9528_s1 + $0x410] ss:$8 sps:$4 sm:$0xff]  }
 0x1c0   : > { %1539 = vmatprep.mubr.bf16.mxu1 %v7550_v2  ;;  %3690 = vmatprep.mubr.bf16.mxu0 %v7550_v2 }
 0x1c7   : > { %1540 = vmatmul.mubr.bf16.gmra.mrb[60].mxu1 %v1254_v51  ;;  %3691 = vmatmul.mubr.bf16.gmra.mrb[60].mxu0 %v3405_v3  ;;  %v3844_v51 = vrot.slane %v3842_v9, 2  ;;  %v3847_v3 = vrot.slane %v3845_v1, 3  ;;  %v3871_v9 = vrot.slane %v3869_v36, 2  ;;  %v3874_v1 = vrot.slane %v3872_v62, 3 }
 0x1c8   : > { %1549 = vmatprep.mubr.bf16.mxu1 %v7550_v2  ;;  %3700 = vmatprep.mubr.bf16.mxu0 %v7550_v2 }
 0x1cf   : > { %1550 = vmatmul.mubr.bf16.gmra.mrb[64].mxu1 %v1256_v27  ;;  %3701 = vmatmul.mubr.bf16.gmra.mrb[64].mxu0 %v3407_v48  ;;  %v3848_v27 = vor.u32 %v3847_v3, %v3844_v51  ;;  %v3851_v48 = vshrl.u32 %v8322_v26, 16 }
 0x1d0   : > { %1559 = vmatprep.mubr.bf16.mxu1 %v7550_v2  ;;  %3710 = vmatprep.mubr.bf16.mxu0 %v7550_v2 }
 0x1d1   : > { %v3849_v33 = vsel %vm3814_vm4, %v3839_v7, %v3848_v27  ;;  %v3853_v63 = vrot.slane %v3851_v48, 2 }
 0x1d3   : > { %v3857_v47 = vor.u32 %v3856_v37, %v3853_v63  ;;  %v3899_v63 = vshll.u32 %v8416_v28, 16 }
 0x1d5   : > { %v3858_v58 = vsel %vm3814_vm4, %v3848_v27, %v3857_v47  ;;  %v3890_v27 = vshll.u32 %v8407_v61, 16 }
 0x1d7   : > { %1560 = vmatmul.mubr.bf16.gmra.mrb[68].mxu1 %v1258_v40  ;;  %3711 = vmatmul.mubr.bf16.gmra.mrb[68].mxu0 %v3409_v41  ;;  %v7333_v40 = vld [vmem:[%s9528_s1 + $0x440] ss:$8 sps:$4 sm:$0xff]   ;;  %v7338_v41 = vld [vmem:[%s9528_s1 + $0x454] ss:$8 sps:$4 sm:$0xff]  }
 0x1d8   : > { %1956 = vmatprep.mubr.bf16.mxu1 %v7550_v2  ;;  %4115 = vmatprep.mubr.bf16.mxu0 %v7550_v2 }
 0x1df   : > { %1957 = vmatmul.mubr.bf16.vlgmr.msra.gmra.mrb[0].mxu1 %v1791_v11  ;;  %4116 = vmatmul.mubr.bf16.vlgmr.msra.gmra.mrb[0].mxu0 %v3831_v17  ;;  %v7344_v11 = vld [vmem:[%s9528_s1 + $0x474] ss:$8 sps:$4 sm:$0xff]   ;;  %v1798_v17 = vrot.slane %v8133_v38, 1  ;;  %v1800_v38 = vrot.slane %v8153_v31, 1 }
 0x1e0   : > { %4526 = vmatpush1.bf16.msra.mxu0 %v7321_v39  ;;  %1966 = vmatprep.mubr.bf16.mxu1 %v7550_v2  ;;  %v3866_v39 = vor.u32 %v3865_v5, %v3862_v21  ;;  %v7534_v5 = vld [vmem:[%s7672_s26 + $0x58] sm:$0xff]  }
 0x1e1   : > { %4125 = vmatprep.mubr.bf16.mxu0 %v7550_v2  ;;  %4527 = vmatprep.subr.bf16.mxu0 %v7326_v42  ;;  %v7342_v42 = vld [vmem:[%s9528_s1 + $0x470] ss:$8 sps:$4 sm:$0xff]   ;;  %v1799_v49 = vsel %vm1221_vm3, %v1796_v44, %v1798_v17  ;;  %v3901_v44 = vrot.slane %v3899_v63, 3  ;;  %v3944_v63 = vshll.u32 %v8461_v6, 16 }
 0x1e2   : > { %v3867_v7 = vsel %vm3814_vm4, %v3857_v47, %v3866_v39  ;;  %v7533_v47 = vld [vmem:[%s7672_s26 + $0x50] sm:$0xff]  }
 0x1e4   : > { %4528 = vmatpush1.bf16.msra.mxu0 %v7324_v18  ;;  %v3875_v18 = vor.u32 %v3874_v1, %v3871_v9 }
 0x1e5   : > { %4529 = vmatprep.subr.bf16.mxu0 %v7329_v15  ;;  %v3878_v15 = vshrl.u32 %v8398_v16, 16 }
 0x1e6   : > { %v3876_v51 = vsel %vm3814_vm4, %v3866_v39, %v3875_v18  ;;  %v3917_v39 = vshll.u32 %v8434_v23, 16 }
 0x1e7   : > { %1967 = vmatmul.mubr.bf16.gmra.mrb[4].mxu1 %v1793_v43  ;;  %4126 = vmatmul.mubr.bf16.gmra.mrb[4].mxu0 %v3840_v46  ;;  %v3881_v43 = vshll.u32 %v8398_v16, 16  ;;  %v1801_v46 = vsel %vm1221_vm3, %v1798_v17, %v1800_v38  ;;  %v3880_v3 = vrot.slane %v3878_v15, 2  ;;  %v3914_v17 = vshrl.u32 %v8434_v23, 16 }
 0x1e8   : > { %1976 = vmatprep.mubr.bf16.mxu1 %v7550_v2  ;;  %4135 = vmatprep.mubr.bf16.mxu0 %v7550_v2 }
 0x1e9   : > { %4530 = vmatpush1.bf16.msra.mxu0 %v7327_v13  ;;  %v3883_v13 = vrot.slane %v3881_v43, 3 }
 0x1ea   : > { %4531 = vmatprep.subr.bf16.mxu0 %v7332_v12  ;;  %v1802_v12 = vrot.slane %v8164_v57, 1  ;;  %v1804_v57 = vrot.slane %v8175_v0, 1  ;;  %v1806_v0 = vrot.slane %v7533_v47, 1  ;;  %v7348_v47 = vld [vmem:[%s9530_s3] sm:$0xff]  }
 0x1eb   : > { %v3884_v31 = vor.u32 %v3883_v13, %v3880_v3  ;;  %v7536_v3 = vld [vmem:[%s7672_s26 + $0x68] sm:$0xff]   ;;  %5138 = vmatpush1.bf16.msra.mxu1 %v7348_v47 }
 0x1ec   : > { %v1803_v48 = vsel %vm1221_vm3, %v1800_v38, %v1802_v12  ;;  %v1805_v37 = vsel %vm1221_vm3, %v1802_v12, %v1804_v57  ;;  %v3923_v38 = vshrl.u32 %v8443_v34, 16  ;;  %v1812_v13 = vrot.slane %v7536_v3, 1  ;;  %5139 = vmatprep.subr.bf16.mxu1 %v7550_v2 }
 0x1ed   : > { %4532 = vmatpush1.bf16.msra.mxu0 %v7330_v50  ;;  %v3885_v25 = vsel %vm3814_vm4, %v3875_v18, %v3884_v31  ;;  %v3889_v50 = vrot.slane %v3887_v22, 2  ;;  %v3926_v18 = vshll.u32 %v8443_v34, 16  ;;  %v3935_v22 = vshll.u32 %v8452_v60, 16 }
 0x1ee   : > { %4533 = vmatprep.subr.bf16.mxu0 %v7335_v29  ;;  %v3892_v29 = vrot.slane %v3890_v27, 3 }
 0x1ef   : > { %1977 = vmatmul.mubr.bf16.gmra.mrb[8].mxu1 %v1795_v52  ;;  %4136 = vmatmul.mubr.bf16.gmra.mrb[8].mxu0 %v3849_v33  ;;  %v3896_v33 = vshrl.u32 %v8416_v28, 16 }
 0x1f0   : > { %1986 = vmatprep.mubr.bf16.mxu1 %v7550_v2  ;;  %4145 = vmatprep.mubr.bf16.mxu0 %v7550_v2  ;;  %v3893_v52 = vor.u32 %v3892_v29, %v3889_v50  ;;  %v3937_v50 = vrot.slane %v3935_v22, 3  ;;  %v7537_v29 = vld [vmem:[%s7672_s26 + $0x70] sm:$0xff]  }
 0x1f1   : > { %4534 = vmatpush1.bf16.msra.mxu0 %v7333_v40  ;;  %v7541_v22 = vld [vmem:[%s7672_s26 + $0x90] sm:$0xff]  }
 0x1f2   : > { %4535 = vmatprep.subr.bf16.mxu0 %v7338_v41  ;;  %v3894_v40 = vsel %vm3814_vm4, %v3884_v31, %v3893_v52  ;;  %v3898_v41 = vrot.slane %v3896_v33, 2  ;;  %v3932_v31 = vshrl.u32 %v8452_v60, 16  ;;  %v3941_v33 = vshrl.u32 %v8461_v6, 16 }
 0x1f4   : > { %v3902_v10 = vor.u32 %v3901_v44, %v3898_v41  ;;  %v3943_v41 = vrot.slane %v3941_v33, 2  ;;  %v3946_v44 = vrot.slane %v3944_v63, 3  ;;  %v7345_v33 = vld [vmem:[%s7672_s26 + $0x98] ss:$0 sps:$4 sm:$0x11]  }
 0x1f5   : > { %4536 = vmatpush1.bf16.msra.mxu0 %v7336_v54  ;;  %v3908_v54 = vshll.u32 %v8425_v56, 16 }
 0x1f6   : > { %4537 = vmatprep.subr.bf16.mxu0 %v7341_v55  ;;  %v1807_v55 = vsel %vm1221_vm3, %v1804_v57, %v1806_v0  ;;  %v1814_v57 = vrot.slane %v7537_v29, 1  ;;  %v7351_v29 = vld [vmem:[%s9530_s3 + $0x18] sm:$0xff]  }
 0x1f7   : > { %1987 = vmatmul.mubr.bf16.gmra.mrb[12].mxu1 %v1797_v30  ;;  %4146 = vmatmul.mubr.bf16.gmra.mrb[12].mxu0 %v3858_v58  ;;  %v3903_v30 = vsel %vm3814_vm4, %v3893_v52, %v3902_v10  ;;  %v3907_v58 = vrot.slane %v3905_v53, 2  ;;  %v3910_v21 = vrot.slane %v3908_v54, 3  ;;  %v3947_v53 = vor.u32 %v3946_v44, %v3943_v41  ;;  %v4368_v44 = vld [vmem:[%s7672_s26 + $0x10] sm:$0x8] }
 0x1f8   : > { %1996 = vmatprep.mubr.bf16.mxu1 %v7550_v2  ;;  %4155 = vmatprep.mubr.bf16.mxu0 %v7550_v2  ;;  %v3950_v54 = vshrl.u32 %v8470_v20, 16 }
 0x1f9   : > { %4538 = vmatpush1.bf16.msra.mxu0 %v7339_v19  ;;  %v1808_v19 = vrot.slane %v7534_v5, 1 }
 0x1fa   : > { %4539 = vmatprep.subr.bf16.mxu0 %v7344_v11  ;;  %v3911_v11 = vor.u32 %v3910_v21, %v3907_v58  ;;  %v3952_v21 = vrot.slane %v3950_v54, 2 }
 0x1fb   : > { %v1809_v36 = vsel %vm1221_vm3, %v1806_v0, %v1808_v19  ;;  %v7538_v0 = vld [vmem:[%s7672_s26 + $0x78] sm:$0xff]  }
 0x1fc   : > { %v3912_v62 = vsel %vm3814_vm4, %v3902_v10, %v3911_v11  ;;  %v1816_v10 = vrot.slane %v7538_v0, 1 }
 0x1fd   : > { %4540 = vmatpush1.bf16.msra.mxu0 %v7342_v42  ;;  %v3916_v42 = vrot.slane %v3914_v17, 2 }
 0x1ff   : > { %1997 = vmatmul.mubr.bf16.gmra.mrb[16].mxu1 %v1799_v49  ;;  %4156 = vmatmul.mubr.bf16.gmra.mrb[16].mxu0 %v3867_v7  ;;  %v3919_v49 = vrot.slane %v3917_v39, 3  ;;  %v7535_v7 = vld [vmem:[%s7672_s26 + $0x60] sm:$0xff]  }
 0x200   : > { %2006 = vmatprep.mubr.bf16.mxu1 %v7550_v2  ;;  %4165 = vmatprep.mubr.bf16.mxu0 %v7550_v2  ;;  %v1810_v9 = vrot.slane %v7535_v7, 1 }
 0x201   : > { %v3920_v1 = vor.u32 %v3919_v49, %v3916_v42 }
 0x202   : > { %v1811_v15 = vsel %vm1221_vm3, %v1808_v19, %v1810_v9  ;;  %v1813_v27 = vsel %vm1221_vm3, %v1810_v9, %v1812_v13  ;;  %v7349_v19 = vld [vmem:[%s9530_s3 + $0x8] sm:$0xff]  }
 0x203   : > { %v3921_v43 = vsel %vm3814_vm4, %v3911_v11, %v3920_v1  ;;  %v7539_v11 = vld [vmem:[%s7672_s26 + $0x80] sm:$0xff]   ;;  %5140 = vmatpush1.bf16.msra.mxu1 %v7349_v19 }
 0x204   : > { %v1818_v17 = vrot.slane %v7539_v11, 1  ;;  %5141 = vmatprep.subr.bf16.mxu1 %v7550_v2  ;;  %v4397_v11 = vrot.slane %v8322_v26, 3  ;;  %v7357_v26 = vld [vmem:[%s9530_s3 + $0x48] sm:$0xff]  }
 0x206   : > { %v1819_v42 = vsel %vm1221_vm3, %v1816_v10, %v1818_v17 }
 0x207   : > { %2007 = vmatmul.mubr.bf16.gmra.mrb[20].mxu1 %v1801_v46  ;;  %4166 = vmatmul.mubr.bf16.gmra.mrb[20].mxu0 %v3876_v51  ;;  %v3925_v46 = vrot.slane %v3923_v38, 2  ;;  %v3928_v51 = vrot.slane %v3926_v18, 3 }
 0x208   : > { %2016 = vmatprep.mubr.bf16.mxu1 %v7550_v2  ;;  %4175 = vmatprep.mubr.bf16.mxu0 %v7550_v2 }
 0x209   : > { %v3929_v12 = vor.u32 %v3928_v51, %v3925_v46  ;;  %v7350_v46 = vld [vmem:[%s9530_s3 + $0x10] sm:$0xff]  }
 0x20a   : > { %5142 = vmatpush1.bf16.msra.mxu1 %v7350_v46 }
 0x20b   : > { %5143 = vmatprep.subr.bf16.mxu1 %v7550_v2 }
 0x20e   : > { %5144 = vmatpush1.bf16.msra.mxu1 %v7351_v29 }
 0x20f   : > { %2017 = vmatmul.mubr.bf16.gmra.mrb[24].mxu1 %v1803_v48  ;;  %4176 = vmatmul.mubr.bf16.gmra.mrb[24].mxu0 %v3885_v25  ;;  %v3930_v48 = vsel %vm3814_vm4, %v3920_v1, %v3929_v12  ;;  %v3934_v25 = vrot.slane %v3932_v31, 2  ;;  %v7540_v1 = vld [vmem:[%s7672_s26 + $0x88] sm:$0xff]   ;;  %v8676_v31 = vld [vmem:[%s7672_s26 + $0xa0] ss:$0 sps:$4 sm:$0x77]  }
 0x210   : > { %2026 = vmatprep.mubr.bf16.mxu1 %v7550_v2  ;;  %4185 = vmatprep.mubr.bf16.mxu0 %v7550_v2  ;;  %v1820_v38 = vrot.slane %v7540_v1, 1  ;;  %v4407_v1 = vrot.slane %v8416_v28, 3 }
 0x211   : > { %v3938_v52 = vor.u32 %v3937_v50, %v3934_v25  ;;  %v3977_v25 = vshrl.u32 %v8676_v31, 16  ;;  %v3980_v50 = vshll.u32 %v8676_v31, 16  ;;  %5145 = vmatprep.subr.bf16.mxu1 %v7550_v2 }
 0x212   : > { %v1821_v51 = vsel %vm1221_vm3, %v1818_v17, %v1820_v38 }
 0x213   : > { %v3948_v58 = vsel %vm3814_vm4, %v3938_v52, %v3947_v53  ;;  %v3979_v63 = vrot.slane %v3977_v25, 2  ;;  %v7362_v25 = vld [vmem:[%s9530_s3 + $0x70] sm:$0xff]  }
 0x217   : > { %2027 = vmatmul.mubr.bf16.gmra.mrb[28].mxu1 %v1805_v37  ;;  %4186 = vmatmul.mubr.bf16.gmra.mrb[28].mxu0 %v3894_v40  ;;  %v1815_v37 = vsel %vm1221_vm3, %v1812_v13, %v1814_v57  ;;  %v3939_v40 = vsel %vm3814_vm4, %v3929_v12, %v3938_v52 }
 0x218   : > { %2036 = vmatprep.mubr.bf16.mxu1 %v7550_v2  ;;  %4195 = vmatprep.mubr.bf16.mxu0 %v7550_v2 }
 0x21f   : > { %2037 = vmatmul.mubr.bf16.gmra.mrb[32].mxu1 %v1807_v55  ;;  %4196 = vmatmul.mubr.bf16.gmra.mrb[32].mxu0 %v3903_v30  ;;  %v3953_v55 = vshll.u32 %v8470_v20, 16  ;;  %v1817_v30 = vsel %vm1221_vm3, %v1814_v57, %v1816_v10  ;;  %v6267_v10 = vcombine.low %v4368_v44, %v8240_v24  ;;  %v7353_v24 = vld [vmem:[%s9530_s3 + $0x28] sm:$0xff]  }
 0x220   : > { %2046 = vmatprep.mubr.bf16.mxu1 %v7550_v2  ;;  %4205 = vmatprep.mubr.bf16.mxu0 %v7550_v2 }
 0x221   : > { %v3955_v5 = vrot.slane %v3953_v55, 3  ;;  %v4390_v54 = vrot.slane %v6267_v10, 3  ;;  %v4391_v55 = vrot.slane %v8248_v32, 3  ;;  %v7354_v32 = vld [vmem:[%s9530_s3 + $0x30] sm:$0xff]  }
 0x223   : > { %v3956_v39 = vor.u32 %v3955_v5, %v3952_v21  ;;  %v4395_v5 = vrot.slane %v8289_v14, 3  ;;  %v7356_v14 = vld [vmem:[%s9530_s3 + $0x40] sm:$0xff]  }
 0x225   : > { %v3957_v49 = vsel %vm3814_vm4, %v3947_v53, %v3956_v39  ;;  %v7352_v53 = vld [vmem:[%s9530_s3 + $0x20] sm:$0xff]   ;;  %v4398_v17 = vsel %vm4389_vm5, %v4395_v5, %v4397_v11 }
 0x226   : > { %5146 = vmatpush1.bf16.msra.mxu1 %v7352_v53 }
 0x227   : > { %2047 = vmatmul.mubr.bf16.gmra.mrb[36].mxu1 %v1809_v36  ;;  %4206 = vmatmul.mubr.bf16.gmra.mrb[36].mxu0 %v3912_v62  ;;  %v3959_v36 = vshrl.u32 %v8479_v35, 16  ;;  %v3962_v62 = vshll.u32 %v8479_v35, 16 }
 0x228   : > { %2056 = vmatprep.mubr.bf16.mxu1 %v7550_v2  ;;  %4215 = vmatprep.mubr.bf16.mxu0 %v7550_v2 }
 0x229   : > { %v3961_v7 = vrot.slane %v3959_v36, 2  ;;  %v3964_v9 = vrot.slane %v3962_v62, 3  ;;  %5147 = vmatprep.subr.bf16.mxu1 %v7550_v2  ;;  %v4401_v62 = vrot.slane %v8388_v59, 3  ;;  %v4405_v59 = vrot.slane %v8407_v61, 3  ;;  %v7360_v61 = vld [vmem:[%s9530_s3 + $0x60] sm:$0xff]  }
 0x22a   : > { %5148 = vmatpush1.bf16.msra.mxu1 %v7353_v24 }
 0x22b   : > { %v3965_v18 = vor.u32 %v3964_v9, %v3961_v7  ;;  %5149 = vmatprep.subr.bf16.mxu1 %v7550_v2  ;;  %v7359_v9 = vld [vmem:[%s9530_s3 + $0x58] sm:$0xff]  }
 0x22d   : > { %v3966_v3 = vsel %vm3814_vm4, %v3956_v39, %v3965_v18  ;;  %v4399_v39 = vrot.slane %v8355_v4, 3  ;;  %v4403_v4 = vrot.slane %v8398_v16, 3 }
 0x22e   : > { %5150 = vmatpush1.bf16.msra.mxu1 %v7354_v32 }
 0x22f   : > { %2057 = vmatmul.mubr.bf16.gmra.mrb[40].mxu1 %v1811_v15  ;;  %4216 = vmatmul.mubr.bf16.gmra.mrb[40].mxu0 %v3921_v43  ;;  %v3968_v15 = vshrl.u32 %v8488_v8, 16  ;;  %v3971_v43 = vshll.u32 %v8488_v8, 16  ;;  %v4400_v36 = vsel %vm4389_vm5, %v4397_v11, %v4399_v39  ;;  %v4404_v7 = vsel %vm4389_vm5, %v4401_v62, %v4403_v4 }
 0x230   : > { %2066 = vmatprep.mubr.bf16.mxu1 %v7550_v2  ;;  %4225 = vmatprep.mubr.bf16.mxu0 %v7550_v2  ;;  %v4406_v16 = vsel %vm4389_vm5, %v4403_v4, %v4405_v59 }
 0x231   : > { %v3970_v13 = vrot.slane %v3968_v15, 2  ;;  %v3973_v12 = vrot.slane %v3971_v43, 3  ;;  %5151 = vmatprep.subr.bf16.mxu1 %v7550_v2 }
 0x237   : > { %2067 = vmatmul.mubr.bf16.gmra.mrb[44].mxu1 %v1813_v27  ;;  %4226 = vmatmul.mubr.bf16.gmra.mrb[44].mxu0 %v3930_v48  ;;  %v1822_v27 = vrot.slane %v7541_v22, 1  ;;  %v3974_v48 = vor.u32 %v3973_v12, %v3970_v13 }
 0x238   : > { %2076 = vmatprep.mubr.bf16.mxu1 %v7550_v2  ;;  %4235 = vmatprep.mubr.bf16.mxu0 %v7550_v2 }
 0x239   : > { %v1823_v57 = vsel %vm1221_vm3, %v1820_v38, %v1822_v27  ;;  %v3975_v52 = vsel %vm3814_vm4, %v3965_v18, %v3974_v48  ;;  %v4408_v38 = vsel %vm4389_vm5, %v4405_v59, %v4407_v1  ;;  %v4409_v18 = vrot.slane %v8425_v56, 3 }
 0x23a   : > { %v4411_v56 = vrot.slane %v8434_v23, 3  ;;  %v4413_v23 = vrot.slane %v8443_v34, 3  ;;  %v7363_v34 = vld [vmem:[%s9530_s3 + $0x78] sm:$0xff]  }
 0x23b   : > { %v4410_v28 = vsel %vm4389_vm5, %v4407_v1, %v4409_v18 }
 0x23f   : > { %2077 = vmatmul.mubr.bf16.gmra.mrb[48].mxu1 %v1815_v37  ;;  %4236 = vmatmul.mubr.bf16.gmra.mrb[48].mxu0 %v3939_v40  ;;  %v3982_v37 = vrot.slane %v3980_v50, 3  ;;  %v1824_v40 = vrot.slane %v7345_v33, 1 }
 0x240   : > { %2086 = vmatprep.mubr.bf16.mxu1 %v7550_v2  ;;  %4245 = vmatprep.mubr.bf16.mxu0 %v7550_v2 }
 0x241   : > { %v3983_v41 = vor.u32 %v3982_v37, %v3979_v63  ;;  %v1825_v47 = vsel %vm1221_vm3, %v1822_v27, %v1824_v40  ;;  %v4412_v27 = vsel %vm4389_vm5, %v4409_v18, %v4411_v56  ;;  %v4415_v63 = vrot.slane %v8452_v60, 3 }
 0x242   : > { %v4417_v60 = vrot.slane %v8461_v6, 3 }
 0x243   : > { %v3984_v0 = vsel %vm3814_vm4, %v3974_v48, %v3983_v41  ;;  %v4416_v44 = vsel %vm4389_vm5, %v4413_v23, %v4415_v63 }
 0x247   : > { %2087 = vmatmul.mubr.bf16.gmra.mrb[52].mxu1 %v1817_v30  ;;  %4246 = vmatmul.mubr.bf16.gmra.mrb[52].mxu0 %v3948_v58  ;;  %v4392_v30 = vsel %vm4389_vm5, %v4390_v54, %v4391_v55  ;;  %v4393_v58 = vrot.slane %v8262_v45, 3  ;;  %v7355_v45 = vld [vmem:[%s9530_s3 + $0x38] sm:$0xff]   ;;  %v4418_v54 = vsel %vm4389_vm5, %v4415_v63, %v4417_v60 }
 0x248   : > { %2096 = vmatprep.mubr.bf16.mxu1 %v7550_v2  ;;  %4255 = vmatprep.mubr.bf16.mxu0 %v7550_v2 }
 0x249   : > { %v4394_v21 = vsel %vm4389_vm5, %v4391_v55, %v4393_v58  ;;  %v4396_v19 = vsel %vm4389_vm5, %v4393_v58, %v4395_v5  ;;  %5152 = vmatpush1.bf16.msra.mxu1 %v7355_v45  ;;  %v4421_v5 = vrot.slane %v8479_v35, 3 }
 0x24a   : > { %5153 = vmatprep.subr.bf16.mxu1 %v7550_v2 }
 0x24d   : > { %5154 = vmatpush1.bf16.msra.mxu1 %v7356_v14  ;;  %v4423_v14 = vrot.slane %v8488_v8, 3 }
 0x24e   : > { %5155 = vmatprep.subr.bf16.mxu1 %v7550_v2 }
 0x24f   : > { %2097 = vmatmul.mubr.bf16.gmra.mrb[56].mxu1 %v1819_v42  ;;  %4256 = vmatmul.mubr.bf16.gmra.mrb[56].mxu0 %v3957_v49  ;;  %v4402_v42 = vsel %vm4389_vm5, %v4399_v39, %v4401_v62  ;;  %v7358_v49 = vld [vmem:[%s9530_s3 + $0x50] sm:$0xff]  }
 0x250   : > { %2106 = vmatprep.mubr.bf16.mxu1 %v7550_v2  ;;  %4265 = vmatprep.mubr.bf16.mxu0 %v7550_v2 }
 0x251   : > { %5156 = vmatpush1.bf16.msra.mxu1 %v7357_v26  ;;  %v4424_v26 = vsel %vm4389_vm5, %v4421_v5, %v4423_v14 }
 0x252   : > { %5157 = vmatprep.subr.bf16.mxu1 %v7550_v2 }
 0x255   : > { %5158 = vmatpush1.bf16.msra.mxu1 %v7358_v49 }
 0x256   : > { %5159 = vmatprep.subr.bf16.mxu1 %v7550_v2 }
 0x257   : > { %2107 = vmatmul.mubr.bf16.gmra.mrb[60].mxu1 %v1821_v51  ;;  %4266 = vmatmul.mubr.bf16.gmra.mrb[60].mxu0 %v3966_v3  ;;  %v7361_v3 = vld [vmem:[%s9530_s3 + $0x68] sm:$0xff]  }
 0x258   : > { %2116 = vmatprep.mubr.bf16.mxu1 %v7550_v2  ;;  %4275 = vmatprep.mubr.bf16.mxu0 %v7550_v2 }
 0x259   : > { %5160 = vmatpush1.bf16.msra.mxu1 %v7359_v9 }
 0x25a   : > { %5161 = vmatprep.subr.bf16.mxu1 %v7550_v2 }
 0x25d   : > { %5162 = vmatpush1.bf16.msra.mxu1 %v7360_v61 }
 0x25e   : > { %5163 = vmatprep.subr.bf16.mxu1 %v7550_v2 }
 0x25f   : > { %2117 = vmatmul.mubr.bf16.gmra.mrb[64].mxu1 %v1823_v57  ;;  %4276 = vmatmul.mubr.bf16.gmra.mrb[64].mxu0 %v3975_v52  ;;  %v4414_v52 = vsel %vm4389_vm5, %v4411_v56, %v4413_v23 }
 0x260   : > { %2126 = vmatprep.mubr.bf16.mxu1 %v7550_v2  ;;  %4285 = vmatprep.mubr.bf16.mxu0 %v7550_v2 }
 0x261   : > { %5164 = vmatpush1.bf16.msra.mxu1 %v7361_v3 }
 0x262   : > { %5165 = vmatprep.subr.bf16.mxu1 %v7550_v2 }
 0x265   : > { %5166 = vmatpush1.bf16.msra.mxu1 %v7362_v25 }
 0x266   : > { %5167 = vmatprep.subr.bf16.mxu1 %v7550_v2 }
 0x267   : > { %2127 = vmatmul.mubr.bf16.gmra.mrb[68].mxu1 %v1825_v47  ;;  %4286 = vmatmul.mubr.bf16.gmra.mrb[68].mxu0 %v3984_v0 }
 0x268   : > { %4557 = vmatprep.mubr.bf16.mxu0 %v7550_v2 }
 0x269   : > { %5168 = vmatpush1.bf16.msra.mxu1 %v7363_v34 }
 0x26f   : > { %4558 = vmatmul.mubr.bf16.vlgmr.msra.gmra.mrb[0].mxu0 %v4392_v30  ;;  %v4419_v30 = vrot.slane %v8470_v20, 3 }
 0x270   : > { %4567 = vmatprep.mubr.bf16.mxu0 %v7550_v2 }
 0x271   : > { %v4422_v11 = vsel %vm4389_vm5, %v4419_v30, %v4421_v5 }
 0x277   : > { %4568 = vmatmul.mubr.bf16.gmra.mrb[4].mxu0 %v4394_v21  ;;  %v4420_v21 = vsel %vm4389_vm5, %v4417_v60, %v4419_v30 }
 0x278   : > { %4577 = vmatprep.mubr.bf16.mxu0 %v7550_v2 }
 0x27f   : > { %4578 = vmatmul.mubr.bf16.gmra.mrb[8].mxu0 %v4396_v19 }
 0x280   : > { %4587 = vmatprep.mubr.bf16.mxu0 %v7550_v2 }
 0x287   : > { %4588 = vmatmul.mubr.bf16.gmra.mrb[12].mxu0 %v4398_v17 }
 0x288   : > { %4597 = vmatprep.mubr.bf16.mxu0 %v7550_v2 }
 0x28f   : > { %4598 = vmatmul.mubr.bf16.gmra.mrb[16].mxu0 %v4400_v36 }
 0x290   : > { %4607 = vmatprep.mubr.bf16.mxu0 %v7550_v2 }
 0x297   : > { %4608 = vmatmul.mubr.bf16.gmra.mrb[20].mxu0 %v4402_v42  ;;  %v4425_v42 = vrot.slane %v8676_v31, 3 }
 0x298   : > { %4617 = vmatprep.mubr.bf16.mxu0 %v7550_v2 }
 0x29f   : > { %4618 = vmatmul.mubr.bf16.gmra.mrb[24].mxu0 %v4404_v7  ;;  %v4426_v7 = vsel %vm4389_vm5, %v4423_v14, %v4425_v42 }
 0x2a0   : > { %4627 = vmatprep.mubr.bf16.mxu0 %v7550_v2 }
 0x2a7   : > { %4628 = vmatmul.mubr.bf16.gmra.mrb[28].mxu0 %v4406_v16 }
 0x2a8   : > { %4637 = vmatprep.mubr.bf16.mxu0 %v7550_v2 }
 0x2af   : > { %4638 = vmatmul.mubr.bf16.gmra.mrb[32].mxu0 %v4408_v38 }
 0x2b0   : > { %4647 = vmatprep.mubr.bf16.mxu0 %v7550_v2 }
 0x2b2   : > { %v8762_v15 = vpop.f32.mrb[0].mxu1 }
 0x2b3   : > { %v8764_v43 = vpop.f32.mrb[1].mxu1 }
 0x2b4   : > { %v8766_v46 = vpop.f32.mrb[2].mxu1 }
 0x2b5   : > { %v8769_v51 = vpop.f32.mrb[3].mxu1 }
 0x2b7   : > { %4648 = vmatmul.mubr.bf16.gmra.mrb[36].mxu0 %v4410_v28 }
 0x2b8   : > { %4657 = vmatprep.mubr.bf16.mxu0 %v7550_v2 }
 0x2ba   : > { %v8777_v13 = vpop.f32.mrb[4].mxu1 }
 0x2bb   : > { %v8779_v12 = vpop.f32.mrb[5].mxu1 }
 0x2bc   : > { %v8781_v22 = vpop.f32.mrb[6].mxu1 }
 0x2bd   : > { %v8784_v48 = vpop.f32.mrb[7].mxu1 }
 0x2bf   : > { %4658 = vmatmul.mubr.bf16.gmra.mrb[40].mxu0 %v4412_v27 }
 0x2c0   : > { %4667 = vmatprep.mubr.bf16.mxu0 %v7550_v2 }
 0x2c2   : > { %v8792_v50 = vpop.f32.mrb[8].mxu1 }
 0x2c3   : > { %v8794_v29 = vpop.f32.mrb[9].mxu1 }
 0x2c4   : > { %v8796_v57 = vpop.f32.mrb[10].mxu1 }
 0x2c5   : > { %v8799_v33 = vpop.f32.mrb[11].mxu1 }
 0x2c7   : > { %4668 = vmatmul.mubr.bf16.gmra.mrb[44].mxu0 %v4414_v52 }
 0x2c8   : > { %4677 = vmatprep.mubr.bf16.mxu0 %v7550_v2 }
 0x2ca   : > { %v8803_v37 = vpop.f32.mrb[12].mxu1 }
 0x2cb   : > { %v8808_v40 = vpop.f32.mrb[13].mxu1 }
 0x2cc   : > { %v8810_v41 = vpop.f32.mrb[14].mxu1 }
 0x2cd   : > { %v8813_v47 = vpop.f32.mrb[15].mxu1 }
 0x2cf   : > { %4678 = vmatmul.mubr.bf16.gmra.mrb[48].mxu0 %v4416_v44 }
 0x2d0   : > { %4687 = vmatprep.mubr.bf16.mxu0 %v7550_v2 }
 0x2d2   : > { %v8817_v0 = vpop.f32.mrb[16].mxu1 }
 0x2d3   : > { %v8819_v10 = vpop.f32.mrb[17].mxu1 }
 0x2d4   : > { %v8821_v53 = vpop.f32.mrb[18].mxu1 }
 0x2d5   : > { %v8824_v55 = vpop.f32.mrb[19].mxu1 }
 0x2d7   : > { %4688 = vmatmul.mubr.bf16.gmra.mrb[52].mxu0 %v4418_v54 }
 0x2d8   : > { %4697 = vmatprep.mubr.bf16.mxu0 %v7550_v2 }
 0x2da   : > { %v8828_v24 = vpop.f32.mrb[20].mxu1 }
 0x2db   : > { %v8830_v58 = vpop.f32.mrb[21].mxu1 }
 0x2dc   : > { %v8832_v6 = vpop.f32.mrb[22].mxu1 }
 0x2dd   : > { %v8835_v32 = vpop.f32.mrb[23].mxu1 }
 0x2df   : > { %4698 = vmatmul.mubr.bf16.gmra.mrb[56].mxu0 %v4420_v21 }
 0x2e0   : > { %4707 = vmatprep.mubr.bf16.mxu0 %v7550_v2 }
 0x2e2   : > { %v8839_v19 = vpop.f32.mrb[24].mxu1 }
 0x2e3   : > { %v8841_v45 = vpop.f32.mrb[25].mxu1 }
 0x2e4   : > { %v8843_v20 = vpop.f32.mrb[26].mxu1 }
 0x2e5   : > { %v8846_v17 = vpop.f32.mrb[27].mxu1 }
 0x2e7   : > { %4708 = vmatmul.mubr.bf16.gmra.mrb[60].mxu0 %v4422_v11 }
 0x2e8   : > { %4717 = vmatprep.mubr.bf16.mxu0 %v7550_v2 }
 0x2ea   : > { %v8850_v39 = vpop.f32.mrb[28].mxu1 }
 0x2eb   : > { %v8852_v36 = vpop.f32.mrb[29].mxu1 }
 0x2ec   : > { %v8854_v35 = vpop.f32.mrb[30].mxu1 }
 0x2ed   : > { %v8857_v62 = vpop.f32.mrb[31].mxu1 }
 0x2ef   : > { %4718 = vmatmul.mubr.bf16.gmra.mrb[64].mxu0 %v4424_v26 }
 0x2f0   : > { %4727 = vmatprep.mubr.bf16.mxu0 %v7550_v2 }
 0x2f2   : > { %v8861_v4 = vpop.f32.mrb[32].mxu1 }
 0x2f3   : > { %v8863_v49 = vpop.f32.mrb[33].mxu1 }
 0x2f4   : > { %v8865_v8 = vpop.f32.mrb[34].mxu1 }
 0x2f5   : > { %v8868_v59 = vpop.f32.mrb[35].mxu1 }
 0x2f7   : > { %4728 = vmatmul.mubr.bf16.gmra.mrb[68].mxu0 %v4426_v7 }
 0x2fa   : > { %v8870_v9 = vpop.f32.mrb[36].mxu1 }
 0x2fb   : > { %v8872_v16 = vpop.f32.mrb[37].mxu1 }
 0x2fc   : > { %v8874_v1 = vpop.f32.mrb[38].mxu1 }
 0x2fd   : > { %v8876_v2 = vpop.f32.mrb[39].mxu1 }
 0x302   : > { %v8878_v31 = vpop.f32.mrb[40].mxu1 }
 0x303   : > { %v8880_v38 = vpop.f32.mrb[41].mxu1 }
 0x304   : > { %v8882_v61 = vpop.f32.mrb[42].mxu1 }
 0x305   : > { %v8884_v18 = vpop.f32.mrb[43].mxu1 }
 0x30a   : > { %v8886_v28 = vpop.f32.mrb[44].mxu1 }
 0x30b   : > { %v8888_v3 = vpop.f32.mrb[45].mxu1 }
 0x30c   : > { %v8890_v56 = vpop.f32.mrb[46].mxu1 }
 0x30d   : > { %9534 = vst [vmem:[#allocation2_spill] sm:$0xff] %v8890_v56  ;;  %v8892_v27 = vpop.f32.mrb[47].mxu1 }
 0x30e   : > { %9535 = vst [vmem:[#allocation3_spill] sm:$0xff] %v8892_v27 }
 0x312   : > { %v8894_v25 = vpop.f32.mrb[48].mxu1 }
 0x313   : > { %9536 = vst [vmem:[#allocation4_spill] sm:$0xff] %v8894_v25  ;;  %v8896_v23 = vpop.f32.mrb[49].mxu1 }
 0x314   : > { %9537 = vst [vmem:[#allocation5_spill] sm:$0xff] %v8896_v23  ;;  %v8898_v52 = vpop.f32.mrb[50].mxu1 }
 0x315   : > { %9538 = vst [vmem:[#allocation6_spill] sm:$0xff] %v8898_v52  ;;  %v8900_v63 = vpop.f32.mrb[51].mxu1 }
 0x316   : > { %9539 = vst [vmem:[#allocation7_spill] sm:$0xff] %v8900_v63 }
 0x31a   : > { %v8902_v34 = vpop.f32.mrb[52].mxu1 }
 0x31b   : > { %9540 = vst [vmem:[#allocation8_spill] sm:$0xff] %v8902_v34  ;;  %v8904_v44 = vpop.f32.mrb[53].mxu1 }
 0x31c   : > { %9541 = vst [vmem:[#allocation9_spill] sm:$0xff] %v8904_v44  ;;  %v8906_v60 = vpop.f32.mrb[54].mxu1 }
 0x31d   : > { %9542 = vst [vmem:[#allocation10_spill] sm:$0xff] %v8906_v60  ;;  %v8908_v54 = vpop.f32.mrb[55].mxu1 }
 0x31e   : > { %9543 = vst [vmem:[#allocation11_spill] sm:$0xff] %v8908_v54 }
 0x322   : > { %v8910_v30 = vpop.f32.mrb[56].mxu1 }
 0x323   : > { %9544 = vst [vmem:[#allocation12_spill] sm:$0xff] %v8910_v30  ;;  %v8912_v21 = vpop.f32.mrb[57].mxu1 }
 0x324   : > { %9545 = vst [vmem:[#allocation13_spill] sm:$0xff] %v8912_v21  ;;  %v8914_v5 = vpop.f32.mrb[58].mxu1  ;;  %v4812_v21 = vlaneseq }
 0x325   : > { %9546 = vst [vmem:[#allocation14_spill] sm:$0xff] %v8914_v5  ;;  %v8916_v11 = vpop.f32.mrb[59].mxu1 }
 0x326   : > { %9547 = vst [vmem:[#allocation15_spill] sm:$0xff] %v8916_v11  ;;  %v4813_v5 = vshrl.u32 %v4812_v21, 7 }
 0x32a   : > { %v8918_v14 = vpop.f32.mrb[60].mxu1 }
 0x32b   : > { %9548 = vst [vmem:[#allocation16_spill] sm:$0xff] %v8918_v14  ;;  %v8920_v26 = vpop.f32.mrb[61].mxu1 }
 0x32c   : > { %9549 = vst [vmem:[#allocation17_spill] sm:$0xff] %v8920_v26  ;;  %v8922_v42 = vpop.f32.mrb[62].mxu1 }
 0x32d   : > { %9550 = vst [vmem:[#allocation18_spill] sm:$0xff] %v8922_v42  ;;  %v8924_v7 = vpop.f32.mrb[63].mxu1  ;;  %v4814_v42 = vsub.s32 0, %v4813_v5 }
 0x32e   : > { %9551 = vst [vmem:[#allocation19_spill] sm:$0xff] %v8924_v7 }
 0x332   : > { %v8926_v44 = vpop.f32.mrb[64].mxu1 }
 0x333   : > { %9552 = vst [vmem:[#allocation20_spill] sm:$0xff] %v8926_v44  ;;  %v8928_v60 = vpop.f32.mrb[65].mxu1  ;;  %v4810_v44 = vld [vmem:[%s9529_s2] sm:$0x3] }
 0x334   : > { %9553 = vst [vmem:[#allocation21_spill] sm:$0xff] %v8928_v60  ;;  %v8930_v54 = vpop.f32.mrb[66].mxu1  ;;  %v4818_v60 = vsub.s32 1, %v4813_v5  ;;  %v8945_v7 = vrot.slane %v4810_v44, %v4814_v42 }
 0x335   : > { %9554 = vst [vmem:[#allocation22_spill] sm:$0xff] %v8930_v54  ;;  %v8932_v30 = vpop.f32.mrb[67].mxu1 }
 0x336   : > { %9555 = vst [vmem:[#allocation23_spill] sm:$0xff] %v8932_v30  ;;  %v8947_v30 = vrot.slane %v4810_v44, %v4818_v60 }
 0x33a   : > { %v8934_v34 = vpop.f32.mrb[68].mxu1 }
 0x33b   : > { %9556 = vst [vmem:[#allocation24_spill] sm:$0xff] %v8934_v34  ;;  %v8936_v11 = vpop.f32.mrb[69].mxu1 }
 0x33c   : > { %9557 = vst [vmem:[#allocation25_spill] sm:$0xff] %v8936_v11  ;;  %v8938_v14 = vpop.f32.mrb[70].mxu1 }
 0x33d   : > { %9558 = vst [vmem:[#allocation26_spill] sm:$0xff] %v8938_v14  ;;  %v8940_v26 = vpop.f32.mrb[71].mxu1 }
 0x33e   : > { %9559 = vst [vmem:[#allocation27_spill] sm:$0xff] %v8940_v26 }
 0x342   : > { %v4559_v54 = vpop.f32.mrb[0].mxu0 }
 0x343   : > { %v6482_v21 = vadd.f32 %v4559_v54, %v8762_v15  ;;  %v4561_v34 = vpop.f32.mrb[1].mxu0 }
 0x344   : > { %v6483_v11 = vadd.f32 %v4561_v34, %v8764_v43  ;;  %v4563_v63 = vpop.f32.mrb[2].mxu0 }
 0x345   : > { %v4822_v14 = vadd.f32 %v6482_v21, %v8945_v7  ;;  %v6484_v26 = vadd.f32 %v4563_v63, %v8766_v46  ;;  %v4565_v52 = vpop.f32.mrb[3].mxu0 }
 0x346   : > { %v4823_v23 = vadd.f32 %v6483_v11, %v8947_v30  ;;  %v6485_v5 = vadd.f32 %v4565_v52, %v8769_v51 }
 0x347   : > { %v4824_v42 = vadd.f32 %v6484_v26, %v8945_v7  ;;  %v4894_v60 = vmax.f32 %v4822_v14, 0.0 }
 0x348   : > { %v4825_v44 = vadd.f32 %v6485_v5, %v8947_v30  ;;  %v4895_v15 = vmax.f32 %v4823_v23, 0.0 }
 0x349   : > { %v4896_v25 = vmax.f32 %v4824_v42, 0.0 }
 0x34a   : > { %v4897_v54 = vmax.f32 %v4825_v44, 0.0  ;;  %v4569_v27 = vpop.f32.mrb[4].mxu0 }
 0x34b   : > { %v4966_v43 = vpack.c.bf16 %v4896_v25, %v4894_v60  ;;  %v6486_v34 = vadd.f32 %v4569_v27, %v8777_v13  ;;  %v4571_v21 = vpop.f32.mrb[5].mxu0 }
 0x34c   : > { %v6487_v46 = vadd.f32 %v4571_v21, %v8779_v12  ;;  %v4573_v63 = vpop.f32.mrb[6].mxu0  ;;  %v4967_v56 = vpack.c.bf16 %v4897_v54, %v4895_v15 }
 0x34d   : > { %v4826_v11 = vadd.f32 %v6486_v34, %v8945_v7  ;;  %v6488_v51 = vadd.f32 %v4573_v63, %v8781_v22  ;;  %v4575_v52 = vpop.f32.mrb[7].mxu0 }
 0x34e   : > { %v4827_v26 = vadd.f32 %v6487_v46, %v8947_v30  ;;  %v6489_v14 = vadd.f32 %v4575_v52, %v8784_v48  ;;  %5169 = vmatprep.mubr.bf16.mxu1 %v4967_v56 }
 0x34f   : > { %v4828_v23 = vadd.f32 %v6488_v51, %v8945_v7  ;;  %5170 = vmatmul.mubr.bf16.vlgmr.msra.gmra.mrb[72].mxu1 %v4966_v43  ;;  %v4898_v27 = vmax.f32 %v4826_v11, 0.0 }
 0x350   : > { %v4829_v13 = vadd.f32 %v6489_v14, %v8947_v30  ;;  %v4899_v12 = vmax.f32 %v4827_v26, 0.0 }
 0x351   : > { %v4900_v25 = vmax.f32 %v4828_v23, 0.0 }
 0x352   : > { %v4901_v5 = vmax.f32 %v4829_v13, 0.0  ;;  %v4579_v42 = vpop.f32.mrb[8].mxu0 }
 0x353   : > { %v6490_v44 = vadd.f32 %v4579_v42, %v8792_v50  ;;  %v4581_v60 = vpop.f32.mrb[9].mxu0  ;;  %v4968_v22 = vpack.c.bf16 %v4900_v25, %v4898_v27 }
 0x354   : > { %v6491_v15 = vadd.f32 %v4581_v60, %v8794_v29  ;;  %v4583_v54 = vpop.f32.mrb[10].mxu0  ;;  %v4969_v34 = vpack.c.bf16 %v4901_v5, %v4899_v12 }
 0x355   : > { %v4830_v48 = vadd.f32 %v6490_v44, %v8945_v7  ;;  %v6492_v56 = vadd.f32 %v4583_v54, %v8796_v57  ;;  %v4585_v43 = vpop.f32.mrb[11].mxu0 }
 0x356   : > { %v4831_v21 = vadd.f32 %v6491_v15, %v8947_v30  ;;  %v6493_v46 = vadd.f32 %v4585_v43, %v8799_v33  ;;  %5177 = vmatprep.mubr.bf16.mxu1 %v4969_v34 }
 0x357   : > { %v4832_v63 = vadd.f32 %v6492_v56, %v8945_v7  ;;  %5178 = vmatmul.mubr.bf16.gmra.mrb[76].mxu1 %v4968_v22  ;;  %v4902_v11 = vmax.f32 %v4830_v48, 0.0 }
 0x358   : > { %v4833_v50 = vadd.f32 %v6493_v46, %v8947_v30  ;;  %v4903_v29 = vmax.f32 %v4831_v21, 0.0 }
 0x359   : > { %v4904_v51 = vmax.f32 %v4832_v63, 0.0 }
 0x35a   : > { %v4905_v52 = vmax.f32 %v4833_v50, 0.0  ;;  %v4589_v26 = vpop.f32.mrb[12].mxu0 }
 0x35b   : > { %v6494_v14 = vadd.f32 %v4589_v26, %v8803_v37  ;;  %v4591_v23 = vpop.f32.mrb[13].mxu0  ;;  %v4970_v57 = vpack.c.bf16 %v4904_v51, %v4902_v11 }
 0x35c   : > { %v6495_v13 = vadd.f32 %v4591_v23, %v8808_v40  ;;  %v4593_v27 = vpop.f32.mrb[14].mxu0  ;;  %v4971_v25 = vpack.c.bf16 %v4905_v52, %v4903_v29 }
 0x35d   : > { %v4834_v33 = vadd.f32 %v6494_v14, %v8945_v7  ;;  %v6496_v12 = vadd.f32 %v4593_v27, %v8810_v41  ;;  %v4595_v5 = vpop.f32.mrb[15].mxu0 }
 0x35e   : > { %v4835_v42 = vadd.f32 %v6495_v13, %v8947_v30  ;;  %v6497_v44 = vadd.f32 %v4595_v5, %v8813_v47  ;;  %5185 = vmatprep.mubr.bf16.mxu1 %v4971_v25 }
 0x35f   : > { %v4836_v60 = vadd.f32 %v6496_v12, %v8945_v7  ;;  %5186 = vmatmul.mubr.bf16.gmra.mrb[80].mxu1 %v4970_v57  ;;  %v4906_v22 = vmax.f32 %v4834_v33, 0.0 }
 0x360   : > { %v4837_v37 = vadd.f32 %v6497_v44, %v8947_v30  ;;  %v4907_v40 = vmax.f32 %v4835_v42, 0.0 }
 0x361   : > { %v4908_v15 = vmax.f32 %v4836_v60, 0.0 }
 0x362   : > { %v4909_v54 = vmax.f32 %v4837_v37, 0.0  ;;  %v4599_v34 = vpop.f32.mrb[16].mxu0 }
 0x363   : > { %v6498_v48 = vadd.f32 %v4599_v34, %v8817_v0  ;;  %v4601_v56 = vpop.f32.mrb[17].mxu0  ;;  %v4972_v41 = vpack.c.bf16 %v4908_v15, %v4906_v22 }
 0x364   : > { %v6499_v43 = vadd.f32 %v4601_v56, %v8819_v10  ;;  %v4603_v21 = vpop.f32.mrb[18].mxu0  ;;  %v4973_v46 = vpack.c.bf16 %v4909_v54, %v4907_v40 }
 0x365   : > { %v4838_v47 = vadd.f32 %v6498_v48, %v8945_v7  ;;  %v6500_v63 = vadd.f32 %v4603_v21, %v8821_v53  ;;  %v4605_v50 = vpop.f32.mrb[19].mxu0 }
 0x366   : > { %v4839_v11 = vadd.f32 %v6499_v43, %v8947_v30  ;;  %v6501_v51 = vadd.f32 %v4605_v50, %v8824_v55  ;;  %5193 = vmatprep.mubr.bf16.mxu1 %v4973_v46 }
 0x367   : > { %v4840_v29 = vadd.f32 %v6500_v63, %v8945_v7  ;;  %5194 = vmatmul.mubr.bf16.gmra.mrb[84].mxu1 %v4972_v41  ;;  %v4910_v52 = vmax.f32 %v4838_v47, 0.0 }
 0x368   : > { %v4841_v0 = vadd.f32 %v6501_v51, %v8947_v30  ;;  %v4911_v10 = vmax.f32 %v4839_v11, 0.0 }
 0x369   : > { %v4912_v26 = vmax.f32 %v4840_v29, 0.0 }
 0x36a   : > { %v4913_v14 = vmax.f32 %v4841_v0, 0.0  ;;  %v4609_v23 = vpop.f32.mrb[20].mxu0 }
 0x36b   : > { %v6502_v57 = vadd.f32 %v4609_v23, %v8828_v24  ;;  %v4611_v13 = vpop.f32.mrb[21].mxu0  ;;  %v4974_v53 = vpack.c.bf16 %v4912_v26, %v4910_v52 }
 0x36c   : > { %v6503_v27 = vadd.f32 %v4611_v13, %v8830_v58  ;;  %v4613_v25 = vpop.f32.mrb[22].mxu0  ;;  %v4975_v33 = vpack.c.bf16 %v4913_v14, %v4911_v10 }
 0x36d   : > { %v4842_v55 = vadd.f32 %v6502_v57, %v8945_v7  ;;  %v6504_v12 = vadd.f32 %v4613_v25, %v8832_v6  ;;  %v4615_v5 = vpop.f32.mrb[23].mxu0 }
 0x36e   : > { %v4843_v42 = vadd.f32 %v6503_v27, %v8947_v30  ;;  %v6505_v44 = vadd.f32 %v4615_v5, %v8835_v32  ;;  %5201 = vmatprep.mubr.bf16.mxu1 %v4975_v33 }
 0x36f   : > { %v4844_v60 = vadd.f32 %v6504_v12, %v8945_v7  ;;  %5202 = vmatmul.mubr.bf16.gmra.mrb[88].mxu1 %v4974_v53  ;;  %v4914_v37 = vmax.f32 %v4842_v55, 0.0 }
 0x370   : > { %v4845_v24 = vadd.f32 %v6505_v44, %v8947_v30  ;;  %v4915_v58 = vmax.f32 %v4843_v42, 0.0 }
 0x371   : > { %v4916_v22 = vmax.f32 %v4844_v60, 0.0 }
 0x372   : > { %v4917_v15 = vmax.f32 %v4845_v24, 0.0  ;;  %v4619_v40 = vpop.f32.mrb[24].mxu0 }
 0x373   : > { %v6506_v54 = vadd.f32 %v4619_v40, %v8839_v19  ;;  %v4621_v34 = vpop.f32.mrb[25].mxu0  ;;  %v4976_v6 = vpack.c.bf16 %v4916_v22, %v4914_v37 }
 0x374   : > { %v6507_v48 = vadd.f32 %v4621_v34, %v8841_v45  ;;  %v4623_v56 = vpop.f32.mrb[26].mxu0  ;;  %v4977_v41 = vpack.c.bf16 %v4917_v15, %v4915_v58 }
 0x375   : > { %v4846_v32 = vadd.f32 %v6506_v54, %v8945_v7  ;;  %v6508_v43 = vadd.f32 %v4623_v56, %v8843_v20  ;;  %v4625_v21 = vpop.f32.mrb[27].mxu0 }
 0x376   : > { %v4847_v46 = vadd.f32 %v6507_v48, %v8947_v30  ;;  %v6509_v47 = vadd.f32 %v4625_v21, %v8846_v17  ;;  %5209 = vmatprep.mubr.bf16.mxu1 %v4977_v41 }
 0x377   : > { %v4848_v63 = vadd.f32 %v6508_v43, %v8945_v7  ;;  %5210 = vmatmul.mubr.bf16.gmra.mrb[92].mxu1 %v4976_v6  ;;  %v4918_v50 = vmax.f32 %v4846_v32, 0.0 }
 0x378   : > { %v4849_v19 = vadd.f32 %v6509_v47, %v8947_v30  ;;  %v4919_v45 = vmax.f32 %v4847_v46, 0.0 }
 0x379   : > { %v4920_v11 = vmax.f32 %v4848_v63, 0.0 }
 0x37a   : > { %v4921_v51 = vmax.f32 %v4849_v19, 0.0  ;;  %v4629_v29 = vpop.f32.mrb[28].mxu0 }
 0x37b   : > { %v6510_v0 = vadd.f32 %v4629_v29, %v8850_v39  ;;  %v4631_v52 = vpop.f32.mrb[29].mxu0  ;;  %v4978_v20 = vpack.c.bf16 %v4920_v11, %v4918_v50 }
 0x37c   : > { %v6511_v26 = vadd.f32 %v4631_v52, %v8852_v36  ;;  %v4633_v10 = vpop.f32.mrb[30].mxu0  ;;  %v4979_v14 = vpack.c.bf16 %v4921_v51, %v4919_v45 }
 0x37d   : > { %v4850_v17 = vadd.f32 %v6510_v0, %v8945_v7  ;;  %v6512_v23 = vadd.f32 %v4633_v10, %v8854_v35  ;;  %v4635_v57 = vpop.f32.mrb[31].mxu0 }
 0x37e   : > { %v4851_v13 = vadd.f32 %v6511_v26, %v8947_v30  ;;  %v6513_v53 = vadd.f32 %v4635_v57, %v8857_v62  ;;  %5217 = vmatprep.mubr.bf16.mxu1 %v4979_v14 }
 0x37f   : > { %v4852_v27 = vadd.f32 %v6512_v23, %v8945_v7  ;;  %5218 = vmatmul.mubr.bf16.gmra.mrb[96].mxu1 %v4978_v20  ;;  %v4922_v25 = vmax.f32 %v4850_v17, 0.0 }
 0x380   : > { %v4853_v39 = vadd.f32 %v6513_v53, %v8947_v30  ;;  %v4923_v36 = vmax.f32 %v4851_v13, 0.0 }
 0x381   : > { %v4924_v33 = vmax.f32 %v4852_v27, 0.0 }
 0x382   : > { %v4925_v55 = vmax.f32 %v4853_v39, 0.0  ;;  %v4639_v12 = vpop.f32.mrb[32].mxu0 }
 0x383   : > { %v6514_v5 = vadd.f32 %v4639_v12, %v8861_v4  ;;  %v4641_v42 = vpop.f32.mrb[33].mxu0  ;;  %v4980_v35 = vpack.c.bf16 %v4924_v33, %v4922_v25 }
 0x384   : > { %v6515_v44 = vadd.f32 %v4641_v42, %v8863_v49  ;;  %v4643_v60 = vpop.f32.mrb[34].mxu0  ;;  %v4981_v24 = vpack.c.bf16 %v4925_v55, %v4923_v36  ;;  %v9560_v42 = vld [vmem:[#allocation2_spill] sm:$0xff] }
 0x385   : > { %v4854_v62 = vadd.f32 %v6514_v5, %v8945_v7  ;;  %v6516_v37 = vadd.f32 %v4643_v60, %v8865_v8  ;;  %v4645_v22 = vpop.f32.mrb[35].mxu0 }
 0x386   : > { %v4855_v58 = vadd.f32 %v6515_v44, %v8947_v30  ;;  %v6517_v15 = vadd.f32 %v4645_v22, %v8868_v59  ;;  %5225 = vmatprep.mubr.bf16.mxu1 %v4981_v24  ;;  %v9561_v24 = vld [vmem:[#allocation3_spill] sm:$0xff] }
 0x387   : > { %v4856_v40 = vadd.f32 %v6516_v37, %v8945_v7  ;;  %5226 = vmatmul.mubr.bf16.gmra.mrb[100].mxu1 %v4980_v35  ;;  %v4926_v54 = vmax.f32 %v4854_v62, 0.0 }
 0x388   : > { %v4857_v4 = vadd.f32 %v6517_v15, %v8947_v30  ;;  %v4927_v49 = vmax.f32 %v4855_v58, 0.0 }
 0x389   : > { %v4928_v34 = vmax.f32 %v4856_v40, 0.0 }
 0x38a   : > { %v4929_v6 = vmax.f32 %v4857_v4, 0.0  ;;  %v4649_v48 = vpop.f32.mrb[36].mxu0  ;;  %v9562_v4 = vld [vmem:[#allocation4_spill] sm:$0xff] }
 0x38b   : > { %v6518_v56 = vadd.f32 %v4649_v48, %v8870_v9  ;;  %v4651_v41 = vpop.f32.mrb[37].mxu0  ;;  %v4982_v8 = vpack.c.bf16 %v4928_v34, %v4926_v54 }
 0x38c   : > { %v6519_v32 = vadd.f32 %v4651_v41, %v8872_v16  ;;  %v4653_v43 = vpop.f32.mrb[38].mxu0  ;;  %v4983_v21 = vpack.c.bf16 %v4929_v6, %v4927_v49  ;;  %v9563_v6 = vld [vmem:[#allocation5_spill] sm:$0xff] }
 0x38d   : > { %v4858_v59 = vadd.f32 %v6518_v56, %v8945_v7  ;;  %v6520_v46 = vadd.f32 %v4653_v43, %v8874_v1  ;;  %v4655_v47 = vpop.f32.mrb[39].mxu0 }
 0x38e   : > { %v4859_v63 = vadd.f32 %v6519_v32, %v8947_v30  ;;  %v6521_v19 = vadd.f32 %v4655_v47, %v8876_v2  ;;  %5233 = vmatprep.mubr.bf16.mxu1 %v4983_v21  ;;  %v9564_v32 = vld [vmem:[#allocation6_spill] sm:$0xff] }
 0x38f   : > { %v4860_v50 = vadd.f32 %v6520_v46, %v8945_v7  ;;  %5234 = vmatmul.mubr.bf16.gmra.mrb[104].mxu1 %v4982_v8  ;;  %v4930_v11 = vmax.f32 %v4858_v59, 0.0  ;;  %v9565_v46 = vld [vmem:[#allocation7_spill] sm:$0xff] }
 0x390   : > { %v4861_v9 = vadd.f32 %v6521_v19, %v8947_v30  ;;  %v4931_v16 = vmax.f32 %v4859_v63, 0.0 }
 0x391   : > { %v4932_v45 = vmax.f32 %v4860_v50, 0.0 }
 0x392   : > { %v4933_v51 = vmax.f32 %v4861_v9, 0.0  ;;  %v4659_v29 = vpop.f32.mrb[40].mxu0 }
 0x393   : > { %v6522_v0 = vadd.f32 %v4659_v29, %v8878_v31  ;;  %v4661_v52 = vpop.f32.mrb[41].mxu0  ;;  %v4984_v1 = vpack.c.bf16 %v4932_v45, %v4930_v11 }
 0x394   : > { %v6523_v20 = vadd.f32 %v4661_v52, %v8880_v38  ;;  %v4663_v26 = vpop.f32.mrb[42].mxu0  ;;  %v4985_v10 = vpack.c.bf16 %v4933_v51, %v4931_v16  ;;  %v9566_v51 = vld [vmem:[#allocation8_spill] sm:$0xff] }
 0x395   : > { %v4862_v2 = vadd.f32 %v6522_v0, %v8945_v7  ;;  %v6524_v14 = vadd.f32 %v4663_v26, %v8882_v61  ;;  %v4665_v17 = vpop.f32.mrb[43].mxu0 }
 0x396   : > { %v4863_v23 = vadd.f32 %v6523_v20, %v8947_v30  ;;  %v6525_v57 = vadd.f32 %v4665_v17, %v8884_v18  ;;  %5241 = vmatprep.mubr.bf16.mxu1 %v4985_v10 }
 0x397   : > { %v4864_v13 = vadd.f32 %v6524_v14, %v8945_v7  ;;  %5242 = vmatmul.mubr.bf16.gmra.mrb[108].mxu1 %v4984_v1  ;;  %v4934_v53 = vmax.f32 %v4862_v2, 0.0  ;;  %v9567_v1 = vld [vmem:[#allocation9_spill] sm:$0xff]  ;;  %v9568_v14 = vld [vmem:[#allocation10_spill] sm:$0xff] }
 0x398   : > { %v4865_v31 = vadd.f32 %v6525_v57, %v8947_v30  ;;  %v4935_v38 = vmax.f32 %v4863_v23, 0.0 }
 0x399   : > { %v4936_v27 = vmax.f32 %v4864_v13, 0.0  ;;  %v9569_v13 = vld [vmem:[#allocation11_spill] sm:$0xff] }
 0x39a   : > { %v4937_v39 = vmax.f32 %v4865_v31, 0.0  ;;  %v4669_v25 = vpop.f32.mrb[44].mxu0 }
 0x39b   : > { %v6526_v33 = vadd.f32 %v4669_v25, %v8886_v28  ;;  %v4671_v36 = vpop.f32.mrb[45].mxu0  ;;  %v4986_v61 = vpack.c.bf16 %v4936_v27, %v4934_v53 }
 0x39c   : > { %v6527_v55 = vadd.f32 %v4671_v36, %v8888_v3  ;;  %v4673_v12 = vpop.f32.mrb[46].mxu0  ;;  %v4987_v5 = vpack.c.bf16 %v4937_v39, %v4935_v38 }
 0x39d   : > { %v4866_v18 = vadd.f32 %v6526_v33, %v8945_v7  ;;  %v6528_v35 = vadd.f32 %v4673_v12, %v9560_v42  ;;  %v4675_v44 = vpop.f32.mrb[47].mxu0 }
 0x39e   : > { %v4867_v60 = vadd.f32 %v6527_v55, %v8947_v30  ;;  %v6529_v62 = vadd.f32 %v4675_v44, %v9561_v24  ;;  %5249 = vmatprep.mubr.bf16.mxu1 %v4987_v5  ;;  %v9572_v24 = vld [vmem:[#allocation14_spill] sm:$0xff] }
 0x39f   : > { %v4868_v37 = vadd.f32 %v6528_v35, %v8945_v7  ;;  %5250 = vmatmul.mubr.bf16.gmra.mrb[112].mxu1 %v4986_v61  ;;  %v4938_v22 = vmax.f32 %v4866_v18, 0.0  ;;  %v9570_v61 = vld [vmem:[#allocation12_spill] sm:$0xff]  ;;  %v9571_v18 = vld [vmem:[#allocation13_spill] sm:$0xff] }
 0x3a0   : > { %v4869_v28 = vadd.f32 %v6529_v62, %v8947_v30  ;;  %v4939_v3 = vmax.f32 %v4867_v60, 0.0 }
 0x3a1   : > { %v4940_v58 = vmax.f32 %v4868_v37, 0.0 }
 0x3a2   : > { %v4941_v15 = vmax.f32 %v4869_v28, 0.0  ;;  %v4679_v40 = vpop.f32.mrb[48].mxu0 }
 0x3a3   : > { %v6530_v54 = vadd.f32 %v4679_v40, %v9562_v4  ;;  %v4681_v34 = vpop.f32.mrb[49].mxu0  ;;  %v4988_v49 = vpack.c.bf16 %v4940_v58, %v4938_v22  ;;  %v9573_v22 = vld [vmem:[#allocation15_spill] sm:$0xff] }
 0x3a4   : > { %v6531_v48 = vadd.f32 %v4681_v34, %v9563_v6  ;;  %v4683_v56 = vpop.f32.mrb[50].mxu0  ;;  %v4989_v41 = vpack.c.bf16 %v4941_v15, %v4939_v3  ;;  %v9574_v6 = vld [vmem:[#allocation16_spill] sm:$0xff] }
 0x3a5   : > { %v4870_v8 = vadd.f32 %v6530_v54, %v8945_v7  ;;  %v6532_v43 = vadd.f32 %v4683_v56, %v9564_v32  ;;  %v4685_v21 = vpop.f32.mrb[51].mxu0 }
 0x3a6   : > { %v4871_v59 = vadd.f32 %v6531_v48, %v8947_v30  ;;  %v6533_v47 = vadd.f32 %v4685_v21, %v9565_v46  ;;  %5257 = vmatprep.mubr.bf16.mxu1 %v4989_v41  ;;  %v9576_v46 = vld [vmem:[#allocation18_spill] sm:$0xff] }
 0x3a7   : > { %v4872_v63 = vadd.f32 %v6532_v43, %v8945_v7  ;;  %5258 = vmatmul.mubr.bf16.gmra.mrb[116].mxu1 %v4988_v49  ;;  %v4942_v50 = vmax.f32 %v4870_v8, 0.0  ;;  %v9575_v8 = vld [vmem:[#allocation17_spill] sm:$0xff] }
 0x3a8   : > { %v4873_v19 = vadd.f32 %v6533_v47, %v8947_v30  ;;  %v4943_v11 = vmax.f32 %v4871_v59, 0.0 }
 0x3a9   : > { %v4944_v9 = vmax.f32 %v4872_v63, 0.0 }
 0x3aa   : > { %v4945_v45 = vmax.f32 %v4873_v19, 0.0  ;;  %v4689_v16 = vpop.f32.mrb[52].mxu0 }
 0x3ab   : > { %v6534_v29 = vadd.f32 %v4689_v16, %v9566_v51  ;;  %v4691_v0 = vpop.f32.mrb[53].mxu0  ;;  %v4990_v52 = vpack.c.bf16 %v4944_v9, %v4942_v50  ;;  %v9577_v50 = vld [vmem:[#allocation19_spill] sm:$0xff] }
 0x3ac   : > { %v6535_v20 = vadd.f32 %v4691_v0, %v9567_v1  ;;  %v4693_v26 = vpop.f32.mrb[54].mxu0  ;;  %v4991_v10 = vpack.c.bf16 %v4945_v45, %v4943_v11  ;;  %v9578_v1 = vld [vmem:[#allocation20_spill] sm:$0xff] }
 0x3ad   : > { %v4874_v2 = vadd.f32 %v6534_v29, %v8945_v7  ;;  %v6536_v17 = vadd.f32 %v4693_v26, %v9568_v14  ;;  %v4695_v23 = vpop.f32.mrb[55].mxu0 }
 0x3ae   : > { %v4875_v57 = vadd.f32 %v6535_v20, %v8947_v30  ;;  %v6537_v31 = vadd.f32 %v4695_v23, %v9569_v13  ;;  %5265 = vmatprep.mubr.bf16.mxu1 %v4991_v10  ;;  %v9580_v13 = vld [vmem:[#allocation22_spill] sm:$0xff] }
 0x3af   : > { %v4876_v53 = vadd.f32 %v6536_v17, %v8945_v7  ;;  %5266 = vmatmul.mubr.bf16.gmra.mrb[120].mxu1 %v4990_v52  ;;  %v4946_v38 = vmax.f32 %v4874_v2, 0.0  ;;  %v9579_v2 = vld [vmem:[#allocation21_spill] sm:$0xff] }
 0x3b0   : > { %v4877_v27 = vadd.f32 %v6537_v31, %v8947_v30  ;;  %v4947_v25 = vmax.f32 %v4875_v57, 0.0 }
 0x3b1   : > { %v4948_v39 = vmax.f32 %v4876_v53, 0.0 }
 0x3b2   : > { %v4949_v33 = vmax.f32 %v4877_v27, 0.0  ;;  %v4699_v36 = vpop.f32.mrb[56].mxu0 }
 0x3b3   : > { %v6538_v55 = vadd.f32 %v4699_v36, %v9570_v61  ;;  %v4701_v12 = vpop.f32.mrb[57].mxu0  ;;  %v4992_v5 = vpack.c.bf16 %v4948_v39, %v4946_v38  ;;  %v9581_v38 = vld [vmem:[#allocation23_spill] sm:$0xff] }
 0x3b4   : > { %v6539_v42 = vadd.f32 %v4701_v12, %v9571_v18  ;;  %v4703_v35 = vpop.f32.mrb[58].mxu0  ;;  %v4993_v44 = vpack.c.bf16 %v4949_v33, %v4947_v25  ;;  %v9582_v18 = vld [vmem:[#allocation24_spill] sm:$0xff] }
 0x3b5   : > { %v4878_v60 = vadd.f32 %v6538_v55, %v8945_v7  ;;  %v6540_v62 = vadd.f32 %v4703_v35, %v9572_v24  ;;  %v4705_v37 = vpop.f32.mrb[59].mxu0 }
 0x3b6   : > { %v4879_v28 = vadd.f32 %v6539_v42, %v8947_v30  ;;  %v6541_v58 = vadd.f32 %v4705_v37, %v9573_v22  ;;  %5273 = vmatprep.mubr.bf16.mxu1 %v4993_v44  ;;  %v9584_v22 = vld [vmem:[#allocation26_spill] sm:$0xff] }
 0x3b7   : > { %v4880_v3 = vadd.f32 %v6540_v62, %v8945_v7  ;;  %5274 = vmatmul.mubr.bf16.gmra.mrb[124].mxu1 %v4992_v5  ;;  %v4950_v40 = vmax.f32 %v4878_v60, 0.0  ;;  %v9583_v60 = vld [vmem:[#allocation25_spill] sm:$0xff] }
 0x3b8   : > { %v4881_v15 = vadd.f32 %v6541_v58, %v8947_v30  ;;  %v4951_v54 = vmax.f32 %v4879_v28, 0.0 }
 0x3b9   : > { %v4952_v4 = vmax.f32 %v4880_v3, 0.0 }
 0x3ba   : > { %v4953_v34 = vmax.f32 %v4881_v15, 0.0  ;;  %v4709_v49 = vpop.f32.mrb[60].mxu0 }
 0x3bb   : > { %v6542_v48 = vadd.f32 %v4709_v49, %v9574_v6  ;;  %v4711_v56 = vpop.f32.mrb[61].mxu0  ;;  %v4994_v41 = vpack.c.bf16 %v4952_v4, %v4950_v40  ;;  %v9585_v40 = vld [vmem:[#allocation27_spill] sm:$0xff] }
 0x3bc   : > { %v6543_v32 = vadd.f32 %v4711_v56, %v9575_v8  ;;  %v4713_v43 = vpop.f32.mrb[62].mxu0  ;;  %v4995_v21 = vpack.c.bf16 %v4953_v34, %v4951_v54 }
 0x3bd   : > { %v4882_v59 = vadd.f32 %v6542_v48, %v8945_v7  ;;  %v6544_v47 = vadd.f32 %v4713_v43, %v9576_v46  ;;  %v4715_v63 = vpop.f32.mrb[63].mxu0 }
 0x3be   : > { %v4883_v19 = vadd.f32 %v6543_v32, %v8947_v30  ;;  %v6545_v9 = vadd.f32 %v4715_v63, %v9577_v50  ;;  %5281 = vmatprep.mubr.bf16.mxu1 %v4995_v21  ;;  %v9097_v32 = vld [vmem:[%s9531_s4] ss:$0 sm:$0xff] }
 0x3bf   : > { %v4884_v11 = vadd.f32 %v6544_v47, %v8945_v7  ;;  %5282 = vmatmul.mubr.bf16.gmra.mrb[128].mxu1 %v4994_v41  ;;  %v4954_v16 = vmax.f32 %v4882_v59, 0.0 }
 0x3c0   : > { %v4885_v45 = vadd.f32 %v6545_v9, %v8947_v30  ;;  %v4955_v29 = vmax.f32 %v4883_v19, 0.0 }
 0x3c1   : > { %v4956_v51 = vmax.f32 %v4884_v11, 0.0 }
 0x3c2   : > { %v4957_v0 = vmax.f32 %v4885_v45, 0.0  ;;  %v4719_v52 = vpop.f32.mrb[64].mxu0 }
 0x3c3   : > { %v6546_v20 = vadd.f32 %v4719_v52, %v9578_v1  ;;  %v4721_v26 = vpop.f32.mrb[65].mxu0  ;;  %v4996_v10 = vpack.c.bf16 %v4956_v51, %v4954_v16 }
 0x3c4   : > { %v6547_v14 = vadd.f32 %v4721_v26, %v9579_v2  ;;  %v4723_v17 = vpop.f32.mrb[66].mxu0  ;;  %v4997_v23 = vpack.c.bf16 %v4957_v0, %v4955_v29 }
 0x3c5   : > { %v4886_v57 = vadd.f32 %v6546_v20, %v8945_v7  ;;  %v6548_v31 = vadd.f32 %v4723_v17, %v9580_v13  ;;  %v4725_v53 = vpop.f32.mrb[67].mxu0 }
 0x3c6   : > { %v4887_v27 = vadd.f32 %v6547_v14, %v8947_v30  ;;  %v6549_v39 = vadd.f32 %v4725_v53, %v9581_v38  ;;  %5289 = vmatprep.mubr.bf16.mxu1 %v4997_v23 }
 0x3c7   : > { %v4888_v25 = vadd.f32 %v6548_v31, %v8945_v7  ;;  %5290 = vmatmul.mubr.bf16.gmra.mrb[132].mxu1 %v4996_v10  ;;  %v4958_v36 = vmax.f32 %v4886_v57, 0.0 }
 0x3c8   : > { %v4889_v33 = vadd.f32 %v6549_v39, %v8947_v30  ;;  %v4959_v55 = vmax.f32 %v4887_v27, 0.0 }
 0x3c9   : > { %v4960_v61 = vmax.f32 %v4888_v25, 0.0 }
 0x3ca   : > { %v4961_v12 = vmax.f32 %v4889_v33, 0.0  ;;  %v4729_v5 = vpop.f32.mrb[68].mxu0 }
 0x3cb   : > { %v6550_v42 = vadd.f32 %v4729_v5, %v9582_v18  ;;  %v4731_v35 = vpop.f32.mrb[69].mxu0  ;;  %v4998_v44 = vpack.c.bf16 %v4960_v61, %v4958_v36 }
 0x3cc   : > { %v6551_v24 = vadd.f32 %v4731_v35, %v9583_v60  ;;  %v4733_v62 = vpop.f32.mrb[70].mxu0  ;;  %v4999_v37 = vpack.c.bf16 %v4961_v12, %v4959_v55 }
 0x3cd   : > { %v4890_v28 = vadd.f32 %v6550_v42, %v8945_v7  ;;  %v6552_v58 = vadd.f32 %v4733_v62, %v9584_v22  ;;  %v4735_v3 = vpop.f32.mrb[71].mxu0 }
 0x3ce   : > { %v4891_v15 = vadd.f32 %v6551_v24, %v8947_v30  ;;  %v6553_v4 = vadd.f32 %v4735_v3, %v9585_v40  ;;  %5297 = vmatprep.mubr.bf16.mxu1 %v4999_v37 }
 0x3cf   : > { %v4892_v54 = vadd.f32 %v6552_v58, %v8945_v7  ;;  %5298 = vmatmul.mubr.bf16.gmra.mrb[136].mxu1 %v4998_v44  ;;  %v4962_v49 = vmax.f32 %v4890_v28, 0.0 }
 0x3d0   : > { %v4893_v34 = vadd.f32 %v6553_v4, %v8947_v30  ;;  %v4963_v48 = vmax.f32 %v4891_v15, 0.0 }
 0x3d1   : > { %v4964_v6 = vmax.f32 %v4892_v54, 0.0 }
 0x3d2   : > { %v4965_v56 = vmax.f32 %v4893_v34, 0.0 }
 0x3d3   : > { %v5000_v41 = vpack.c.bf16 %v4964_v6, %v4962_v49 }
 0x3d4   : > { %v5001_v8 = vpack.c.bf16 %v4965_v56, %v4963_v48 }
 0x3d6   : > { %5305 = vmatprep.mubr.bf16.mxu1 %v5001_v8 }
 0x3d7   : > { %5306 = vmatmul.mubr.bf16.gmra.mrb[140].mxu1 %v5000_v41 }
 0x422   : > { %v5171_v30 = vpop.f32.mrb[72].mxu1 }
 0x423   : > { %v9105_v7 = vadd.f32 %v9097_v32, %v5171_v30  ;;  %v5173_v43 = vpop.f32.mrb[73].mxu1 }
 0x424   : > { %v5174_v21 = vpop.f32.mrb[74].mxu1 }
 0x425   : > { %5314 = vst [vmem:[%s9102_s11] sm:$0xff] %v9105_v7  ;;  %v9110_v59 = vadd.f32 %v9097_v32, %v5174_v21  ;;  %v5176_v46 = vpop.f32.mrb[75].mxu1  ;;  %5350 = vmax.xlane.f32.xlu0 %v9105_v7 }
 0x427   : > { %5315 = vst [vmem:[%s9102_s11 + $0x8] sm:$0xff] %v9110_v59 }
 0x429   : > { %5352 = vmax.xlane.f32.xlu0 %v9110_v59 }
 0x42a   : > { %v5179_v47 = vpop.f32.mrb[76].mxu1 }
 0x42b   : > { %v9117_v63 = vadd.f32 %v9097_v32, %v5179_v47  ;;  %v5181_v19 = vpop.f32.mrb[77].mxu1 }
 0x42c   : > { %v5182_v50 = vpop.f32.mrb[78].mxu1 }
 0x42d   : > { %5316 = vst [vmem:[%s9102_s11 + $0x10] sm:$0xff] %v9117_v63  ;;  %v9122_v9 = vadd.f32 %v9097_v32, %v5182_v50  ;;  %v5184_v11 = vpop.f32.mrb[79].mxu1  ;;  %5354 = vmax.xlane.f32.xlu1 %v9117_v63 }
 0x42f   : > { %5317 = vst [vmem:[%s9102_s11 + $0x18] sm:$0xff] %v9122_v9 }
 0x431   : > { %5356 = vmax.xlane.f32.xlu1 %v9122_v9 }
 0x432   : > { %v5187_v45 = vpop.f32.mrb[80].mxu1 }
 0x433   : > { %v9129_v16 = vadd.f32 %v9097_v32, %v5187_v45  ;;  %v5189_v51 = vpop.f32.mrb[81].mxu1 }
 0x434   : > { %v5190_v29 = vpop.f32.mrb[82].mxu1 }
 0x435   : > { %5318 = vst [vmem:[%s9102_s11 + $0x20] sm:$0xff] %v9129_v16  ;;  %v9134_v0 = vadd.f32 %v9097_v32, %v5190_v29  ;;  %v5192_v52 = vpop.f32.mrb[83].mxu1  ;;  %5358 = vmax.xlane.f32.xlu0 %v9129_v16 }
 0x437   : > { %5319 = vst [vmem:[%s9102_s11 + $0x28] sm:$0xff] %v9134_v0  ;;  %5360 = vmax.xlane.f32.xlu1 %v9134_v0 }
 0x43a   : > { %v5195_v1 = vpop.f32.mrb[84].mxu1 }
 0x43b   : > { %v9141_v20 = vadd.f32 %v9097_v32, %v5195_v1  ;;  %v5197_v26 = vpop.f32.mrb[85].mxu1 }
 0x43c   : > { %v5198_v10 = vpop.f32.mrb[86].mxu1 }
 0x43d   : > { %5320 = vst [vmem:[%s9102_s11 + $0x30] sm:$0xff] %v9141_v20  ;;  %v9146_v2 = vadd.f32 %v9097_v32, %v5198_v10  ;;  %v5200_v14 = vpop.f32.mrb[87].mxu1  ;;  %5362 = vmax.xlane.f32.xlu0 %v9141_v20 }
 0x43f   : > { %5321 = vst [vmem:[%s9102_s11 + $0x38] sm:$0xff] %v9146_v2  ;;  %5364 = vmax.xlane.f32.xlu1 %v9146_v2 }
 0x442   : > { %v5203_v17 = vpop.f32.mrb[88].mxu1 }
 0x443   : > { %v9153_v23 = vadd.f32 %v9097_v32, %v5203_v17  ;;  %v5205_v57 = vpop.f32.mrb[89].mxu1 }
 0x444   : > { %v5206_v13 = vpop.f32.mrb[90].mxu1 }
 0x445   : > { %5322 = vst [vmem:[%s9102_s11 + $0x40] sm:$0xff] %v9153_v23  ;;  %v9158_v31 = vadd.f32 %v9097_v32, %v5206_v13  ;;  %v5208_v53 = vpop.f32.mrb[91].mxu1  ;;  %5366 = vmax.xlane.f32.xlu0 %v9153_v23 }
 0x447   : > { %5323 = vst [vmem:[%s9102_s11 + $0x48] sm:$0xff] %v9158_v31  ;;  %5368 = vmax.xlane.f32.xlu1 %v9158_v31 }
 0x44a   : > { %v5211_v27 = vpop.f32.mrb[92].mxu1 }
 0x44b   : > { %v9165_v38 = vadd.f32 %v9097_v32, %v5211_v27  ;;  %v5213_v39 = vpop.f32.mrb[93].mxu1 }
 0x44c   : > { %v5214_v25 = vpop.f32.mrb[94].mxu1 }
 0x44d   : > { %5324 = vst [vmem:[%s9102_s11 + $0x50] sm:$0xff] %v9165_v38  ;;  %v9170_v33 = vadd.f32 %v9097_v32, %v5214_v25  ;;  %v5216_v36 = vpop.f32.mrb[95].mxu1  ;;  %5370 = vmax.xlane.f32.xlu0 %v9165_v38 }
 0x44f   : > { %5325 = vst [vmem:[%s9102_s11 + $0x58] sm:$0xff] %v9170_v33  ;;  %5372 = vmax.xlane.f32.xlu1 %v9170_v33 }
 0x452   : > { %v5219_v61 = vpop.f32.mrb[96].mxu1 }
 0x453   : > { %v9177_v55 = vadd.f32 %v9097_v32, %v5219_v61  ;;  %v5221_v12 = vpop.f32.mrb[97].mxu1 }
 0x454   : > { %v5222_v5 = vpop.f32.mrb[98].mxu1 }
 0x455   : > { %5326 = vst [vmem:[%s9102_s11 + $0x60] sm:$0xff] %v9177_v55  ;;  %v9182_v18 = vadd.f32 %v9097_v32, %v5222_v5  ;;  %v5224_v42 = vpop.f32.mrb[99].mxu1  ;;  %5374 = vmax.xlane.f32.xlu0 %v9177_v55 }
 0x457   : > { %5327 = vst [vmem:[%s9102_s11 + $0x68] sm:$0xff] %v9182_v18  ;;  %5376 = vmax.xlane.f32.xlu1 %v9182_v18 }
 0x45a   : > { %v5227_v35 = vpop.f32.mrb[100].mxu1 }
 0x45b   : > { %v9189_v44 = vadd.f32 %v9097_v32, %v5227_v35  ;;  %v5229_v60 = vpop.f32.mrb[101].mxu1 }
 0x45c   : > { %v5230_v24 = vpop.f32.mrb[102].mxu1 }
 0x45d   : > { %5328 = vst [vmem:[%s9102_s11 + $0x70] sm:$0xff] %v9189_v44  ;;  %v9194_v62 = vadd.f32 %v9097_v32, %v5230_v24  ;;  %v5232_v37 = vpop.f32.mrb[103].mxu1  ;;  %5378 = vmax.xlane.f32.xlu0 %v9189_v44 }
 0x45f   : > { %5329 = vst [vmem:[%s9102_s11 + $0x78] sm:$0xff] %v9194_v62  ;;  %5380 = vmax.xlane.f32.xlu1 %v9194_v62 }
 0x462   : > { %v5235_v28 = vpop.f32.mrb[104].mxu1 }
 0x463   : > { %v9201_v22 = vadd.f32 %v9097_v32, %v5235_v28  ;;  %v5237_v58 = vpop.f32.mrb[105].mxu1 }
 0x464   : > { %v5238_v3 = vpop.f32.mrb[106].mxu1 }
 0x465   : > { %5330 = vst [vmem:[%s9102_s11 + $0x80] sm:$0xff] %v9201_v22  ;;  %v9206_v15 = vadd.f32 %v9097_v32, %v5238_v3  ;;  %v5240_v40 = vpop.f32.mrb[107].mxu1  ;;  %5382 = vmax.xlane.f32.xlu0 %v9201_v22 }
 0x467   : > { %5331 = vst [vmem:[%s9102_s11 + $0x88] sm:$0xff] %v9206_v15  ;;  %5384 = vmax.xlane.f32.xlu1 %v9206_v15 }
 0x46a   : > { %v5243_v4 = vpop.f32.mrb[108].mxu1 }
 0x46b   : > { %v9213_v54 = vadd.f32 %v9097_v32, %v5243_v4  ;;  %v5245_v34 = vpop.f32.mrb[109].mxu1 }
 0x46c   : > { %v5246_v49 = vpop.f32.mrb[110].mxu1 }
 0x46d   : > { %5332 = vst [vmem:[%s9102_s11 + $0x90] sm:$0xff] %v9213_v54  ;;  %v9218_v6 = vadd.f32 %v9097_v32, %v5246_v49  ;;  %v5248_v48 = vpop.f32.mrb[111].mxu1  ;;  %5386 = vmax.xlane.f32.xlu0 %v9213_v54 }
 0x46f   : > { %5333 = vst [vmem:[%s9102_s11 + $0x98] sm:$0xff] %v9218_v6  ;;  %5388 = vmax.xlane.f32.xlu1 %v9218_v6 }
 0x472   : > { %v5251_v56 = vpop.f32.mrb[112].mxu1 }
 0x473   : > { %v9225_v41 = vadd.f32 %v9097_v32, %v5251_v56  ;;  %v5253_v8 = vpop.f32.mrb[113].mxu1 }
 0x474   : > { %v5254_v30 = vpop.f32.mrb[114].mxu1 }
 0x475   : > { %5334 = vst [vmem:[%s9102_s11 + $0xa0] sm:$0xff] %v9225_v41  ;;  %v9230_v43 = vadd.f32 %v9097_v32, %v5254_v30  ;;  %v5256_v21 = vpop.f32.mrb[115].mxu1  ;;  %5390 = vmax.xlane.f32.xlu0 %v9225_v41 }
 0x477   : > { %5335 = vst [vmem:[%s9102_s11 + $0xa8] sm:$0xff] %v9230_v43  ;;  %5392 = vmax.xlane.f32.xlu1 %v9230_v43 }
 0x47a   : > { %v5259_v46 = vpop.f32.mrb[116].mxu1 }
 0x47b   : > { %v9237_v47 = vadd.f32 %v9097_v32, %v5259_v46  ;;  %v5261_v19 = vpop.f32.mrb[117].mxu1 }
 0x47c   : > { %v5262_v50 = vpop.f32.mrb[118].mxu1 }
 0x47d   : > { %5336 = vst [vmem:[%s9102_s11 + $0xb0] sm:$0xff] %v9237_v47  ;;  %v9242_v11 = vadd.f32 %v9097_v32, %v5262_v50  ;;  %v5264_v45 = vpop.f32.mrb[119].mxu1  ;;  %5394 = vmax.xlane.f32.xlu0 %v9237_v47 }
 0x47f   : > { %5337 = vst [vmem:[%s9102_s11 + $0xb8] sm:$0xff] %v9242_v11  ;;  %5396 = vmax.xlane.f32.xlu1 %v9242_v11 }
 0x482   : > { %v5267_v51 = vpop.f32.mrb[120].mxu1 }
 0x483   : > { %v9249_v29 = vadd.f32 %v9097_v32, %v5267_v51  ;;  %v5269_v52 = vpop.f32.mrb[121].mxu1 }
 0x484   : > { %v5270_v1 = vpop.f32.mrb[122].mxu1 }
 0x485   : > { %5338 = vst [vmem:[%s9102_s11 + $0xc0] sm:$0xff] %v9249_v29  ;;  %v9254_v26 = vadd.f32 %v9097_v32, %v5270_v1  ;;  %v5272_v10 = vpop.f32.mrb[123].mxu1  ;;  %5398 = vmax.xlane.f32.xlu0 %v9249_v29 }
 0x487   : > { %5339 = vst [vmem:[%s9102_s11 + $0xc8] sm:$0xff] %v9254_v26  ;;  %5400 = vmax.xlane.f32.xlu1 %v9254_v26 }
 0x48a   : > { %v5275_v14 = vpop.f32.mrb[124].mxu1 }
 0x48b   : > { %v9261_v17 = vadd.f32 %v9097_v32, %v5275_v14  ;;  %v5277_v57 = vpop.f32.mrb[125].mxu1 }
 0x48c   : > { %v5278_v13 = vpop.f32.mrb[126].mxu1 }
 0x48d   : > { %5340 = vst [vmem:[%s9102_s11 + $0xd0] sm:$0xff] %v9261_v17  ;;  %v9266_v53 = vadd.f32 %v9097_v32, %v5278_v13  ;;  %v5280_v27 = vpop.f32.mrb[127].mxu1  ;;  %5402 = vmax.xlane.f32.xlu0 %v9261_v17 }
 0x48f   : > { %5341 = vst [vmem:[%s9102_s11 + $0xd8] sm:$0xff] %v9266_v53  ;;  %5404 = vmax.xlane.f32.xlu1 %v9266_v53 }
 0x492   : > { %v5283_v39 = vpop.f32.mrb[128].mxu1 }
 0x493   : > { %v9273_v25 = vadd.f32 %v9097_v32, %v5283_v39  ;;  %v5285_v36 = vpop.f32.mrb[129].mxu1 }
 0x494   : > { %v5286_v61 = vpop.f32.mrb[130].mxu1 }
 0x495   : > { %5342 = vst [vmem:[%s9102_s11 + $0xe0] sm:$0xff] %v9273_v25  ;;  %v9278_v12 = vadd.f32 %v9097_v32, %v5286_v61  ;;  %v5288_v5 = vpop.f32.mrb[131].mxu1  ;;  %5406 = vmax.xlane.f32.xlu0 %v9273_v25 }
 0x497   : > { %5343 = vst [vmem:[%s9102_s11 + $0xe8] sm:$0xff] %v9278_v12  ;;  %5408 = vmax.xlane.f32.xlu1 %v9278_v12 }
 0x49a   : > { %v5291_v42 = vpop.f32.mrb[132].mxu1 }
 0x49b   : > { %v9285_v35 = vadd.f32 %v9097_v32, %v5291_v42  ;;  %v5293_v60 = vpop.f32.mrb[133].mxu1 }
 0x49c   : > { %v5294_v24 = vpop.f32.mrb[134].mxu1 }
 0x49d   : > { %5344 = vst [vmem:[%s9102_s11 + $0xf0] sm:$0xff] %v9285_v35  ;;  %v9290_v37 = vadd.f32 %v9097_v32, %v5294_v24  ;;  %v5296_v28 = vpop.f32.mrb[135].mxu1  ;;  %5410 = vmax.xlane.f32.xlu0 %v9285_v35 }
 0x49f   : > { %5345 = vst [vmem:[%s9102_s11 + $0xf8] sm:$0xff] %v9290_v37  ;;  %5412 = vmax.xlane.f32.xlu1 %v9290_v37 }
 0x4a2   : > { %v5299_v58 = vpop.f32.mrb[136].mxu1 }
 0x4a3   : > { %v9297_v3 = vadd.f32 %v9097_v32, %v5299_v58  ;;  %v5301_v40 = vpop.f32.mrb[137].mxu1 }
 0x4a4   : > { %v5302_v4 = vpop.f32.mrb[138].mxu1 }
 0x4a5   : > { %5346 = vst [vmem:[%s9102_s11 + $0x100] sm:$0xff] %v9297_v3  ;;  %v9302_v34 = vadd.f32 %v9097_v32, %v5302_v4  ;;  %v5304_v49 = vpop.f32.mrb[139].mxu1  ;;  %5414 = vmax.xlane.f32.xlu0 %v9297_v3 }
 0x4a7   : > { %5347 = vst [vmem:[%s9102_s11 + $0x108] sm:$0xff] %v9302_v34  ;;  %5416 = vmax.xlane.f32.xlu1 %v9302_v34 }
 0x4aa   : > { %v5307_v48 = vpop.f32.mrb[140].mxu1 }
 0x4ab   : > { %v9309_v56 = vadd.f32 %v9097_v32, %v5307_v48  ;;  %v5309_v8 = vpop.f32.mrb[141].mxu1 }
 0x4ac   : > { %v5310_v30 = vpop.f32.mrb[142].mxu1 }
 0x4ad   : > { %5348 = vst [vmem:[%s9102_s11 + $0x110] sm:$0xff] %v9309_v56  ;;  %v9314_v21 = vadd.f32 %v9097_v32, %v5310_v30  ;;  %v5312_v46 = vpop.f32.mrb[143].mxu1  ;;  %5418 = vmax.xlane.f32.xlu0 %v9309_v56 }
 0x4af   : > { %5349 = vst [vmem:[%s9102_s11 + $0x118] sm:$0xff] %v9314_v21  ;;  %5420 = vmax.xlane.f32.xlu1 %v9314_v21 }
 0x4b2   : > { %v5351_v19 = vpop.xlane.xlu0 %5350 }
 0x4b3   : > { %v5422_v50 = vsub.f32 %v9105_v7, %v5351_v19 }
 0x4b5   : > { %v5458_v45 = vmul.f32 1.442695, %v5422_v50 }
 0x4b6   : > { %v5353_v51 = vpop.xlane.xlu0 %5352 }
 0x4b7   : > { %7364 = vpow2.f32 %v5458_v45  ;;  %v5423_v52 = vsub.f32 %v9110_v59, %v5353_v51 }
 0x4b9   : > { %v5460_v1 = vmul.f32 1.442695, %v5423_v52 }
 0x4ba   : > { %v5355_v10 = vpop.xlane.xlu1 %5354 }
 0x4bb   : > { %7366 = vpow2.f32 %v5460_v1  ;;  %v5424_v32 = vsub.f32 %v9117_v63, %v5355_v10 }
 0x4bd   : > { %v5462_v14 = vmul.f32 1.442695, %v5424_v32 }
 0x4be   : > { %v5357_v57 = vpop.xlane.xlu1 %5356 }
 0x4bf   : > { %7368 = vpow2.f32 %v5462_v14  ;;  %v5425_v13 = vsub.f32 %v9122_v9, %v5357_v57 }
 0x4c1   : > { %v9324_v27 = vpop.eup %7364  ;;  %v5464_v39 = vmul.f32 1.442695, %v5425_v13 }
 0x4c2   : > { %v5359_v36 = vpop.xlane.xlu0 %5358  ;;  %5530 = vadd.xlane.f32.xlu0 %v9324_v27 }
 0x4c3   : > { %7370 = vpow2.f32 %v5464_v39  ;;  %v5426_v7 = vsub.f32 %v9129_v16, %v5359_v36 }
 0x4c4   : > { %v5361_v59 = vpop.xlane.xlu1 %5360 }
 0x4c5   : > { %v9328_v61 = vpop.eup %7366  ;;  %v5466_v5 = vmul.f32 1.442695, %v5426_v7  ;;  %v5427_v63 = vsub.f32 %v9134_v0, %v5361_v59 }
 0x4c6   : > { %5532 = vadd.xlane.f32.xlu1 %v9328_v61 }
 0x4c7   : > { %7372 = vpow2.f32 %v5466_v5  ;;  %v5468_v42 = vmul.f32 1.442695, %v5427_v63 }
 0x4c9   : > { %v9332_v9 = vpop.eup %7368  ;;  %7374 = vpow2.f32 %v5468_v42 }
 0x4ca   : > { %v5363_v60 = vpop.xlane.xlu0 %5362  ;;  %5534 = vadd.xlane.f32.xlu0 %v9332_v9 }
 0x4cb   : > { %v5428_v24 = vsub.f32 %v9141_v20, %v5363_v60 }
 0x4cc   : > { %v5365_v28 = vpop.xlane.xlu1 %5364 }
 0x4cd   : > { %v9336_v16 = vpop.eup %7370  ;;  %v5470_v58 = vmul.f32 1.442695, %v5428_v24  ;;  %v5429_v40 = vsub.f32 %v9146_v2, %v5365_v28 }
 0x4ce   : > { %5536 = vadd.xlane.f32.xlu1 %v9336_v16 }
 0x4cf   : > { %7376 = vpow2.f32 %v5470_v58  ;;  %v5472_v0 = vmul.f32 1.442695, %v5429_v40 }
 0x4d1   : > { %v9340_v4 = vpop.eup %7372  ;;  %7378 = vpow2.f32 %v5472_v0 }
 0x4d2   : > { %v5367_v49 = vpop.xlane.xlu0 %5366  ;;  %5538 = vadd.xlane.f32.xlu0 %v9340_v4 }
 0x4d3   : > { %v9343_v48 = vpop.eup %7374  ;;  %v5430_v20 = vsub.f32 %v9153_v23, %v5367_v49 }
 0x4d4   : > { %v5369_v8 = vpop.xlane.xlu1 %5368  ;;  %5540 = vadd.xlane.f32.xlu1 %v9343_v48 }
 0x4d5   : > { %v5474_v30 = vmul.f32 1.442695, %v5430_v20  ;;  %v5431_v2 = vsub.f32 %v9158_v31, %v5369_v8 }
 0x4d7   : > { %7380 = vpow2.f32 %v5474_v30  ;;  %v5476_v46 = vmul.f32 1.442695, %v5431_v2 }
 0x4d9   : > { %v9348_v19 = vpop.eup %7376  ;;  %7382 = vpow2.f32 %v5476_v46 }
 0x4da   : > { %v5371_v50 = vpop.xlane.xlu0 %5370  ;;  %5542 = vadd.xlane.f32.xlu0 %v9348_v19 }
 0x4db   : > { %v9351_v45 = vpop.eup %7378  ;;  %v5432_v51 = vsub.f32 %v9165_v38, %v5371_v50 }
 0x4dc   : > { %v5373_v52 = vpop.xlane.xlu1 %5372  ;;  %5544 = vadd.xlane.f32.xlu1 %v9351_v45 }
 0x4dd   : > { %v5478_v23 = vmul.f32 1.442695, %v5432_v51  ;;  %v5433_v1 = vsub.f32 %v9170_v33, %v5373_v52 }
 0x4df   : > { %7384 = vpow2.f32 %v5478_v23  ;;  %v5480_v31 = vmul.f32 1.442695, %v5433_v1 }
 0x4e1   : > { %v9356_v10 = vpop.eup %7380  ;;  %7386 = vpow2.f32 %v5480_v31 }
 0x4e2   : > { %v5375_v32 = vpop.xlane.xlu0 %5374  ;;  %5546 = vadd.xlane.f32.xlu0 %v9356_v10 }
 0x4e3   : > { %v9359_v14 = vpop.eup %7382  ;;  %v5434_v57 = vsub.f32 %v9177_v55, %v5375_v32 }
 0x4e4   : > { %v5377_v13 = vpop.xlane.xlu1 %5376  ;;  %5548 = vadd.xlane.f32.xlu1 %v9359_v14 }
 0x4e5   : > { %v5482_v38 = vmul.f32 1.442695, %v5434_v57  ;;  %v5435_v39 = vsub.f32 %v9182_v18, %v5377_v13 }
 0x4e7   : > { %7388 = vpow2.f32 %v5482_v38  ;;  %v5484_v33 = vmul.f32 1.442695, %v5435_v39 }
 0x4e9   : > { %v9364_v36 = vpop.eup %7384  ;;  %7390 = vpow2.f32 %v5484_v33 }
 0x4ea   : > { %v5379_v7 = vpop.xlane.xlu0 %5378  ;;  %5550 = vadd.xlane.f32.xlu0 %v9364_v36 }
 0x4eb   : > { %v9367_v59 = vpop.eup %7386  ;;  %v5436_v5 = vsub.f32 %v9189_v44, %v5379_v7 }
 0x4ec   : > { %v5381_v63 = vpop.xlane.xlu1 %5380  ;;  %5552 = vadd.xlane.f32.xlu1 %v9367_v59 }
 0x4ed   : > { %v5486_v55 = vmul.f32 1.442695, %v5436_v5  ;;  %v5437_v42 = vsub.f32 %v9194_v62, %v5381_v63 }
 0x4ef   : > { %7392 = vpow2.f32 %v5486_v55  ;;  %v5488_v18 = vmul.f32 1.442695, %v5437_v42 }
 0x4f1   : > { %v9372_v60 = vpop.eup %7388  ;;  %7394 = vpow2.f32 %v5488_v18 }
 0x4f2   : > { %v5383_v24 = vpop.xlane.xlu0 %5382  ;;  %5554 = vadd.xlane.f32.xlu0 %v9372_v60 }
 0x4f3   : > { %v9375_v28 = vpop.eup %7390  ;;  %v5438_v58 = vsub.f32 %v9201_v22, %v5383_v24 }
 0x4f4   : > { %v5385_v40 = vpop.xlane.xlu1 %5384  ;;  %5556 = vadd.xlane.f32.xlu1 %v9375_v28 }
 0x4f5   : > { %v5490_v44 = vmul.f32 1.442695, %v5438_v58  ;;  %v5439_v0 = vsub.f32 %v9206_v15, %v5385_v40 }
 0x4f7   : > { %7396 = vpow2.f32 %v5490_v44  ;;  %v5492_v62 = vmul.f32 1.442695, %v5439_v0 }
 0x4f9   : > { %v9380_v49 = vpop.eup %7392  ;;  %7398 = vpow2.f32 %v5492_v62 }
 0x4fa   : > { %v5387_v20 = vpop.xlane.xlu0 %5386  ;;  %5558 = vadd.xlane.f32.xlu0 %v9380_v49 }
 0x4fb   : > { %v9383_v8 = vpop.eup %7394  ;;  %v5440_v30 = vsub.f32 %v9213_v54, %v5387_v20 }
 0x4fc   : > { %v5389_v2 = vpop.xlane.xlu1 %5388  ;;  %5560 = vadd.xlane.f32.xlu1 %v9383_v8 }
 0x4fd   : > { %v5494_v22 = vmul.f32 1.442695, %v5440_v30  ;;  %v5441_v46 = vsub.f32 %v9218_v6, %v5389_v2 }
 0x4ff   : > { %7400 = vpow2.f32 %v5494_v22  ;;  %v5496_v15 = vmul.f32 1.442695, %v5441_v46 }
 0x501   : > { %v9388_v50 = vpop.eup %7396  ;;  %7402 = vpow2.f32 %v5496_v15 }
 0x502   : > { %v5391_v51 = vpop.xlane.xlu0 %5390  ;;  %5562 = vadd.xlane.f32.xlu0 %v9388_v50 }
 0x503   : > { %v9391_v52 = vpop.eup %7398  ;;  %v5442_v23 = vsub.f32 %v9225_v41, %v5391_v51 }
 0x504   : > { %v5393_v1 = vpop.xlane.xlu1 %5392  ;;  %5564 = vadd.xlane.f32.xlu1 %v9391_v52 }
 0x505   : > { %v5498_v54 = vmul.f32 1.442695, %v5442_v23  ;;  %v5443_v31 = vsub.f32 %v9230_v43, %v5393_v1 }
 0x507   : > { %7404 = vpow2.f32 %v5498_v54  ;;  %v5500_v6 = vmul.f32 1.442695, %v5443_v31 }
 0x509   : > { %v9396_v32 = vpop.eup %7400  ;;  %7406 = vpow2.f32 %v5500_v6 }
 0x50a   : > { %v5395_v57 = vpop.xlane.xlu0 %5394  ;;  %5566 = vadd.xlane.f32.xlu0 %v9396_v32 }
 0x50b   : > { %v9399_v13 = vpop.eup %7402  ;;  %v5444_v38 = vsub.f32 %v9237_v47, %v5395_v57 }
 0x50c   : > { %v5397_v39 = vpop.xlane.xlu1 %5396  ;;  %5568 = vadd.xlane.f32.xlu1 %v9399_v13 }
 0x50d   : > { %v5502_v41 = vmul.f32 1.442695, %v5444_v38  ;;  %v5445_v33 = vsub.f32 %v9242_v11, %v5397_v39 }
 0x50f   : > { %7408 = vpow2.f32 %v5502_v41  ;;  %v5504_v43 = vmul.f32 1.442695, %v5445_v33 }
 0x511   : > { %v9404_v7 = vpop.eup %7404  ;;  %7410 = vpow2.f32 %v5504_v43 }
 0x512   : > { %v5399_v5 = vpop.xlane.xlu0 %5398  ;;  %5570 = vadd.xlane.f32.xlu0 %v9404_v7 }
 0x513   : > { %v9407_v63 = vpop.eup %7406  ;;  %v5446_v55 = vsub.f32 %v9249_v29, %v5399_v5 }
 0x514   : > { %v5401_v42 = vpop.xlane.xlu1 %5400  ;;  %5572 = vadd.xlane.f32.xlu1 %v9407_v63 }
 0x515   : > { %v5506_v47 = vmul.f32 1.442695, %v5446_v55  ;;  %v5447_v18 = vsub.f32 %v9254_v26, %v5401_v42 }
 0x517   : > { %7412 = vpow2.f32 %v5506_v47  ;;  %v5508_v11 = vmul.f32 1.442695, %v5447_v18 }
 0x519   : > { %v9412_v24 = vpop.eup %7408  ;;  %7414 = vpow2.f32 %v5508_v11 }
 0x51a   : > { %v5403_v58 = vpop.xlane.xlu0 %5402  ;;  %5574 = vadd.xlane.f32.xlu0 %v9412_v24 }
 0x51b   : > { %v9415_v40 = vpop.eup %7410  ;;  %v5448_v44 = vsub.f32 %v9261_v17, %v5403_v58 }
 0x51c   : > { %v5405_v0 = vpop.xlane.xlu1 %5404  ;;  %5576 = vadd.xlane.f32.xlu1 %v9415_v40 }
 0x51d   : > { %v5510_v29 = vmul.f32 1.442695, %v5448_v44  ;;  %v5449_v62 = vsub.f32 %v9266_v53, %v5405_v0 }
 0x51f   : > { %7416 = vpow2.f32 %v5510_v29  ;;  %v5512_v26 = vmul.f32 1.442695, %v5449_v62 }
 0x521   : > { %v9420_v20 = vpop.eup %7412  ;;  %7418 = vpow2.f32 %v5512_v26 }
 0x522   : > { %v5407_v30 = vpop.xlane.xlu0 %5406  ;;  %5578 = vadd.xlane.f32.xlu0 %v9420_v20 }
 0x523   : > { %v9423_v2 = vpop.eup %7414  ;;  %v5450_v22 = vsub.f32 %v9273_v25, %v5407_v30 }
 0x524   : > { %v5409_v46 = vpop.xlane.xlu1 %5408  ;;  %5580 = vadd.xlane.f32.xlu1 %v9423_v2 }
 0x525   : > { %v5514_v17 = vmul.f32 1.442695, %v5450_v22  ;;  %v5451_v15 = vsub.f32 %v9278_v12, %v5409_v46 }
 0x527   : > { %7420 = vpow2.f32 %v5514_v17  ;;  %v5516_v53 = vmul.f32 1.442695, %v5451_v15 }
 0x529   : > { %v9428_v51 = vpop.eup %7416  ;;  %7422 = vpow2.f32 %v5516_v53 }
 0x52a   : > { %v5411_v23 = vpop.xlane.xlu0 %5410  ;;  %5582 = vadd.xlane.f32.xlu0 %v9428_v51 }
 0x52b   : > { %v9431_v1 = vpop.eup %7418  ;;  %v5452_v54 = vsub.f32 %v9285_v35, %v5411_v23 }
 0x52c   : > { %v5413_v31 = vpop.xlane.xlu1 %5412  ;;  %5584 = vadd.xlane.f32.xlu1 %v9431_v1 }
 0x52d   : > { %v5518_v25 = vmul.f32 1.442695, %v5452_v54  ;;  %v5453_v6 = vsub.f32 %v9290_v37, %v5413_v31 }
 0x52f   : > { %7424 = vpow2.f32 %v5518_v25  ;;  %v5520_v12 = vmul.f32 1.442695, %v5453_v6 }
 0x531   : > { %v9436_v57 = vpop.eup %7420  ;;  %7426 = vpow2.f32 %v5520_v12 }
 0x532   : > { %v5415_v38 = vpop.xlane.xlu0 %5414  ;;  %5586 = vadd.xlane.f32.xlu0 %v9436_v57 }
 0x533   : > { %v9439_v39 = vpop.eup %7422  ;;  %v5454_v41 = vsub.f32 %v9297_v3, %v5415_v38 }
 0x534   : > { %v5417_v33 = vpop.xlane.xlu1 %5416  ;;  %5588 = vadd.xlane.f32.xlu1 %v9439_v39 }
 0x535   : > { %v5522_v35 = vmul.f32 1.442695, %v5454_v41  ;;  %v5455_v43 = vsub.f32 %v9302_v34, %v5417_v33 }
 0x537   : > { %7428 = vpow2.f32 %v5522_v35  ;;  %v5524_v37 = vmul.f32 1.442695, %v5455_v43 }
 0x539   : > { %v9444_v5 = vpop.eup %7424  ;;  %7430 = vpow2.f32 %v5524_v37 }
 0x53a   : > { %5590 = vadd.xlane.f32.xlu0 %v9444_v5  ;;  %v5419_v55 = vpop.xlane.xlu0 %5418 }
 0x53b   : > { %v9447_v42 = vpop.eup %7426  ;;  %v5456_v47 = vsub.f32 %v9309_v56, %v5419_v55 }
 0x53c   : > { %5592 = vadd.xlane.f32.xlu1 %v9447_v42  ;;  %v5421_v3 = vpop.xlane.xlu1 %5420 }
 0x53d   : > { %v5526_v18 = vmul.f32 1.442695, %v5456_v47  ;;  %v5457_v11 = vsub.f32 %v9314_v21, %v5421_v3 }
 0x53f   : > { %7432 = vpow2.f32 %v5526_v18  ;;  %v5528_v34 = vmul.f32 1.442695, %v5457_v11 }
 0x541   : > { %v9452_v58 = vpop.eup %7428  ;;  %7434 = vpow2.f32 %v5528_v34 }
 0x542   : > { %5594 = vadd.xlane.f32.xlu0 %v9452_v58 }
 0x543   : > { %v9455_v44 = vpop.eup %7430 }
 0x544   : > { %5596 = vadd.xlane.f32.xlu1 %v9455_v44 }
 0x549   : > { %v9458_v0 = vpop.eup %7432 }
 0x54a   : > { %5598 = vadd.xlane.f32.xlu0 %v9458_v0 }
 0x54b   : > { %v9461_v56 = vpop.eup %7434 }
 0x54c   : > { %5600 = vadd.xlane.f32.xlu1 %v9461_v56 }
 0x54f   : > { %v5531_v21 = vpop.xlane.xlu0 %5530 }
 0x550   : > { %7436 = vrcp.f32 %v5531_v21 }
 0x553   : > { %v5533_v29 = vpop.xlane.xlu1 %5532 }
 0x554   : > { %7438 = vrcp.f32 %v5533_v29 }
 0x557   : > { %v5535_v62 = vpop.xlane.xlu0 %5534 }
 0x558   : > { %7440 = vrcp.f32 %v5535_v62 }
 0x55a   : > { %v7437_v30 = vpop.eup %7436 }
 0x55b   : > { %v5537_v26 = vpop.xlane.xlu1 %5536  ;;  %v5638_v46 = vmul.f32 %v7437_v30, %v9324_v27 }
 0x55c   : > { %7442 = vrcp.f32 %v5537_v26 }
 0x55e   : > { %v7439_v22 = vpop.eup %7438 }
 0x55f   : > { %v5639_v17 = vmul.f32 %v7439_v22, %v9328_v61  ;;  %v5539_v15 = vpop.xlane.xlu0 %5538 }
 0x560   : > { %7444 = vrcp.f32 %v5539_v15 }
 0x561   : > { %v6378_v53 = vpack.c.bf16 %v5639_v17, %v5638_v46  ;;  %v5541_v23 = vpop.xlane.xlu1 %5540 }
 0x562   : > { %7446 = vrcp.f32 %v5541_v23  ;;  %v7441_v54 = vpop.eup %7440 }
 0x563   : > { %6379 = vst [vmem:[%s9470_s15] sm:$0xff] %v6378_v53   ;;  %v5640_v27 = vmul.f32 %v7441_v54, %v9332_v9 }
 0x566   : > { %v7443_v31 = vpop.eup %7442 }
 0x567   : > { %v5641_v61 = vmul.f32 %v7443_v31, %v9336_v16  ;;  %v5543_v25 = vpop.xlane.xlu0 %5542 }
 0x568   : > { %7448 = vrcp.f32 %v5543_v25 }
 0x569   : > { %v6383_v6 = vpack.c.bf16 %v5641_v61, %v5640_v27  ;;  %v5545_v12 = vpop.xlane.xlu1 %5544 }
 0x56a   : > { %v7445_v38 = vpop.eup %7444  ;;  %7450 = vrcp.f32 %v5545_v12 }
 0x56b   : > { %6465 = vst [vmem:[%s9470_s15 + $0x8] sm:$0xff] %v6383_v6   ;;  %v5642_v33 = vmul.f32 %v7445_v38, %v9340_v4 }
 0x56c   : > { %v7447_v41 = vpop.eup %7446 }
 0x56d   : > { %v5643_v35 = vmul.f32 %v7447_v41, %v9343_v48 }
 0x56f   : > { %v6388_v43 = vpack.c.bf16 %v5643_v35, %v5642_v33  ;;  %v5547_v37 = vpop.xlane.xlu0 %5546 }
 0x570   : > { %7452 = vrcp.f32 %v5547_v37 }
 0x571   : > { %6466 = vst [vmem:[%s9470_s15 + $0x10] sm:$0xff] %v6388_v43   ;;  %v5549_v9 = vpop.xlane.xlu1 %5548 }
 0x572   : > { %v7449_v55 = vpop.eup %7448  ;;  %7454 = vrcp.f32 %v5549_v9 }
 0x573   : > { %v5644_v47 = vmul.f32 %v7449_v55, %v9348_v19 }
 0x574   : > { %v7451_v16 = vpop.eup %7450 }
 0x575   : > { %v5645_v3 = vmul.f32 %v7451_v16, %v9351_v45 }
 0x577   : > { %v6393_v18 = vpack.c.bf16 %v5645_v3, %v5644_v47  ;;  %v5551_v11 = vpop.xlane.xlu0 %5550 }
 0x578   : > { %7456 = vrcp.f32 %v5551_v11 }
 0x579   : > { %6467 = vst [vmem:[%s9470_s15 + $0x18] sm:$0xff] %v6393_v18   ;;  %v5553_v4 = vpop.xlane.xlu1 %5552 }
 0x57a   : > { %v7453_v34 = vpop.eup %7452  ;;  %7458 = vrcp.f32 %v5553_v4 }
 0x57b   : > { %v5646_v21 = vmul.f32 %v7453_v34, %v9356_v10 }
 0x57c   : > { %v7455_v48 = vpop.eup %7454 }
 0x57d   : > { %v5647_v29 = vmul.f32 %v7455_v48, %v9359_v14 }
 0x57f   : > { %v6398_v62 = vpack.c.bf16 %v5647_v29, %v5646_v21  ;;  %v5555_v26 = vpop.xlane.xlu0 %5554 }
 0x580   : > { %7460 = vrcp.f32 %v5555_v26 }
 0x581   : > { %6468 = vst [vmem:[%s9470_s15 + $0x20] sm:$0xff] %v6398_v62   ;;  %v5557_v19 = vpop.xlane.xlu1 %5556 }
 0x582   : > { %v7457_v30 = vpop.eup %7456  ;;  %7462 = vrcp.f32 %v5557_v19 }
 0x583   : > { %v5648_v22 = vmul.f32 %v7457_v30, %v9364_v36 }
 0x584   : > { %v7459_v45 = vpop.eup %7458 }
 0x585   : > { %v5649_v46 = vmul.f32 %v7459_v45, %v9367_v59 }
 0x587   : > { %v6403_v17 = vpack.c.bf16 %v5649_v46, %v5648_v22  ;;  %v5559_v15 = vpop.xlane.xlu0 %5558 }
 0x588   : > { %7464 = vrcp.f32 %v5559_v15 }
 0x589   : > { %6469 = vst [vmem:[%s9470_s15 + $0x28] sm:$0xff] %v6403_v17   ;;  %v5561_v10 = vpop.xlane.xlu1 %5560 }
 0x58a   : > { %v7461_v53 = vpop.eup %7460  ;;  %7466 = vrcp.f32 %v5561_v10 }
 0x58b   : > { %v5650_v23 = vmul.f32 %v7461_v53, %v9372_v60 }
 0x58c   : > { %v7463_v14 = vpop.eup %7462 }
 0x58d   : > { %v5651_v54 = vmul.f32 %v7463_v14, %v9375_v28 }
 0x58f   : > { %v6408_v31 = vpack.c.bf16 %v5651_v54, %v5650_v23  ;;  %v5563_v27 = vpop.xlane.xlu0 %5562 }
 0x590   : > { %7468 = vrcp.f32 %v5563_v27 }
 0x591   : > { %6470 = vst [vmem:[%s9470_s15 + $0x30] sm:$0xff] %v6408_v31   ;;  %v5565_v36 = vpop.xlane.xlu1 %5564 }
 0x592   : > { %v7465_v61 = vpop.eup %7464  ;;  %7470 = vrcp.f32 %v5565_v36 }
 0x593   : > { %v5652_v25 = vmul.f32 %v7465_v61, %v9380_v49 }
 0x594   : > { %v7467_v59 = vpop.eup %7466 }
 0x595   : > { %v5653_v6 = vmul.f32 %v7467_v59, %v9383_v8 }
 0x597   : > { %v6413_v12 = vpack.c.bf16 %v5653_v6, %v5652_v25  ;;  %v5567_v38 = vpop.xlane.xlu0 %5566 }
 0x598   : > { %7472 = vrcp.f32 %v5567_v38 }
 0x599   : > { %6471 = vst [vmem:[%s9470_s15 + $0x38] sm:$0xff] %v6413_v12   ;;  %v5569_v60 = vpop.xlane.xlu1 %5568 }
 0x59a   : > { %v7469_v41 = vpop.eup %7468  ;;  %7474 = vrcp.f32 %v5569_v60 }
 0x59b   : > { %v5654_v33 = vmul.f32 %v7469_v41, %v9388_v50 }
 0x59c   : > { %v7471_v28 = vpop.eup %7470 }
 0x59d   : > { %v5655_v35 = vmul.f32 %v7471_v28, %v9391_v52 }
 0x59f   : > { %v6418_v43 = vpack.c.bf16 %v5655_v35, %v5654_v33  ;;  %v5571_v37 = vpop.xlane.xlu0 %5570 }
 0x5a0   : > { %7476 = vrcp.f32 %v5571_v37 }
 0x5a1   : > { %6472 = vst [vmem:[%s9470_s15 + $0x40] sm:$0xff] %v6418_v43   ;;  %v5573_v49 = vpop.xlane.xlu1 %5572 }
 0x5a2   : > { %v7473_v9 = vpop.eup %7472  ;;  %7478 = vrcp.f32 %v5573_v49 }
 0x5a3   : > { %v5656_v55 = vmul.f32 %v7473_v9, %v9396_v32 }
 0x5a4   : > { %v7475_v8 = vpop.eup %7474 }
 0x5a5   : > { %v5657_v16 = vmul.f32 %v7475_v8, %v9399_v13 }
 0x5a7   : > { %v6423_v47 = vpack.c.bf16 %v5657_v16, %v5656_v55  ;;  %v5575_v3 = vpop.xlane.xlu0 %5574 }
 0x5a8   : > { %7480 = vrcp.f32 %v5575_v3 }
 0x5a9   : > { %6473 = vst [vmem:[%s9470_s15 + $0x48] sm:$0xff] %v6423_v47   ;;  %v5577_v50 = vpop.xlane.xlu1 %5576 }
 0x5aa   : > { %v7477_v18 = vpop.eup %7476  ;;  %7482 = vrcp.f32 %v5577_v50 }
 0x5ab   : > { %v5658_v11 = vmul.f32 %v7477_v18, %v9404_v7 }
 0x5ac   : > { %v7479_v52 = vpop.eup %7478 }
 0x5ad   : > { %v5659_v4 = vmul.f32 %v7479_v52, %v9407_v63 }
 0x5af   : > { %v6428_v34 = vpack.c.bf16 %v5659_v4, %v5658_v11  ;;  %v5579_v48 = vpop.xlane.xlu0 %5578 }
 0x5b0   : > { %7484 = vrcp.f32 %v5579_v48 }
 0x5b1   : > { %6474 = vst [vmem:[%s9470_s15 + $0x50] sm:$0xff] %v6428_v34   ;;  %v5581_v32 = vpop.xlane.xlu1 %5580 }
 0x5b2   : > { %v7481_v21 = vpop.eup %7480  ;;  %7486 = vrcp.f32 %v5581_v32 }
 0x5b3   : > { %v5660_v29 = vmul.f32 %v7481_v21, %v9412_v24 }
 0x5b4   : > { %v7483_v13 = vpop.eup %7482 }
 0x5b5   : > { %v5661_v62 = vmul.f32 %v7483_v13, %v9415_v40 }
 0x5b7   : > { %v6433_v26 = vpack.c.bf16 %v5661_v62, %v5660_v29  ;;  %v5583_v19 = vpop.xlane.xlu0 %5582 }
 0x5b8   : > { %7488 = vrcp.f32 %v5583_v19 }
 0x5b9   : > { %6475 = vst [vmem:[%s9470_s15 + $0x58] sm:$0xff] %v6433_v26   ;;  %v5585_v7 = vpop.xlane.xlu1 %5584 }
 0x5ba   : > { %v7485_v30 = vpop.eup %7484  ;;  %7490 = vrcp.f32 %v5585_v7 }
 0x5bb   : > { %v5662_v45 = vmul.f32 %v7485_v30, %v9420_v20 }
 0x5bc   : > { %v7487_v63 = vpop.eup %7486 }
 0x5bd   : > { %v5663_v22 = vmul.f32 %v7487_v63, %v9423_v2 }
 0x5bf   : > { %v6438_v46 = vpack.c.bf16 %v5663_v22, %v5662_v45  ;;  %v5587_v17 = vpop.xlane.xlu0 %5586 }
 0x5c0   : > { %7492 = vrcp.f32 %v5587_v17 }
 0x5c1   : > { %6476 = vst [vmem:[%s9470_s15 + $0x60] sm:$0xff] %v6438_v46   ;;  %v5589_v24 = vpop.xlane.xlu1 %5588 }
 0x5c2   : > { %v7489_v15 = vpop.eup %7488  ;;  %7494 = vrcp.f32 %v5589_v24 }
 0x5c3   : > { %v5664_v10 = vmul.f32 %v7489_v15, %v9428_v51 }
 0x5c4   : > { %v7491_v40 = vpop.eup %7490 }
 0x5c5   : > { %v5665_v53 = vmul.f32 %v7491_v40, %v9431_v1 }
 0x5c7   : > { %v6443_v14 = vpack.c.bf16 %v5665_v53, %v5664_v10  ;;  %v5591_v23 = vpop.xlane.xlu0 %5590 }
 0x5c8   : > { %7496 = vrcp.f32 %v5591_v23 }
 0x5c9   : > { %6477 = vst [vmem:[%s9470_s15 + $0x68] sm:$0xff] %v6443_v14   ;;  %v5593_v20 = vpop.xlane.xlu1 %5592 }
 0x5ca   : > { %v7493_v54 = vpop.eup %7492  ;;  %7498 = vrcp.f32 %v5593_v20 }
 0x5cb   : > { %v5666_v31 = vmul.f32 %v7493_v54, %v9436_v57 }
 0x5cc   : > { %v7495_v2 = vpop.eup %7494 }
 0x5cd   : > { %v5667_v27 = vmul.f32 %v7495_v2, %v9439_v39 }
 0x5cf   : > { %v6448_v36 = vpack.c.bf16 %v5667_v27, %v5666_v31  ;;  %v5595_v61 = vpop.xlane.xlu0 %5594 }
 0x5d0   : > { %7500 = vrcp.f32 %v5595_v61 }
 0x5d1   : > { %6478 = vst [vmem:[%s9470_s15 + $0x70] sm:$0xff] %v6448_v36   ;;  %v5597_v51 = vpop.xlane.xlu1 %5596 }
 0x5d2   : > { %v7497_v59 = vpop.eup %7496  ;;  %7502 = vrcp.f32 %v5597_v51 }
 0x5d3   : > { %v5668_v25 = vmul.f32 %v7497_v59, %v9444_v5 }
 0x5d4   : > { %v7499_v1 = vpop.eup %7498 }
 0x5d5   : > { %v5669_v6 = vmul.f32 %v7499_v1, %v9447_v42 }
 0x5d7   : > { %v6453_v12 = vpack.c.bf16 %v5669_v6, %v5668_v25  ;;  %v5599_v38 = vpop.xlane.xlu0 %5598 }
 0x5d8   : > { %7504 = vrcp.f32 %v5599_v38 }
 0x5d9   : > { %6479 = vst [vmem:[%s9470_s15 + $0x78] sm:$0xff] %v6453_v12   ;;  %v5601_v57 = vpop.xlane.xlu1 %5600 }
 0x5da   : > { %v7501_v39 = vpop.eup %7500  ;;  %7506 = vrcp.f32 %v5601_v57 }
 0x5db   : > { %v5670_v41 = vmul.f32 %v7501_v39, %v9452_v58 }
 0x5dc   : > { %v7503_v60 = vpop.eup %7502 }
 0x5dd   : > { %v5671_v28 = vmul.f32 %v7503_v60, %v9455_v44 }
 0x5df   : > { %v6458_v33 = vpack.c.bf16 %v5671_v28, %v5670_v41 }
 0x5e1   : > { %6480 = vst [vmem:[%s9470_s15 + $0x80] sm:$0xff] %v6458_v33  }
 0x5e2   : > { %v7505_v35 = vpop.eup %7504 }
 0x5e3   : > { %v5672_v5 = vmul.f32 %v7505_v35, %v9458_v0 }
 0x5e4   : > { %v7507_v43 = vpop.eup %7506 }
 0x5e5   : > { %v5673_v42 = vmul.f32 %v7507_v43, %v9461_v56 }
 0x5e7   : > { %v6463_v37 = vpack.c.bf16 %v5673_v42, %v5672_v5 }
 0x5e9   : > { %6481 = vst [vmem:[%s9470_s15 + $0x88] sm:$0xff] %v6463_v37  }
 0x5ea PF: > { %s17_s21 = sadd.s32 1, %s7548_s21  }
 0x5eb   : > { %p14_p4 = scmp.ge.s32.totalorder %s17_s21, 4  }
 0x5ed   :  { %16 = sbr.rel (!%p14_p4) target bundleno = 1 (0x1), region = 90 }

</bundles_post_ra>
